<compile_context>
chip_gen: v5e
topology: v5e:2x2
jax: 0.10.0
libtpu: 0.0.40
codegen_flags: <defaults>
</compile_context>

<pallas_src>
import jax
import jax.numpy as jnp
from jax.experimental import pallas as pl
from jax.experimental.pallas import tpu as pltpu


def _round_up(x, m):
    return ((x + m - 1) // m) * m


def make_block_kernel(H, W, CP, matmul_dtype):
    """Kernel body for one batch element (NHWC, channels padded to CP)."""
    HW = H * W

    def kernel(x_ref, w1_ref, b1_ref, w2_ref, b2_ref, o_ref, buf):
        # ---- conv1 as a single im2col matmul (K = 9*CP) + folded-BN1 + relu --
        p1 = jnp.concatenate(
            [x_ref[0, dy:dy + H, dx:dx + W, :].reshape(HW, CP)
             for dy in range(3) for dx in range(3)],
            axis=1)                                           # (HW, 9*CP) f32
        acc1 = jnp.dot(p1.astype(matmul_dtype), w1_ref[...],
                       preferred_element_type=jnp.float32)    # (HW, CP)
        y1 = jnp.maximum(acc1 + b1_ref[...], 0.0)

        # ---- stage zero-padded conv2 input in VMEM scratch (halo = zeros) ----
        buf[...] = jnp.zeros_like(buf)
        buf[1:H + 1, 1:W + 1, :] = y1.reshape(H, W, CP)

        # ---- conv2 as a single im2col matmul; BN2 scale and `prob` are
        #      already folded into w2 / b2 on the host ----
        p2 = jnp.concatenate(
            [buf[dy:dy + H, dx:dx + W, :].reshape(HW, CP)
             for dy in range(3) for dx in range(3)],
            axis=1)                                           # (HW, 9*CP)
        acc2 = jnp.dot(p2.astype(matmul_dtype), w2_ref[...],
                       preferred_element_type=jnp.float32)    # (HW, CP)
        y2 = acc2 + b2_ref[...]

        # ---- residual (centre tap of the im2col patches == original x
        #      interior, lane-aligned slice) + final relu ----
        ident = p1[:, 4 * CP:5 * CP]
        o_ref[0] = jnp.maximum(y2 + ident, 0.0).reshape(H, W, CP)

    return kernel


def stodepth_basicblock_forward(x_nchw, params, prob=0.8, multFlag=True,
                                matmul_dtype=jnp.bfloat16, eps=1e-5):
    """x_nchw: (N, C, H, W) float32. Returns (N, C, H, W) float32."""
    N, C, H, W = x_nchw.shape
    w1, g1, be1, m1, v1, w2, g2, be2, m2, v2 = params
    C_OUT = w1.shape[0]
    assert C_OUT == C, "no-downsample block requires inplanes == planes"

    CP = max(128, _round_up(C, 128))            # lane-dense channel padding
    p = float(prob) if multFlag else 1.0

    # Fold BN (eval) into per-output-channel scale/bias, then fold the scale
    # (and `prob` for the second conv) directly into the conv weights.
    s1 = g1 / jnp.sqrt(v1 + eps)
    b1 = be1 - m1 * s1
    s2 = g2 / jnp.sqrt(v2 + eps)
    b2 = p * (be2 - m2 * s2)

    # PyTorch conv weight (Cout, Cin, kh, kw) -> (kh, kw, Cin, Cout)
    w1_k = jnp.transpose(w1, (2, 3, 1, 0)).astype(jnp.float32) * s1[None, None, None, :]
    w2_k = jnp.transpose(w2, (2, 3, 1, 0)).astype(jnp.float32) * (p * s2)[None, None, None, :]

    def pack_weight(wk):
        wp = jnp.zeros((3, 3, CP, CP), jnp.float32).at[:, :, :C, :C].set(wk)
        return wp.reshape(9 * CP, CP).astype(matmul_dtype)    # im2col weight

    w1_p = pack_weight(w1_k)
    w2_p = pack_weight(w2_k)
    b1_p = jnp.zeros((1, CP), jnp.float32).at[0, :C].set(b1)
    b2_p = jnp.zeros((1, CP), jnp.float32).at[0, :C].set(b2)

    # NCHW -> NHWC; spatial zero-pad by 1 (conv1 halo + residual interior),
    # channel zero-pad to CP.
    x_nhwc = jnp.transpose(x_nchw, (0, 2, 3, 1)).astype(jnp.float32)
    x_pad = jnp.pad(x_nhwc, ((0, 0), (1, 1), (1, 1), (0, CP - C)))

    kernel = make_block_kernel(H, W, CP, matmul_dtype)

    out_nhwc = pl.pallas_call(
        kernel,
        out_shape=jax.ShapeDtypeStruct((N, H, W, CP), jnp.float32),
        grid_spec=pltpu.PrefetchScalarGridSpec(
            num_scalar_prefetch=0,
            grid=(N,),
            in_specs=[
                pl.BlockSpec((1, H + 2, W + 2, CP), lambda n: (n, 0, 0, 0)),
                pl.BlockSpec((9 * CP, CP), lambda n: (0, 0)),
                pl.BlockSpec((1, CP), lambda n: (0, 0)),
                pl.BlockSpec((9 * CP, CP), lambda n: (0, 0)),
                pl.BlockSpec((1, CP), lambda n: (0, 0)),
            ],
            out_specs=pl.BlockSpec((1, H, W, CP), lambda n: (n, 0, 0, 0)),
            scratch_shapes=[pltpu.VMEM((H + 2, W + 2, CP), jnp.float32)],
        ),
        # No cross-iteration scratch state -> batch axis is embarrassingly
        # parallel (megacore shards it on multi-TC chips).
        compiler_params=pltpu.CompilerParams(
            dimension_semantics=("parallel",),
            vmem_limit_bytes=32 * 1024 * 1024),
    )(x_pad, w1_p, b1_p, w2_p, b2_p)

    return jnp.transpose(out_nhwc[..., :C], (0, 3, 1, 2))


def _reference_forward(x_nchw, params, prob=0.8):
    """Pure-JAX f32 reference (same math) for a sanity check."""
    w1, g1, be1, m1, v1, w2, g2, be2, m2, v2 = params
    eps = 1e-5

    def conv3x3(x, w):
        return jax.lax.conv_general_dilated(
            x, w, window_strides=(1, 1), padding=((1, 1), (1, 1)),
            dimension_numbers=("NCHW", "OIHW", "NCHW"))

    def bn(x, g, b, m, v):
        g = g.reshape(1, -1, 1, 1); b = b.reshape(1, -1, 1, 1)
        m = m.reshape(1, -1, 1, 1); v = v.reshape(1, -1, 1, 1)
        return (x - m) / jnp.sqrt(v + eps) * g + b

    out = jax.nn.relu(bn(conv3x3(x_nchw, w1), g1, be1, m1, v1))
    out = bn(conv3x3(out, w2), g2, be2, m2, v2)
    out = prob * out + x_nchw
    return jax.nn.relu(out)


if __name__ == "__main__":
    key = jax.random.PRNGKey(0)
    N, C, H, W = 2, 4, 16, 16     # inplanes = planes = 4, stride = 1
    prob = 0.8

    ks = jax.random.split(key, 11)
    x = jax.random.normal(ks[0], (N, C, H, W), jnp.float32)

    w1 = jax.random.normal(ks[1], (C, C, 3, 3), jnp.float32) * 0.1
    w2 = jax.random.normal(ks[2], (C, C, 3, 3), jnp.float32) * 0.1
    g1 = 1.0 + 0.1 * jax.random.normal(ks[3], (C,), jnp.float32)
    be1 = 0.1 * jax.random.normal(ks[4], (C,), jnp.float32)
    m1 = 0.1 * jax.random.normal(ks[5], (C,), jnp.float32)
    v1 = jnp.abs(jax.random.normal(ks[6], (C,), jnp.float32)) + 0.5
    g2 = 1.0 + 0.1 * jax.random.normal(ks[7], (C,), jnp.float32)
    be2 = 0.1 * jax.random.normal(ks[8], (C,), jnp.float32)
    m2 = 0.1 * jax.random.normal(ks[9], (C,), jnp.float32)
    v2 = jnp.abs(jax.random.normal(ks[10], (C,), jnp.float32)) + 0.5

    params = (w1, g1, be1, m1, v1, w2, g2, be2, m2, v2)

    ref = jax.block_until_ready(_reference_forward(x, params, prob=prob))

    # Default path: bf16 MXU operands, f32 accumulation / epilogue.
    out_bf16 = jax.block_until_ready(
        stodepth_basicblock_forward(x, params, prob=prob, multFlag=True,
                                    matmul_dtype=jnp.bfloat16))
    assert out_bf16.shape == (N, C, H, W)
    err_bf16 = float(jnp.max(jnp.abs(out_bf16 - ref)))
    assert err_bf16 < 5e-2, f"bf16 kernel mismatch vs reference: {err_bf16}"

    # Full-f32 path for a tight numerical check.
    out_f32 = jax.block_until_ready(
        stodepth_basicblock_forward(x, params, prob=prob, multFlag=True,
                                    matmul_dtype=jnp.float32))
    err_f32 = float(jnp.max(jnp.abs(out_f32 - ref)))
    assert err_f32 < 1e-4, f"f32 kernel mismatch vs reference: {err_f32}"

    print("KERNEL_OK")
</pallas_src>

<mosaic_0001>
module attributes {stable_mosaic.version = 11 : i64} {
  func.func @kernel(%arg0: i32, %arg1: memref<1x18x18x128xf32, #tpu.memory_space<vmem>>, %arg2: memref<1152x128xbf16, #tpu.memory_space<vmem>>, %arg3: memref<1x128xf32, #tpu.memory_space<vmem>>, %arg4: memref<1152x128xbf16, #tpu.memory_space<vmem>>, %arg5: memref<1x128xf32, #tpu.memory_space<vmem>>, %arg6: memref<1x16x16x128xf32, #tpu.memory_space<vmem>>, %arg7: memref<18x18x128xf32, #tpu.memory_space<vmem>>) attributes {dimension_semantics = [#tpu.dimension_semantics<parallel>], iteration_bounds = array<i64: 2>, scalar_prefetch = 0 : i64, scratch_operands = 1 : i64, tpu.core_type = #tpu.core_type<tc>, window_params = [{transform_indices = @transform_0, window_bounds = array<i64: 1, 18, 18, 128>}, {pipeline_mode = #tpu.pipeline_mode<synchronous>, transform_indices = @transform_1, window_bounds = array<i64: 1152, 128>}, {pipeline_mode = #tpu.pipeline_mode<synchronous>, transform_indices = @transform_2, window_bounds = array<i64: 1, 128>}, {pipeline_mode = #tpu.pipeline_mode<synchronous>, transform_indices = @transform_3, window_bounds = array<i64: 1152, 128>}, {pipeline_mode = #tpu.pipeline_mode<synchronous>, transform_indices = @transform_4, window_bounds = array<i64: 1, 128>}, {transform_indices = @transform_5, window_bounds = array<i64: 1, 16, 16, 128>}]} {
    %c0 = arith.constant 0 : index
    %c0_0 = arith.constant 0 : index
    %c0_1 = arith.constant 0 : index
    %c0_2 = arith.constant 0 : index
    %0 = vector.load %arg1[%c0, %c0_0, %c0_1, %c0_2] : memref<1x18x18x128xf32, #tpu.memory_space<vmem>>, vector<1x16x16x128xf32>
    %1 = vector.shape_cast %0 : vector<1x16x16x128xf32> to vector<16x16x128xf32>
    %2 = vector.shape_cast %1 : vector<16x16x128xf32> to vector<256x128xf32>
    %c0_3 = arith.constant 0 : index
    %c0_4 = arith.constant 0 : index
    %c1 = arith.constant 1 : index
    %c0_5 = arith.constant 0 : index
    %3 = vector.load %arg1[%c0_3, %c0_4, %c1, %c0_5] : memref<1x18x18x128xf32, #tpu.memory_space<vmem>>, vector<1x16x16x128xf32>
    %4 = vector.shape_cast %3 : vector<1x16x16x128xf32> to vector<16x16x128xf32>
    %5 = vector.shape_cast %4 : vector<16x16x128xf32> to vector<256x128xf32>
    %c0_6 = arith.constant 0 : index
    %c0_7 = arith.constant 0 : index
    %c2 = arith.constant 2 : index
    %c0_8 = arith.constant 0 : index
    %6 = vector.load %arg1[%c0_6, %c0_7, %c2, %c0_8] : memref<1x18x18x128xf32, #tpu.memory_space<vmem>>, vector<1x16x16x128xf32>
    %7 = vector.shape_cast %6 : vector<1x16x16x128xf32> to vector<16x16x128xf32>
    %8 = vector.shape_cast %7 : vector<16x16x128xf32> to vector<256x128xf32>
    %c0_9 = arith.constant 0 : index
    %c1_10 = arith.constant 1 : index
    %c0_11 = arith.constant 0 : index
    %c0_12 = arith.constant 0 : index
    %9 = vector.load %arg1[%c0_9, %c1_10, %c0_11, %c0_12] : memref<1x18x18x128xf32, #tpu.memory_space<vmem>>, vector<1x16x16x128xf32>
    %10 = vector.shape_cast %9 : vector<1x16x16x128xf32> to vector<16x16x128xf32>
    %11 = vector.shape_cast %10 : vector<16x16x128xf32> to vector<256x128xf32>
    %c0_13 = arith.constant 0 : index
    %c1_14 = arith.constant 1 : index
    %c1_15 = arith.constant 1 : index
    %c0_16 = arith.constant 0 : index
    %12 = vector.load %arg1[%c0_13, %c1_14, %c1_15, %c0_16] : memref<1x18x18x128xf32, #tpu.memory_space<vmem>>, vector<1x16x16x128xf32>
    %13 = vector.shape_cast %12 : vector<1x16x16x128xf32> to vector<16x16x128xf32>
    %14 = vector.shape_cast %13 : vector<16x16x128xf32> to vector<256x128xf32>
    %c0_17 = arith.constant 0 : index
    %c1_18 = arith.constant 1 : index
    %c2_19 = arith.constant 2 : index
    %c0_20 = arith.constant 0 : index
    %15 = vector.load %arg1[%c0_17, %c1_18, %c2_19, %c0_20] : memref<1x18x18x128xf32, #tpu.memory_space<vmem>>, vector<1x16x16x128xf32>
    %16 = vector.shape_cast %15 : vector<1x16x16x128xf32> to vector<16x16x128xf32>
    %17 = vector.shape_cast %16 : vector<16x16x128xf32> to vector<256x128xf32>
    %c0_21 = arith.constant 0 : index
    %c2_22 = arith.constant 2 : index
    %c0_23 = arith.constant 0 : index
    %c0_24 = arith.constant 0 : index
    %18 = vector.load %arg1[%c0_21, %c2_22, %c0_23, %c0_24] : memref<1x18x18x128xf32, #tpu.memory_space<vmem>>, vector<1x16x16x128xf32>
    %19 = vector.shape_cast %18 : vector<1x16x16x128xf32> to vector<16x16x128xf32>
    %20 = vector.shape_cast %19 : vector<16x16x128xf32> to vector<256x128xf32>
    %c0_25 = arith.constant 0 : index
    %c2_26 = arith.constant 2 : index
    %c1_27 = arith.constant 1 : index
    %c0_28 = arith.constant 0 : index
    %21 = vector.load %arg1[%c0_25, %c2_26, %c1_27, %c0_28] : memref<1x18x18x128xf32, #tpu.memory_space<vmem>>, vector<1x16x16x128xf32>
    %22 = vector.shape_cast %21 : vector<1x16x16x128xf32> to vector<16x16x128xf32>
    %23 = vector.shape_cast %22 : vector<16x16x128xf32> to vector<256x128xf32>
    %c0_29 = arith.constant 0 : index
    %c2_30 = arith.constant 2 : index
    %c2_31 = arith.constant 2 : index
    %c0_32 = arith.constant 0 : index
    %24 = vector.load %arg1[%c0_29, %c2_30, %c2_31, %c0_32] : memref<1x18x18x128xf32, #tpu.memory_space<vmem>>, vector<1x16x16x128xf32>
    %25 = vector.shape_cast %24 : vector<1x16x16x128xf32> to vector<16x16x128xf32>
    %26 = vector.shape_cast %25 : vector<16x16x128xf32> to vector<256x128xf32>
    %27 = tpu.concatenate %2, %5, %8, %11, %14, %17, %20, %23, %26 in 1 : vector<256x128xf32>, vector<256x128xf32>, vector<256x128xf32>, vector<256x128xf32>, vector<256x128xf32>, vector<256x128xf32>, vector<256x128xf32>, vector<256x128xf32>, vector<256x128xf32> -> vector<256x1152xf32>
    %28 = arith.truncf %27 : vector<256x1152xf32> to vector<256x1152xbf16>
    %c0_33 = arith.constant 0 : index
    %c0_34 = arith.constant 0 : index
    %29 = vector.load %arg2[%c0_33, %c0_34] : memref<1152x128xbf16, #tpu.memory_space<vmem>>, vector<1152x128xbf16>
    %cst = arith.constant dense<0.000000e+00> : vector<256x128xf32>
    %30 = tpu.matmul %28, %29, %cst {dimension_numbers = #tpu.dot_dimension_numbers<[1], [0], [0], [1], [0, 0, 1, 1], [], []>} : vector<256x1152xbf16>, vector<1152x128xbf16>, vector<256x128xf32> -> vector<256x128xf32>
    %c0_35 = arith.constant 0 : index
    %c0_36 = arith.constant 0 : index
    %31 = vector.load %arg3[%c0_35, %c0_36] : memref<1x128xf32, #tpu.memory_space<vmem>>, vector<1x128xf32>
    %32 = vector.broadcast %31 : vector<1x128xf32> to vector<256x128xf32>
    %33 = arith.addf %30, %32 : vector<256x128xf32>
    %cst_37 = arith.constant 0.000000e+00 : f32
    %34 = vector.broadcast %cst_37 : f32 to vector<256x128xf32>
    %35 = arith.maximumf %33, %34 : vector<256x128xf32>
    %cst_38 = arith.constant 0.000000e+00 : f32
    %36 = vector.broadcast %cst_38 : f32 to vector<18x18x128xf32>
    %c0_39 = arith.constant 0 : index
    %c0_40 = arith.constant 0 : index
    %c0_41 = arith.constant 0 : index
    %37 = vector.load %arg7[%c0_39, %c0_40, %c0_41] : memref<18x18x128xf32, #tpu.memory_space<vmem>>, vector<18x18x128xf32>
    tpu.vector_store %arg7[%c0_39, %c0_40, %c0_41], %36 {strides = array<i32>} : memref<18x18x128xf32, #tpu.memory_space<vmem>>, vector<18x18x128xf32>,
    %38 = vector.shape_cast %35 : vector<256x128xf32> to vector<16x16x128xf32>
    %c1_42 = arith.constant 1 : index
    %c1_43 = arith.constant 1 : index
    %c0_44 = arith.constant 0 : index
    %39 = vector.load %arg7[%c1_42, %c1_43, %c0_44] : memref<18x18x128xf32, #tpu.memory_space<vmem>>, vector<16x16x128xf32>
    tpu.vector_store %arg7[%c1_42, %c1_43, %c0_44], %38 {strides = array<i32>} : memref<18x18x128xf32, #tpu.memory_space<vmem>>, vector<16x16x128xf32>,
    %c0_45 = arith.constant 0 : index
    %c0_46 = arith.constant 0 : index
    %c0_47 = arith.constant 0 : index
    %40 = vector.load %arg7[%c0_45, %c0_46, %c0_47] : memref<18x18x128xf32, #tpu.memory_space<vmem>>, vector<16x16x128xf32>
    %41 = vector.shape_cast %40 : vector<16x16x128xf32> to vector<256x128xf32>
    %c0_48 = arith.constant 0 : index
    %c1_49 = arith.constant 1 : index
    %c0_50 = arith.constant 0 : index
    %42 = vector.load %arg7[%c0_48, %c1_49, %c0_50] : memref<18x18x128xf32, #tpu.memory_space<vmem>>, vector<16x16x128xf32>
    %43 = vector.shape_cast %42 : vector<16x16x128xf32> to vector<256x128xf32>
    %c0_51 = arith.constant 0 : index
    %c2_52 = arith.constant 2 : index
    %c0_53 = arith.constant 0 : index
    %44 = vector.load %arg7[%c0_51, %c2_52, %c0_53] : memref<18x18x128xf32, #tpu.memory_space<vmem>>, vector<16x16x128xf32>
    %45 = vector.shape_cast %44 : vector<16x16x128xf32> to vector<256x128xf32>
    %c1_54 = arith.constant 1 : index
    %c0_55 = arith.constant 0 : index
    %c0_56 = arith.constant 0 : index
    %46 = vector.load %arg7[%c1_54, %c0_55, %c0_56] : memref<18x18x128xf32, #tpu.memory_space<vmem>>, vector<16x16x128xf32>
    %47 = vector.shape_cast %46 : vector<16x16x128xf32> to vector<256x128xf32>
    %c1_57 = arith.constant 1 : index
    %c1_58 = arith.constant 1 : index
    %c0_59 = arith.constant 0 : index
    %48 = vector.load %arg7[%c1_57, %c1_58, %c0_59] : memref<18x18x128xf32, #tpu.memory_space<vmem>>, vector<16x16x128xf32>
    %49 = vector.shape_cast %48 : vector<16x16x128xf32> to vector<256x128xf32>
    %c1_60 = arith.constant 1 : index
    %c2_61 = arith.constant 2 : index
    %c0_62 = arith.constant 0 : index
    %50 = vector.load %arg7[%c1_60, %c2_61, %c0_62] : memref<18x18x128xf32, #tpu.memory_space<vmem>>, vector<16x16x128xf32>
    %51 = vector.shape_cast %50 : vector<16x16x128xf32> to vector<256x128xf32>
    %c2_63 = arith.constant 2 : index
    %c0_64 = arith.constant 0 : index
    %c0_65 = arith.constant 0 : index
    %52 = vector.load %arg7[%c2_63, %c0_64, %c0_65] : memref<18x18x128xf32, #tpu.memory_space<vmem>>, vector<16x16x128xf32>
    %53 = vector.shape_cast %52 : vector<16x16x128xf32> to vector<256x128xf32>
    %c2_66 = arith.constant 2 : index
    %c1_67 = arith.constant 1 : index
    %c0_68 = arith.constant 0 : index
    %54 = vector.load %arg7[%c2_66, %c1_67, %c0_68] : memref<18x18x128xf32, #tpu.memory_space<vmem>>, vector<16x16x128xf32>
    %55 = vector.shape_cast %54 : vector<16x16x128xf32> to vector<256x128xf32>
    %c2_69 = arith.constant 2 : index
    %c2_70 = arith.constant 2 : index
    %c0_71 = arith.constant 0 : index
    %56 = vector.load %arg7[%c2_69, %c2_70, %c0_71] : memref<18x18x128xf32, #tpu.memory_space<vmem>>, vector<16x16x128xf32>
    %57 = vector.shape_cast %56 : vector<16x16x128xf32> to vector<256x128xf32>
    %58 = tpu.concatenate %41, %43, %45, %47, %49, %51, %53, %55, %57 in 1 : vector<256x128xf32>, vector<256x128xf32>, vector<256x128xf32>, vector<256x128xf32>, vector<256x128xf32>, vector<256x128xf32>, vector<256x128xf32>, vector<256x128xf32>, vector<256x128xf32> -> vector<256x1152xf32>
    %59 = arith.truncf %58 : vector<256x1152xf32> to vector<256x1152xbf16>
    %c0_72 = arith.constant 0 : index
    %c0_73 = arith.constant 0 : index
    %60 = vector.load %arg4[%c0_72, %c0_73] : memref<1152x128xbf16, #tpu.memory_space<vmem>>, vector<1152x128xbf16>
    %cst_74 = arith.constant dense<0.000000e+00> : vector<256x128xf32>
    %61 = tpu.matmul %59, %60, %cst_74 {dimension_numbers = #tpu.dot_dimension_numbers<[1], [0], [0], [1], [0, 0, 1, 1], [], []>} : vector<256x1152xbf16>, vector<1152x128xbf16>, vector<256x128xf32> -> vector<256x128xf32>
    %c0_75 = arith.constant 0 : index
    %c0_76 = arith.constant 0 : index
    %62 = vector.load %arg5[%c0_75, %c0_76] : memref<1x128xf32, #tpu.memory_space<vmem>>, vector<1x128xf32>
    %63 = vector.broadcast %62 : vector<1x128xf32> to vector<256x128xf32>
    %64 = arith.addf %61, %63 : vector<256x128xf32>
    %65 = vector.extract_strided_slice %27 {offsets = [0, 512], sizes = [256, 128], strides = [1, 1]} : vector<256x1152xf32> to vector<256x128xf32>
    %66 = arith.addf %64, %65 : vector<256x128xf32>
    %cst_77 = arith.constant 0.000000e+00 : f32
    %67 = vector.broadcast %cst_77 : f32 to vector<256x128xf32>
    %68 = arith.maximumf %66, %67 : vector<256x128xf32>
    %69 = vector.shape_cast %68 : vector<256x128xf32> to vector<16x16x128xf32>
    %c0_78 = arith.constant 0 : index
    %c0_79 = arith.constant 0 : index
    %c0_80 = arith.constant 0 : index
    %c0_81 = arith.constant 0 : index
    %70 = vector.load %arg6[%c0_78, %c0_79, %c0_80, %c0_81] : memref<1x16x16x128xf32, #tpu.memory_space<vmem>>, vector<1x16x16x128xf32>
    %71 = vector.shape_cast %70 : vector<1x16x16x128xf32> to vector<16x16x128xf32>
    %72 = vector.shape_cast %69 : vector<16x16x128xf32> to vector<1x16x16x128xf32>
    tpu.vector_store %arg6[%c0_78, %c0_79, %c0_80, %c0_81], %72 {strides = array<i32>} : memref<1x16x16x128xf32, #tpu.memory_space<vmem>>, vector<1x16x16x128xf32>,
    return
  }
  func.func @transform_0(%arg0: i32) -> (i32, i32, i32, i32) {
    %c0_i32 = arith.constant 0 : i32
    %c0_i32_0 = arith.constant 0 : i32
    %c0_i32_1 = arith.constant 0 : i32
    %c0_i32_2 = arith.constant 0 : i32
    return %arg0, %c0_i32, %c0_i32_0, %c0_i32_1 : i32, i32, i32, i32
  }
  func.func @transform_1(%arg0: i32) -> (i32, i32) {
    %c0_i32 = arith.constant 0 : i32
    %c0_i32_0 = arith.constant 0 : i32
    %c0_i32_1 = arith.constant 0 : i32
    return %c0_i32, %c0_i32_0 : i32, i32
  }
  func.func @transform_2(%arg0: i32) -> (i32, i32) {
    %c0_i32 = arith.constant 0 : i32
    %c0_i32_0 = arith.constant 0 : i32
    %c0_i32_1 = arith.constant 0 : i32
    return %c0_i32, %c0_i32_0 : i32, i32
  }
  func.func @transform_3(%arg0: i32) -> (i32, i32) {
    %c0_i32 = arith.constant 0 : i32
    %c0_i32_0 = arith.constant 0 : i32
    %c0_i32_1 = arith.constant 0 : i32
    return %c0_i32, %c0_i32_0 : i32, i32
  }
  func.func @transform_4(%arg0: i32) -> (i32, i32) {
    %c0_i32 = arith.constant 0 : i32
    %c0_i32_0 = arith.constant 0 : i32
    %c0_i32_1 = arith.constant 0 : i32
    return %c0_i32, %c0_i32_0 : i32, i32
  }
  func.func @transform_5(%arg0: i32) -> (i32, i32, i32, i32) {
    %c0_i32 = arith.constant 0 : i32
    %c0_i32_0 = arith.constant 0 : i32
    %c0_i32_1 = arith.constant 0 : i32
    %c0_i32_2 = arith.constant 0 : i32
    return %arg0, %c0_i32, %c0_i32_0, %c0_i32_1 : i32, i32, i32, i32
  }
}

</mosaic_0001>

<bundles_post_ra>
// kernel: tpu_custom_call.1
= control target key start
LH: loop header
LB: loop body
LE: loop exit
PB: predicated region body
PF: predicated region fallthrough
CT: control target
= control target key end

     0   :  { %10 = vsyncpa [#allocation4], 0  ;;  %s7043_s0 = inlined_call_operand.vmem [shape: f32[2,18,18,128], index: 0, kind: input, shape index: {}]   ;;  %s7044_s1 = inlined_call_operand.vmem [shape: bf16[1152,128], index: 1, kind: input, shape index: {}]   ;;  %s7045_s2 = inlined_call_operand.vmem [shape: f32[1,128], index: 2, kind: input, shape index: {}]   ;;  %s7046_s3 = inlined_call_operand.vmem [shape: bf16[1152,128], index: 3, kind: input, shape index: {}]   ;;  %s7047_s4 = inlined_call_operand.vmem [shape: f32[1,128], index: 4, kind: input, shape index: {}]   ;;  %s7048_s5 = inlined_call_operand.hbm [shape: f32[2,16,16,128], index: 5, kind: output, shape index: {}]  }
   0x1   :  { %12 = vsyncpa [#allocation4 + $0x1], 0  ;;  %s5261_s18 = smov 0   ;;  %s5263_s19 = smov 0  }
   0x2   :  { %s5265_s20 = smov 0   ;;  %s5267_s21 = smov 0  }
   0x3 LB: > { %s5282_s22 = sadd.s32 4294967295, %s5225_s21   ;;  %s4145_s23 = sadd.s32 4294967294, %s5225_s21   ;;  %s5225_s21 = sphi %s5267_s21, %s7058_s21   ;;  %s5221_s20 = sphi %s5265_s20, %s7057_s20   ;;  %s5217_s19 = sphi %s5263_s19, %s7056_s19   ;;  %s5213_s18 = sphi %s5261_s18, %s7055_s18  }
   0x4   : > { %s5286_s24 = sadd.s32 1, %s5225_s21   ;;  %s135_s25 = sadd.s32 1, %s5221_s20 }
   0x5   : > { %s132_s26 = ssub.s32 %s5225_s21, %s5286_s24  ;;  %p145_p0 = scmp.ne.s32.totalorder %s5221_s20, %s5217_s19 }
   0x6   : > { %p133_p1 = scmp.eq.s32.totalorder %s132_s26, 0  ;;  %p146_p2 = scmp.eq.s32.totalorder %s5282_s22, 1 }
   0x7   : > { %p151_p3 = scmp.ne.s32.totalorder %s5217_s19, %s5213_s18  ;;  %p152_p4 = scmp.eq.s32.totalorder %s4145_s23, 1 }
   0x8   : > { %s5297_s27 = scalar_select %p133_p1, %s5221_s20, %s135_s25  }
   0x9   : > { %p5299_p5 = por %p146_p2, %p145_p0  ;;  %p5303_p6 = por %p152_p4, %p151_p3 }
   0xa   : > { %p4148_p7 = scmp.ge.s32.totalorder %s5225_s21, 1  ;;  %p190_p8 = scmp.lt.s32.totalorder %s5225_s21, 3 }
   0xc   : > { %p191_p9 = pnand %p4148_p7, %p190_p8 }
   0xe   : > { %194 = sbr.rel (%p191_p9) target bundleno = 1473 (0x5c1), region = 40 }
  0x13   : > { %v4931_v0 = vld [vmem:[%s7044_s1 + $0x38] sm:$0xff]  ;;  %v4930_v2 = vld [vmem:[%s7044_s1 + $0x30] sm:$0xff]  ;;  %v4929_v4 = vld [vmem:[%s7044_s1 + $0x28] sm:$0xff]  ;;  %p218_p10 = scmp.lt.s32.totalorder %s5282_s22, 1  ;;  %s215_s15 = sand.u32 1, %s5217_s19  }
  0x14   : > { %v4939_v1 = vld [vmem:[%s7044_s1 + $0x78] sm:$0xff]  ;;  %1237 = vmatpush.bf16.msra.mxu0 %v4931_v0  ;;  %5069 = vmatpush.bf16.msra.mxu2 %v4931_v0  ;;  %v4938_v3 = vld [vmem:[%s7044_s1 + $0x70] sm:$0xff]  ;;  %v4937_v5 = vld [vmem:[%s7044_s1 + $0x68] sm:$0xff]  ;;  %s4149_s16 = sshll.u32 %s215_s15, 8  ;;  %s5068_s23 = sshll.u32 %s5282_s22, 8 }
  0x15   : > { %5077 = vmatpush.bf16.msra.mxu3 %v4939_v1  ;;  %1326 = vmatpush.bf16.msra.mxu1 %v4939_v1  ;;  %v4928_v6 = vld [vmem:[%s7044_s1 + $0x20] sm:$0xff]  ;;  %v4927_v8 = vld [vmem:[%s7044_s1 + $0x18] sm:$0xff]  ;;  %s219_s7 = scalar_select %p218_p10, %s5282_s22, 1  ;;  %v4926_v10 = vld [vmem:[%s7044_s1 + $0x10] sm:$0xff] }
  0x16   : > { %v4936_v7 = vld [vmem:[%s7044_s1 + $0x60] sm:$0xff]  ;;  %v4935_v9 = vld [vmem:[%s7044_s1 + $0x58] sm:$0xff]  ;;  %v4934_v11 = vld [vmem:[%s7044_s1 + $0x50] sm:$0xff]  ;;  %s6907_s17 = scalar_lea.vmem [#allocation3], %s4149_s16  ;;  %s4079_s6 = scalar_lea.hbm %s7048_s5, %s5068_s23 }
  0x17   : > { %s5085_s12 = smul.u32 432, %s219_s7  ;;  %v4925_v12 = vld [vmem:[%s7044_s1 + $0x8] sm:$0xff]  ;;  %v4924_v14 = vld [vmem:[%s7044_s1] sm:$0xff]  ;;  %v4947_v22 = vld [vmem:[%s7044_s1 + $0xb8] sm:$0xff]  ;;  %s4080_s7 = sshll.u32 %s6907_s17, 4  ;;  %s4081_s7 = int_to_ptr.vmem [resolvable:$true] %s4080_s7 }
  0x18   : > { %1238 = vmatpush.bf16.msra.mxu0 %v4930_v2  ;;  %5070 = vmatpush.bf16.msra.mxu2 %v4930_v2  ;;  %v4933_v13 = vld [vmem:[%s7044_s1 + $0x48] sm:$0xff]  ;;  %v4932_v15 = vld [vmem:[%s7044_s1 + $0x40] sm:$0xff]  ;;  %v4955_v23 = vld [vmem:[%s7044_s1 + $0xf8] sm:$0xff]  ;;  %s4082_s8 = sshll.u32 %s4079_s6, 4  ;;  %s4068_s22 = scalar_lea.sflag [#allocation4], %s215_s15  ;;  %s4083_s8 = int_to_ptr.hbm [resolvable:$true] %s4082_s8 }
  0x19   : > { %5078 = vmatpush.bf16.msra.mxu3 %v4938_v3  ;;  %1327 = vmatpush.bf16.msra.mxu1 %v4938_v3  ;;  %s5353_s25 = scalar_lea.vmem %s7043_s0, %s5085_s12  ;;  %v4963_v29 = vld [vmem:[%s7044_s1 + $0x138] sm:$0xff]  ;;  %v4946_v31 = vld [vmem:[%s7044_s1 + $0xb0] sm:$0xff]  ;;  %v4945_v34 = vld [vmem:[%s7044_s1 + $0xa8] sm:$0xff]  ;;  %s5177_s9 = sshra.s32 %s4083_s8, 4  ;;  %s5178_s9 = int_to_ptr.hbm [resolvable:$true] %s5177_s9 }
  0x1a   : > { %v223_v16 = vld [vmem:[%s5353_s25] sm:$0xff]  ;;  %v224_v17 = vld [vmem:[%s5353_s25 + $0x8] sm:$0xff]  ;;  %v4954_v32 = vld [vmem:[%s7044_s1 + $0xf0] sm:$0xff]  ;;  %s5179_s10 = scalar_lea.hbm %s5178_s9, 256  ;;  %s5183_s13 = scalar_lea.hbm %s7048_s5, 512 }
  0x1b   : > { %v239_v18 = vld [vmem:[%s5353_s25 + $0xc0] sm:$0xff]  ;;  %v240_v19 = vld [vmem:[%s5353_s25 + $0xc8] sm:$0xff]  ;;  %v513_v26 = vpack.c.bf16 %v224_v17, %v223_v16  ;;  %v4962_v33 = vld [vmem:[%s7044_s1 + $0x130] sm:$0xff]  ;;  %p5180_p11 = scmp.ne.s32.totalorder %s5178_s9, %s5179_s10  ;;  %p5184_p0 = scmp.lt.s32.totalorder %s5178_s9, %s7048_s5 }
  0x1c   : > { %1239 = vmatpush.bf16.msra.mxu0 %v4929_v4  ;;  %5071 = vmatpush.bf16.msra.mxu2 %v4929_v4  ;;  %v271_v20 = vld [vmem:[%s5353_s25 + $0xc1] sm:$0xff]  ;;  %v272_v21 = vld [vmem:[%s5353_s25 + $0xc9] sm:$0xff]  ;;  %v585_v27 = vpack.c.bf16 %v240_v19, %v239_v18  ;;  %v225_v37 = vld [vmem:[%s5353_s25 + $0x18] sm:$0xff]  ;;  %p5185_p1 = scmp.lt.s32.totalorder %s5183_s13, %s5179_s10 }
  0x1d   : > { %5079 = vmatpush.bf16.msra.mxu3 %v4937_v5  ;;  %1328 = vmatpush.bf16.msra.mxu1 %v4937_v5  ;;  %v255_v24 = vld [vmem:[%s5353_s25 + $0x1] sm:$0xff]  ;;  %v256_v25 = vld [vmem:[%s5353_s25 + $0x9] sm:$0xff]  ;;  %v586_v28 = vpack.c.bf16 %v272_v21, %v271_v20  ;;  %v241_v39 = vld [vmem:[%s5353_s25 + $0xd8] sm:$0xff]  ;;  %p5181_p12 = pnand %p5180_p11, %p5299_p5 }
  0x1e   : > { %v514_v30 = vpack.c.bf16 %v256_v25, %v255_v24  ;;  %v4953_v35 = vld [vmem:[%s7044_s1 + $0xe8] sm:$0xff]  ;;  %v226_v38 = vld [vmem:[%s5353_s25 + $0x20] sm:$0xff]  ;;  %v227_v52 = vld [vmem:[%s5353_s25 + $0x30] sm:$0xff]  ;;  %p5186_p2 = por %p5185_p1, %p5184_p0 }
  0x1f   : > { %v4961_v36 = vld [vmem:[%s7044_s1 + $0x128] sm:$0xff]  ;;  %v242_v40 = vld [vmem:[%s5353_s25 + $0xe0] sm:$0xff]  ;;  %v5407_v45 = vpack.c.bf16 %v226_v38, %v225_v37  ;;  %v228_v53 = vld [vmem:[%s5353_s25 + $0x38] sm:$0xff]  ;;  %p5182_p13 = pneg %p5181_p12 }
  0x20   : > { %1240 = vmatpush.bf16.msra.mxu0 %v4928_v6  ;;  %5072 = vmatpush.bf16.msra.mxu2 %v4928_v6  ;;  %v273_v41 = vld [vmem:[%s5353_s25 + $0xd9] sm:$0xff]  ;;  %v274_v42 = vld [vmem:[%s5353_s25 + $0xe1] sm:$0xff]  ;;  %v594_v46 = vpack.c.bf16 %v242_v40, %v241_v39  ;;  %v243_v54 = vld [vmem:[%s5353_s25 + $0xf0] sm:$0xff]  ;;  %v5430_v60 = vpack.c.bf16 %v228_v53, %v227_v52 }
  0x21   : > { %5080 = vmatpush.bf16.msra.mxu3 %v4936_v7  ;;  %1329 = vmatpush.bf16.msra.mxu1 %v4936_v7  ;;  %v257_v43 = vld [vmem:[%s5353_s25 + $0x19] sm:$0xff]  ;;  %v258_v44 = vld [vmem:[%s5353_s25 + $0x21] sm:$0xff]  ;;  %v595_v47 = vpack.c.bf16 %v274_v42, %v273_v41  ;;  %v275_v56 = vld [vmem:[%s5353_s25 + $0xf1] sm:$0xff]  ;;  %p5187_p3 = pnand %p5186_p2, %p5182_p13 }
  0x22   : > { %v5409_v48 = vpack.c.bf16 %v258_v44, %v257_v43  ;;  %v4944_v49 = vld [vmem:[%s7044_s1 + $0xa0] sm:$0xff]  ;;  %v244_v55 = vld [vmem:[%s5353_s25 + $0xf8] sm:$0xff]  ;;  %v229_v3 = vld [vmem:[%s5353_s25 + $0x48] sm:$0xff] }
  0x23   : > { %v4952_v50 = vld [vmem:[%s7044_s1 + $0xe0] sm:$0xff]  ;;  %v259_v58 = vld [vmem:[%s5353_s25 + $0x31] sm:$0xff]  ;;  %v603_v61 = vpack.c.bf16 %v244_v55, %v243_v54  ;;  %v245_v5 = vld [vmem:[%s5353_s25 + $0x108] sm:$0xff] }
  0x24   : > { %1241 = vmatpush.bf16.msra.mxu0 %v4927_v8  ;;  %5073 = vmatpush.bf16.msra.mxu2 %v4927_v8  ;;  %v4960_v51 = vld [vmem:[%s7044_s1 + $0x120] sm:$0xff]  ;;  %v4943_v0 = vld [vmem:[%s7044_s1 + $0x98] sm:$0xff]  ;;  %v230_v4 = vld [vmem:[%s5353_s25 + $0x50] sm:$0xff] }
  0x25   : > { %5081 = vmatpush.bf16.msra.mxu3 %v4935_v9  ;;  %1330 = vmatpush.bf16.msra.mxu1 %v4935_v9  ;;  %v276_v57 = vld [vmem:[%s5353_s25 + $0xf9] sm:$0xff]  ;;  %v246_v6 = vld [vmem:[%s5353_s25 + $0x110] sm:$0xff]  ;;  %v232_v19 = vld [vmem:[%s5353_s25 + $0x68] sm:$0xff] }
  0x26   : > { %v260_v59 = vld [vmem:[%s5353_s25 + $0x39] sm:$0xff]  ;;  %v604_v62 = vpack.c.bf16 %v276_v57, %v275_v56  ;;  %v277_v7 = vld [vmem:[%s5353_s25 + $0x109] sm:$0xff]  ;;  %v278_v8 = vld [vmem:[%s5353_s25 + $0x111] sm:$0xff] }
  0x27   : > { %v5432_v63 = vpack.c.bf16 %v260_v59, %v259_v58  ;;  %v4951_v1 = vld [vmem:[%s7044_s1 + $0xd8] sm:$0xff]  ;;  %v261_v9 = vld [vmem:[%s5353_s25 + $0x49] sm:$0xff]  ;;  %v231_v18 = vld [vmem:[%s5353_s25 + $0x60] sm:$0xff] }
  0x28   : > { %1242 = vmatpush.bf16.msra.mxu0 %v4926_v10  ;;  %5074 = vmatpush.bf16.msra.mxu2 %v4926_v10  ;;  %v4959_v2 = vld [vmem:[%s7044_s1 + $0x118] sm:$0xff]  ;;  %v4950_v16 = vld [vmem:[%s7044_s1 + $0xd0] sm:$0xff]  ;;  %v247_v20 = vld [vmem:[%s5353_s25 + $0x120] sm:$0xff] }
  0x29   : > { %5082 = vmatpush.bf16.msra.mxu3 %v4934_v11  ;;  %1331 = vmatpush.bf16.msra.mxu1 %v4934_v11  ;;  %v262_v10 = vld [vmem:[%s5353_s25 + $0x51] sm:$0xff]  ;;  %v5453_v11 = vpack.c.bf16 %v230_v4, %v229_v3  ;;  %v248_v21 = vld [vmem:[%s5353_s25 + $0x128] sm:$0xff]  ;;  %v250_v37 = vld [vmem:[%s5353_s25 + $0x140] sm:$0xff] }
  0x2a   : > { %v4958_v17 = vld [vmem:[%s7044_s1 + $0x110] sm:$0xff]  ;;  %v263_v24 = vld [vmem:[%s5353_s25 + $0x61] sm:$0xff]  ;;  %v281_v38 = vld [vmem:[%s5353_s25 + $0x139] sm:$0xff] }
  0x2b   : > { %v264_v25 = vld [vmem:[%s5353_s25 + $0x69] sm:$0xff]  ;;  %v282_v39 = vld [vmem:[%s5353_s25 + $0x141] sm:$0xff]  ;;  %v265_v40 = vld [vmem:[%s5353_s25 + $0x79] sm:$0xff] }
  0x2c   : > { %1243 = vmatpush.bf16.msra.mxu0 %v4925_v12  ;;  %5075 = vmatpush.bf16.msra.mxu2 %v4925_v12  ;;  %v612_v12 = vpack.c.bf16 %v246_v6, %v245_v5  ;;  %v266_v41 = vld [vmem:[%s5353_s25 + $0x81] sm:$0xff]  ;;  %v631_v44 = vpack.c.bf16 %v282_v39, %v281_v38  ;;  %v235_v54 = vld [vmem:[%s5353_s25 + $0x90] sm:$0xff]  ;;  %v236_v55 = vld [vmem:[%s5353_s25 + $0x98] sm:$0xff] }
  0x2d   : > { %5083 = vmatpush.bf16.msra.mxu3 %v4933_v13  ;;  %1332 = vmatpush.bf16.msra.mxu1 %v4933_v13  ;;  %v613_v13 = vpack.c.bf16 %v278_v8, %v277_v7  ;;  %v4956_v52 = vld [vmem:[%s7044_s1 + $0x100] sm:$0xff]  ;;  %v251_v56 = vld [vmem:[%s5353_s25 + $0x150] sm:$0xff]  ;;  %v252_v57 = vld [vmem:[%s5353_s25 + $0x158] sm:$0xff] }
  0x2e   : > { %v4968_v53 = vld [vmem:[%s7044_s1 + $0x160] sm:$0xff]  ;;  %v283_v58 = vld [vmem:[%s5353_s25 + $0x151] sm:$0xff]  ;;  %v4965_v8 = vld [vmem:[%s7044_s1 + $0x148] sm:$0xff] }
  0x2f   : > { %v284_v59 = vld [vmem:[%s5353_s25 + $0x159] sm:$0xff]  ;;  %v4966_v5 = vld [vmem:[%s7044_s1 + $0x150] sm:$0xff] }
  0x30   : > { %1244 = vmatpush.bf16.msra.mxu0 %v4924_v14  ;;  %5076 = vmatpush.bf16.msra.mxu2 %v4924_v14  ;;  %v5455_v14 = vpack.c.bf16 %v262_v10, %v261_v9  ;;  %v640_v3 = vpack.c.bf16 %v284_v59, %v283_v58  ;;  %v4979_v6 = vld [vmem:[%s7044_s1 + $0x1b8] sm:$0xff]  ;;  %v237_v9 = vld [vmem:[%s5353_s25 + $0xa8] sm:$0xff]  ;;  %v4964_v10 = vld [vmem:[%s7044_s1 + $0x140] sm:$0xff] }
  0x31   : > { %5084 = vmatpush.bf16.msra.mxu3 %v4932_v15  ;;  %1333 = vmatpush.bf16.msra.mxu1 %v4932_v15  ;;  %v4942_v15 = vld [vmem:[%s7044_s1 + $0x90] sm:$0xff]  ;;  %v4987_v7 = vld [vmem:[%s7044_s1 + $0x1f8] sm:$0xff] }
  0x32   : > { %v4978_v38 = vld [vmem:[%s7044_s1 + $0x1b0] sm:$0xff] }
  0x33   : > { %1245 = vmatmul.bf16.vlgmr.msra.gmra.mxu0 %v513_v26  ;;  %1285 = vmatmul.bf16.vlgmr.msra.gmra.mxu2 %v585_v27  ;;  %v5476_v26 = vpack.c.bf16 %v232_v19, %v231_v18  ;;  %v621_v27 = vpack.c.bf16 %v248_v21, %v247_v20  ;;  %v286_v18 = vld [vmem:[%s5353_s25 + $0x171] sm:$0xff]  ;;  %v269_v19 = vld [vmem:[%s5353_s25 + $0xa9] sm:$0xff] }
  0x34   : > { %1415 = vmatpush.bf16.msrb.mxu2 %v4947_v22  ;;  %1374 = vmatmul.bf16.vlgmr.msra.gmra.mxu3 %v586_v28  ;;  %v279_v22 = vld [vmem:[%s5353_s25 + $0x121] sm:$0xff]  ;;  %v270_v20 = vld [vmem:[%s5353_s25 + $0xb1] sm:$0xff] }
  0x35   : > { %1504 = vmatpush.bf16.msrb.mxu3 %v4955_v23  ;;  %1593 = vmatpush.bf16.msrb.mxu0 %v4963_v29  ;;  %v280_v23 = vld [vmem:[%s5353_s25 + $0x129] sm:$0xff]  ;;  %v5478_v29 = vpack.c.bf16 %v264_v25, %v263_v24  ;;  %v5571_v24 = vpack.c.bf16 %v270_v20, %v269_v19 }
  0x36   : > { %1334 = vmatmul.bf16.vlgmr.msra.gmra.mxu1 %v514_v30  ;;  %v622_v28 = vpack.c.bf16 %v280_v23, %v279_v22  ;;  %v4941_v30 = vld [vmem:[%s7044_s1 + $0x88] sm:$0xff]  ;;  %v4986_v39 = vld [vmem:[%s7044_s1 + $0x1f0] sm:$0xff] }
  0x37   : > { %v287_v25 = vld [vmem:[%s5353_s25 + $0x2] sm:$0xff] }
  0x38   : > { %1416 = vmatpush.bf16.msrb.mxu2 %v4946_v31  ;;  %v4949_v31 = vld [vmem:[%s7044_s1 + $0xc8] sm:$0xff] }
  0x39   : > { %1505 = vmatpush.bf16.msrb.mxu3 %v4954_v32  ;;  %1594 = vmatpush.bf16.msrb.mxu0 %v4962_v33  ;;  %v4957_v32 = vld [vmem:[%s7044_s1 + $0x108] sm:$0xff]  ;;  %v4971_v33 = vld [vmem:[%s7044_s1 + $0x178] sm:$0xff] }
  0x3a   : > { %1682 = vmatpush.bf16.msrb.mxu1 %v4971_v33 }
  0x3c   : > { %1417 = vmatpush.bf16.msrb.mxu2 %v4945_v34  ;;  %v233_v34 = vld [vmem:[%s5353_s25 + $0x78] sm:$0xff] }
  0x3d   : > { %1506 = vmatpush.bf16.msrb.mxu3 %v4953_v35  ;;  %1595 = vmatpush.bf16.msrb.mxu0 %v4961_v36  ;;  %v234_v35 = vld [vmem:[%s5353_s25 + $0x80] sm:$0xff]  ;;  %v249_v36 = vld [vmem:[%s5353_s25 + $0x138] sm:$0xff] }
  0x3e   : > { %v5502_v42 = vpack.c.bf16 %v234_v35, %v233_v34  ;;  %v630_v43 = vpack.c.bf16 %v250_v37, %v249_v36 }
  0x40   : > { %1418 = vmatpush.bf16.msrb.mxu2 %v4944_v49  ;;  %v4940_v49 = vld [vmem:[%s7044_s1 + $0x80] sm:$0xff] }
  0x41   : > { %1507 = vmatpush.bf16.msrb.mxu3 %v4952_v50  ;;  %1596 = vmatpush.bf16.msrb.mxu0 %v4960_v51  ;;  %v4948_v50 = vld [vmem:[%s7044_s1 + $0xc0] sm:$0xff]  ;;  %v4969_v51 = vld [vmem:[%s7044_s1 + $0x168] sm:$0xff] }
  0x43   : > { %1250 = vmatmul.bf16.gmra.mxu0 %v5407_v45  ;;  %1290 = vmatmul.bf16.gmra.mxu2 %v594_v46  ;;  %v5504_v46 = vpack.c.bf16 %v266_v41, %v265_v40 }
  0x44   : > { %1379 = vmatmul.bf16.gmra.mxu3 %v595_v47  ;;  %1419 = vmatpush.bf16.msrb.mxu2 %v4943_v0  ;;  %v4970_v47 = vld [vmem:[%s7044_s1 + $0x170] sm:$0xff]  ;;  %v5534_v0 = vpack.c.bf16 %v236_v55, %v235_v54 }
  0x45   : > { %1508 = vmatpush.bf16.msrb.mxu3 %v4951_v1  ;;  %1597 = vmatpush.bf16.msrb.mxu0 %v4959_v2  ;;  %v639_v1 = vpack.c.bf16 %v252_v57, %v251_v56  ;;  %v4967_v2 = vld [vmem:[%s7044_s1 + $0x158] sm:$0xff] }
  0x46   : > { %1339 = vmatmul.bf16.gmra.mxu1 %v5409_v48 }
  0x47   : > { %1683 = vmatpush.bf16.msrb.mxu1 %v4970_v47 }
  0x48   : > { %1420 = vmatpush.bf16.msrb.mxu2 %v4942_v15  ;;  %v253_v15 = vld [vmem:[%s5353_s25 + $0x168] sm:$0xff] }
  0x49   : > { %1509 = vmatpush.bf16.msrb.mxu3 %v4950_v16  ;;  %1598 = vmatpush.bf16.msrb.mxu0 %v4958_v17  ;;  %v254_v16 = vld [vmem:[%s5353_s25 + $0x170] sm:$0xff] }
  0x4a   : > { %v285_v17 = vld [vmem:[%s5353_s25 + $0x169] sm:$0xff]  ;;  %v648_v22 = vpack.c.bf16 %v254_v16, %v253_v15 }
  0x4b   : > { %1684 = vmatpush.bf16.msrb.mxu1 %v4969_v51  ;;  %v649_v23 = vpack.c.bf16 %v286_v18, %v285_v17 }
  0x4c   : > { %1421 = vmatpush.bf16.msrb.mxu2 %v4941_v30  ;;  %v4216_v30 = vld [vmem:[%s5353_s25 + $0x22] sm:$0xff] }
  0x4d   : > { %1510 = vmatpush.bf16.msrb.mxu3 %v4949_v31  ;;  %1599 = vmatpush.bf16.msrb.mxu0 %v4957_v32  ;;  %v5582_v31 = vld [vmem:[%s7045_s2] ss:$0 sm:$0xff] }
  0x4f   : > { %1685 = vmatpush.bf16.msrb.mxu1 %v4968_v53  ;;  %v4218_v53 = vld [vmem:[%s5353_s25 + $0x3a] sm:$0xff] }
  0x50   : > { %1422 = vmatpush.bf16.msrb.mxu2 %v4940_v49 }
  0x51   : > { %1511 = vmatpush.bf16.msrb.mxu3 %v4948_v50  ;;  %1600 = vmatpush.bf16.msrb.mxu0 %v4956_v52  ;;  %v4994_v50 = vld [vmem:[%s7044_s1 + $0x230] sm:$0xff] }
  0x52   : > { %v4217_v52 = vld [vmem:[%s5353_s25 + $0x32] sm:$0xff] }
  0x53   : > { %1255 = vmatmul.bf16.gmra.mxu0 %v5430_v60  ;;  %1295 = vmatmul.bf16.gmra.mxu2 %v603_v61  ;;  %v267_v61 = vld [vmem:[%s5353_s25 + $0x91] sm:$0xff]  ;;  %v527_v59 = vpack.c.bf16 %v4218_v53, %v4217_v52 }
  0x54   : > { %1384 = vmatmul.bf16.gmra.mxu3 %v604_v62  ;;  %v268_v62 = vld [vmem:[%s5353_s25 + $0x99] sm:$0xff]  ;;  %1686 = vmatpush.bf16.msrb.mxu1 %v4967_v2 }
  0x55   : > { %v5539_v4 = vpack.c.bf16 %v268_v62, %v267_v61  ;;  %1771 = vmatpush.bf16.msra.mxu2 %v4979_v6  ;;  %1860 = vmatpush.bf16.msra.mxu3 %v4987_v7 }
  0x56   : > { %1344 = vmatmul.bf16.gmra.mxu1 %v5432_v63 }
  0x58   : > { %1687 = vmatpush.bf16.msrb.mxu1 %v4966_v5 }
  0x59   : > { %1772 = vmatpush.bf16.msra.mxu2 %v4978_v38  ;;  %1861 = vmatpush.bf16.msra.mxu3 %v4986_v39  ;;  %v4222_v38 = vld [vmem:[%s5353_s25 + $0x6a] sm:$0xff] }
  0x5c   : > { %1688 = vmatpush.bf16.msrb.mxu1 %v4965_v8 }
  0x60   : > { %1689 = vmatpush.bf16.msrb.mxu1 %v4964_v10 }
  0x63   : > { %1260 = vmatmul.bf16.gmra.mxu0 %v5453_v11  ;;  %1300 = vmatmul.bf16.gmra.mxu2 %v612_v12  ;;  %v4995_v12 = vld [vmem:[%s7044_s1 + $0x238] sm:$0xff] }
  0x64   : > { %1389 = vmatmul.bf16.gmra.mxu3 %v613_v13  ;;  %v238_v13 = vld [vmem:[%s5353_s25 + $0xb0] sm:$0xff]  ;;  %1949 = vmatpush.bf16.msra.mxu0 %v4995_v12 }
  0x65   : > { %v5569_v21 = vpack.c.bf16 %v238_v13, %v237_v9  ;;  %v4219_v12 = vld [vmem:[%s5353_s25 + $0x4a] sm:$0xff] }
  0x66   : > { %1349 = vmatmul.bf16.gmra.mxu1 %v5455_v14 }
  0x68   : > { %1950 = vmatpush.bf16.msra.mxu0 %v4994_v50 }
  0x73   : > { %1265 = vmatmul.bf16.gmra.mxu0 %v5476_v26  ;;  %1305 = vmatmul.bf16.gmra.mxu2 %v621_v27  ;;  %v288_v27 = vld [vmem:[%s5353_s25 + $0xa] sm:$0xff] }
  0x74   : > { %1394 = vmatmul.bf16.gmra.mxu3 %v622_v28  ;;  %v4215_v28 = vld [vmem:[%s5353_s25 + $0x1a] sm:$0xff]  ;;  %v515_v32 = vpack.c.bf16 %v288_v27, %v287_v25 }
  0x75   : > { %v518_v35 = vpack.c.bf16 %v4216_v30, %v4215_v28 }
  0x76   : > { %1354 = vmatmul.bf16.gmra.mxu1 %v5478_v29 }
  0x83   : > { %1270 = vmatmul.bf16.gmra.mxu0 %v5502_v42  ;;  %1310 = vmatmul.bf16.gmra.mxu2 %v630_v43 }
  0x84   : > { %1399 = vmatmul.bf16.gmra.mxu3 %v631_v44 }
  0x86   : > { %1359 = vmatmul.bf16.gmra.mxu1 %v5504_v46 }
  0x93   : > { %1275 = vmatmul.bf16.gmra.mxu0 %v5534_v0  ;;  %1315 = vmatmul.bf16.gmra.mxu2 %v639_v1 }
  0x94   : > { %1404 = vmatmul.bf16.gmra.mxu3 %v640_v3 }
  0x96   : > { %1364 = vmatmul.bf16.gmra.mxu1 %v5539_v4 }
  0xa3   : > { %1280 = vmatmul.bf16.gmra.mxu0 %v5569_v21  ;;  %1320 = vmatmul.bf16.gmra.mxu2 %v648_v22  ;;  %v4977_v22 = vld [vmem:[%s7044_s1 + $0x1a8] sm:$0xff] }
  0xa4   : > { %1409 = vmatmul.bf16.gmra.mxu3 %v649_v23  ;;  %v4985_v23 = vld [vmem:[%s7044_s1 + $0x1e8] sm:$0xff]  ;;  %1773 = vmatpush.bf16.msra.mxu2 %v4977_v22 }
  0xa5   : > { %1862 = vmatpush.bf16.msra.mxu3 %v4985_v23  ;;  %v4992_v23 = vld [vmem:[%s7044_s1 + $0x220] sm:$0xff] }
  0xa6   : > { %1369 = vmatmul.bf16.gmra.mxu1 %v5571_v24 }
  0xb0   : > { %v1246_v33 = vpop.f32.mrf.mxu0 }
  0xb1   : > { %v1247_v34 = vadd.f32 %v5582_v31, %v1246_v33 }
  0xb3   : > { %v1335_v36 = vpop.f32.mrf.mxu1  ;;  %1423 = vmatmul.bf16.vlgmr.msrb.gmra.mxu2 %v515_v32  ;;  %1601 = vmatmul.bf16.vlgmr.msrb.gmra.mxu0 %v5409_v48 }
  0xb4   : > { %v5586_v37 = vadd.f32 %v1335_v36, %v1247_v34  ;;  %1512 = vmatmul.bf16.vlgmr.msrb.gmra.mxu3 %v5407_v45  ;;  %v4993_v34 = vld [vmem:[%s7044_s1 + $0x228] sm:$0xff] }
  0xb5   : > { %1951 = vmatpush.bf16.msra.mxu0 %v4993_v34  ;;  %v4221_v36 = vld [vmem:[%s5353_s25 + $0x62] sm:$0xff] }
  0xb6   : > { %1690 = vmatmul.bf16.vlgmr.msrb.gmra.mxu1 %v518_v35  ;;  %v1286_v40 = vpop.f32.mrf.mxu2 }
  0xb7   : > { %v1287_v48 = vadd.f32 %v5582_v31, %v1286_v40  ;;  %v1375_v41 = vpop.f32.mrf.mxu3 }
  0xb8   : > { %v1248_v43 = vpop.f32.mrf.mxu0 }
  0xb9   : > { %v5596_v44 = vadd.f32 %v1375_v41, %v1287_v48  ;;  %v1249_v45 = vadd.f32 %v5582_v31, %v1248_v43  ;;  %1952 = vmatpush.bf16.msra.mxu0 %v4992_v23  ;;  %v4166_v23 = vld [vmem:[%s5353_s25 + $0xc8] sm:$0xff] }
  0xbb   : > { %v1337_v47 = vpop.f32.mrf.mxu1 }
  0xbc   : > { %v5599_v49 = vadd.f32 %v1337_v47, %v1249_v45  ;;  %v545_v45 = vpack.c.bf16 %v4222_v38, %v4221_v36 }
  0xbe   : > { %v1288_v51 = vpop.f32.mrf.mxu2 }
  0xbf   : > { %v1289_v54 = vadd.f32 %v5582_v31, %v1288_v51  ;;  %v1377_v55 = vpop.f32.mrf.mxu3 }
  0xc0   : > { %v1251_v56 = vpop.f32.mrf.mxu0 }
  0xc1   : > { %v5607_v57 = vadd.f32 %v1377_v55, %v1289_v54  ;;  %v1252_v58 = vadd.f32 %v5582_v31, %v1251_v56 }
  0xc3   : > { %v1340_v61 = vpop.f32.mrf.mxu1  ;;  %1428 = vmatmul.bf16.gmra.mxu2 %v518_v35  ;;  %1606 = vmatmul.bf16.gmra.mxu0 %v5432_v63  ;;  %v4220_v63 = vld [vmem:[%s5353_s25 + $0x52] sm:$0xff] }
  0xc4   : > { %v5611_v62 = vadd.f32 %v1340_v61, %v1252_v58  ;;  %1517 = vmatmul.bf16.gmra.mxu3 %v5430_v60  ;;  %v536_v18 = vpack.c.bf16 %v4220_v63, %v4219_v12  ;;  %v4976_v63 = vld [vmem:[%s7044_s1 + $0x1a0] sm:$0xff] }
  0xc5   : > { %1774 = vmatpush.bf16.msra.mxu2 %v4976_v63 }
  0xc6   : > { %1695 = vmatmul.bf16.gmra.mxu1 %v527_v59  ;;  %v1291_v1 = vpop.f32.mrf.mxu2 }
  0xc7   : > { %v1292_v2 = vadd.f32 %v5582_v31, %v1291_v1  ;;  %v1380_v3 = vpop.f32.mrf.mxu3  ;;  %v4223_v1 = vld [vmem:[%s5353_s25 + $0x7a] sm:$0xff] }
  0xc8   : > { %v1253_v5 = vpop.f32.mrf.mxu0 }
  0xc9   : > { %v5615_v6 = vadd.f32 %v1380_v3, %v1292_v2  ;;  %v1254_v7 = vadd.f32 %v5582_v31, %v1253_v5 }
  0xcb   : > { %v1342_v8 = vpop.f32.mrf.mxu1 }
  0xcc   : > { %v5618_v9 = vadd.f32 %v1342_v8, %v1254_v7 }
  0xce   : > { %v1293_v10 = vpop.f32.mrf.mxu2 }
  0xcf   : > { %v1294_v13 = vadd.f32 %v5582_v31, %v1293_v10  ;;  %v1382_v15 = vpop.f32.mrf.mxu3 }
  0xd0   : > { %v1256_v60 = vpop.f32.mrf.mxu0 }
  0xd1   : > { %v5623_v16 = vadd.f32 %v1382_v15, %v1294_v13  ;;  %v1257_v17 = vadd.f32 %v5582_v31, %v1256_v60  ;;  %v4984_v13 = vld [vmem:[%s7044_s1 + $0x1e0] sm:$0xff] }
  0xd2   : > { %1863 = vmatpush.bf16.msra.mxu3 %v4984_v13 }
  0xd3   : > { %v1345_v19 = vpop.f32.mrf.mxu1  ;;  %1433 = vmatmul.bf16.gmra.mxu2 %v527_v59  ;;  %1611 = vmatmul.bf16.gmra.mxu0 %v5455_v14 }
  0xd4   : > { %v5627_v20 = vadd.f32 %v1345_v19, %v1257_v17  ;;  %1522 = vmatmul.bf16.gmra.mxu3 %v5453_v11 }
  0xd6   : > { %1700 = vmatmul.bf16.gmra.mxu1 %v536_v18  ;;  %v1296_v25 = vpop.f32.mrf.mxu2 }
  0xd7   : > { %v1297_v14 = vadd.f32 %v5582_v31, %v1296_v25  ;;  %v1385_v27 = vpop.f32.mrf.mxu3 }
  0xd8   : > { %v1258_v28 = vpop.f32.mrf.mxu0 }
  0xd9   : > { %v5637_v30 = vadd.f32 %v1385_v27, %v1297_v14  ;;  %v1259_v11 = vadd.f32 %v5582_v31, %v1258_v28  ;;  %v4225_v14 = vld [vmem:[%s5353_s25 + $0x92] sm:$0xff]  ;;  %v4226_v27 = vld [vmem:[%s5353_s25 + $0x9a] sm:$0xff] }
  0xda   : > { %v563_v36 = vpack.c.bf16 %v4226_v27, %v4225_v14  ;;  %v4229_v27 = vld [vmem:[%s5353_s25 + $0xc2] sm:$0xff] }
  0xdb   : > { %v1347_v32 = vpop.f32.mrf.mxu1 }
  0xdc   : > { %v5640_v33 = vadd.f32 %v1347_v32, %v1259_v11 }
  0xde   : > { %v1298_v35 = vpop.f32.mrf.mxu2 }
  0xdf   : > { %v1299_v39 = vadd.f32 %v5582_v31, %v1298_v35  ;;  %v1387_v40 = vpop.f32.mrf.mxu3 }
  0xe0   : > { %v1261_v48 = vpop.f32.mrf.mxu0 }
  0xe1   : > { %v5648_v41 = vadd.f32 %v1387_v40, %v1299_v39  ;;  %v1262_v43 = vadd.f32 %v5582_v31, %v1261_v48 }
  0xe3   : > { %v1350_v47 = vpop.f32.mrf.mxu1  ;;  %1438 = vmatmul.bf16.gmra.mxu2 %v536_v18  ;;  %1616 = vmatmul.bf16.gmra.mxu0 %v5478_v29  ;;  %v4224_v29 = vld [vmem:[%s5353_s25 + $0x82] sm:$0xff] }
  0xe4   : > { %v5652_v50 = vadd.f32 %v1350_v47, %v1262_v43  ;;  %1527 = vmatmul.bf16.gmra.mxu3 %v5476_v26  ;;  %v554_v8 = vpack.c.bf16 %v4224_v29, %v4223_v1 }
  0xe6   : > { %1705 = vmatmul.bf16.gmra.mxu1 %v545_v45  ;;  %v1301_v51 = vpop.f32.mrf.mxu2 }
  0xe7   : > { %v1302_v52 = vadd.f32 %v5582_v31, %v1301_v51  ;;  %v1390_v53 = vpop.f32.mrf.mxu3 }
  0xe8   : > { %v1263_v54 = vpop.f32.mrf.mxu0 }
  0xe9   : > { %v5656_v55 = vadd.f32 %v1390_v53, %v1302_v52  ;;  %v1264_v56 = vadd.f32 %v5582_v31, %v1263_v54 }
  0xeb   : > { %v1352_v58 = vpop.f32.mrf.mxu1 }
  0xec   : > { %v5659_v59 = vadd.f32 %v1352_v58, %v1264_v56  ;;  %v4227_v56 = vld [vmem:[%s5353_s25 + $0xaa] sm:$0xff] }
  0xee   : > { %v1303_v61 = vpop.f32.mrf.mxu2 }
  0xef   : > { %v1304_v2 = vadd.f32 %v5582_v31, %v1303_v61  ;;  %v1392_v3 = vpop.f32.mrf.mxu3 }
  0xf0   : > { %v1266_v26 = vpop.f32.mrf.mxu0 }
  0xf1   : > { %v5664_v5 = vadd.f32 %v1392_v3, %v1304_v2  ;;  %v1267_v7 = vadd.f32 %v5582_v31, %v1266_v26 }
  0xf3   : > { %v1355_v10 = vpop.f32.mrf.mxu1  ;;  %1443 = vmatmul.bf16.gmra.mxu2 %v545_v45  ;;  %1621 = vmatmul.bf16.gmra.mxu0 %v5504_v46 }
  0xf4   : > { %v5668_v12 = vadd.f32 %v1355_v10, %v1267_v7  ;;  %1532 = vmatmul.bf16.gmra.mxu3 %v5502_v42  ;;  %v4975_v7 = vld [vmem:[%s7044_s1 + $0x198] sm:$0xff] }
  0xf5   : > { %1775 = vmatpush.bf16.msra.mxu2 %v4975_v7  ;;  %v4200_v7 = vld [vmem:[%s5353_s25 + $0xe1] sm:$0xff] }
  0xf6   : > { %1710 = vmatmul.bf16.gmra.mxu1 %v554_v8  ;;  %v1306_v15 = vpop.f32.mrf.mxu2 }
  0xf7   : > { %v1307_v46 = vadd.f32 %v5582_v31, %v1306_v15  ;;  %v1395_v60 = vpop.f32.mrf.mxu3 }
  0xf8   : > { %v1268_v17 = vpop.f32.mrf.mxu0 }
  0xf9   : > { %v5678_v18 = vadd.f32 %v1395_v60, %v1307_v46  ;;  %v1269_v42 = vadd.f32 %v5582_v31, %v1268_v17  ;;  %v4197_v17 = vld [vmem:[%s5353_s25 + $0xc1] sm:$0xff] }
  0xfb   : > { %v1357_v19 = vpop.f32.mrf.mxu1 }
  0xfc   : > { %v5681_v22 = vadd.f32 %v1357_v19, %v1269_v42  ;;  %v4198_v42 = vld [vmem:[%s5353_s25 + $0xc9] sm:$0xff]  ;;  %v4165_v19 = vld [vmem:[%s5353_s25 + $0xc0] sm:$0xff] }
  0xfe   : > { %v1308_v25 = vpop.f32.mrf.mxu2 }
  0xff   : > { %v1309_v28 = vadd.f32 %v5582_v31, %v1308_v25  ;;  %v1397_v11 = vpop.f32.mrf.mxu3  ;;  %v4991_v25 = vld [vmem:[%s7044_s1 + $0x218] sm:$0xff] }
 0x100   : > { %v1271_v32 = vpop.f32.mrf.mxu0  ;;  %1953 = vmatpush.bf16.msra.mxu0 %v4991_v25 }
 0x101   : > { %v5689_v34 = vadd.f32 %v1397_v11, %v1309_v28  ;;  %v1272_v35 = vadd.f32 %v5582_v31, %v1271_v32  ;;  %v4230_v28 = vld [vmem:[%s5353_s25 + $0xca] sm:$0xff] }
 0x103   : > { %v1360_v38 = vpop.f32.mrf.mxu1  ;;  %1448 = vmatmul.bf16.gmra.mxu2 %v554_v8  ;;  %1626 = vmatmul.bf16.gmra.mxu0 %v5539_v4  ;;  %v4228_v4 = vld [vmem:[%s5353_s25 + $0xb2] sm:$0xff] }
 0x104   : > { %v5693_v39 = vadd.f32 %v1360_v38, %v1272_v35  ;;  %1537 = vmatmul.bf16.gmra.mxu3 %v5534_v0  ;;  %v572_v2 = vpack.c.bf16 %v4228_v4, %v4227_v56  ;;  %v4983_v8 = vld [vmem:[%s7044_s1 + $0x1d8] sm:$0xff]  ;;  %v580_v35 = vpack.c.bf16 %v4198_v42, %v4197_v17  ;;  %v579_v38 = vpack.c.bf16 %v4166_v23, %v4165_v19 }
 0x105   : > { %1864 = vmatpush.bf16.msra.mxu3 %v4983_v8  ;;  %v4167_v8 = vld [vmem:[%s5353_s25 + $0xd8] sm:$0xff] }
 0x106   : > { %1715 = vmatmul.bf16.gmra.mxu1 %v563_v36  ;;  %v1311_v40 = vpop.f32.mrf.mxu2 }
 0x107   : > { %v1312_v48 = vadd.f32 %v5582_v31, %v1311_v40  ;;  %v1400_v43 = vpop.f32.mrf.mxu3 }
 0x108   : > { %v1273_v45 = vpop.f32.mrf.mxu0 }
 0x109   : > { %v5697_v47 = vadd.f32 %v1400_v43, %v1312_v48  ;;  %v1274_v51 = vadd.f32 %v5582_v31, %v1273_v45  ;;  %v5737_v43 = vpack.c.bf16 %v4230_v28, %v4229_v27  ;;  %v5003_v45 = vld [vmem:[%s7046_s3 + $0x38] sm:$0xff]  ;;  %v4982_v27 = vld [vmem:[%s7044_s1 + $0x1d0] sm:$0xff] }
 0x10a   : > { %3170 = vmatpush.bf16.msra.mxu1 %v5003_v45  ;;  %1865 = vmatpush.bf16.msra.mxu3 %v4982_v27  ;;  %v4201_v45 = vld [vmem:[%s5353_s25 + $0xf1] sm:$0xff] }
 0x10b   : > { %v1362_v52 = vpop.f32.mrf.mxu1 }
 0x10c   : > { %v5700_v53 = vadd.f32 %v1362_v52, %v1274_v51 }
 0x10e   : > { %v1313_v54 = vpop.f32.mrf.mxu2 }
 0x10f   : > { %v1314_v58 = vadd.f32 %v5582_v31, %v1313_v54  ;;  %v1402_v61 = vpop.f32.mrf.mxu3 }
 0x110   : > { %v1276_v0 = vpop.f32.mrf.mxu0 }
 0x111   : > { %v5705_v1 = vadd.f32 %v1402_v61, %v1314_v58  ;;  %v1277_v29 = vadd.f32 %v5582_v31, %v1276_v0 }
 0x113   : > { %v1365_v3 = vpop.f32.mrf.mxu1  ;;  %1453 = vmatmul.bf16.gmra.mxu2 %v563_v36  ;;  %1631 = vmatmul.bf16.gmra.mxu0 %v5571_v24 }
 0x114   : > { %v5709_v26 = vadd.f32 %v1365_v3, %v1277_v29  ;;  %1542 = vmatmul.bf16.gmra.mxu3 %v5569_v21  ;;  %v4199_v3 = vld [vmem:[%s5353_s25 + $0xd9] sm:$0xff] }
 0x115   : > { %v589_v17 = vpack.c.bf16 %v4200_v7, %v4199_v3  ;;  %v4234_v3 = vld [vmem:[%s5353_s25 + $0xfa] sm:$0xff] }
 0x116   : > { %1720 = vmatmul.bf16.gmra.mxu1 %v572_v2  ;;  %v1316_v10 = vpop.f32.mrf.mxu2 }
 0x117   : > { %v1317_v24 = vadd.f32 %v5582_v31, %v1316_v10  ;;  %v1405_v63 = vpop.f32.mrf.mxu3  ;;  %v4168_v10 = vld [vmem:[%s5353_s25 + $0xe0] sm:$0xff] }
 0x118   : > { %v1278_v21 = vpop.f32.mrf.mxu0  ;;  %v588_v19 = vpack.c.bf16 %v4168_v10, %v4167_v8 }
 0x119   : > { %v5719_v13 = vadd.f32 %v1405_v63, %v1317_v24  ;;  %v1279_v15 = vadd.f32 %v5582_v31, %v1278_v21  ;;  %v4231_v63 = vld [vmem:[%s5353_s25 + $0xda] sm:$0xff]  ;;  %v4232_v21 = vld [vmem:[%s5353_s25 + $0xe2] sm:$0xff] }
 0x11a   : > { %v5760_v25 = vpack.c.bf16 %v4232_v21, %v4231_v63 }
 0x11b   : > { %v1367_v46 = vpop.f32.mrf.mxu1 }
 0x11c   : > { %v5722_v60 = vadd.f32 %v1367_v46, %v1279_v15 }
 0x11e   : > { %v1318_v14 = vpop.f32.mrf.mxu2 }
 0x11f   : > { %v1319_v11 = vadd.f32 %v5582_v31, %v1318_v14  ;;  %v1407_v32 = vpop.f32.mrf.mxu3 }
 0x120   : > { %v1281_v36 = vpop.f32.mrf.mxu0 }
 0x121   : > { %v5734_v40 = vadd.f32 %v1407_v32, %v1319_v11  ;;  %v1282_v48 = vadd.f32 %v5582_v31, %v1281_v36 }
 0x123   : > { %v1370_v51 = vpop.f32.mrf.mxu1  ;;  %1458 = vmatmul.bf16.gmra.mxu2 %v572_v2  ;;  %1636 = vmatmul.bf16.gmra.mxu0 %v580_v35 }
 0x124   : > { %v5742_v52 = vadd.f32 %v1370_v51, %v1282_v48  ;;  %1547 = vmatmul.bf16.gmra.mxu3 %v579_v38  ;;  %v4202_v51 = vld [vmem:[%s5353_s25 + $0xf9] sm:$0xff] }
 0x125   : > { %v5783_v8 = vpack.c.bf16 %v4202_v51, %v4201_v45  ;;  %v4172_v45 = vld [vmem:[%s5353_s25 + $0x110] sm:$0xff] }
 0x126   : > { %1725 = vmatmul.bf16.gmra.mxu1 %v5737_v43  ;;  %v1321_v54 = vpop.f32.mrf.mxu2 }
 0x127   : > { %v1322_v56 = vadd.f32 %v5582_v31, %v1321_v54  ;;  %v1410_v4 = vpop.f32.mrf.mxu3 }
 0x128   : > { %v1283_v58 = vpop.f32.mrf.mxu0 }
 0x129   : > { %v5746_v61 = vadd.f32 %v1410_v4, %v1322_v56  ;;  %v1284_v0 = vadd.f32 %v5582_v31, %v1283_v58  ;;  %v4169_v56 = vld [vmem:[%s5353_s25 + $0xf0] sm:$0xff]  ;;  %v4170_v4 = vld [vmem:[%s5353_s25 + $0xf8] sm:$0xff] }
 0x12a   : > { %v4990_v58 = vld [vmem:[%s7044_s1 + $0x210] sm:$0xff] }
 0x12b   : > { %v1372_v29 = vpop.f32.mrf.mxu1  ;;  %1954 = vmatpush.bf16.msra.mxu0 %v4990_v58 }
 0x12c   : > { %v5749_v2 = vadd.f32 %v1372_v29, %v1284_v0  ;;  %v4233_v29 = vld [vmem:[%s5353_s25 + $0xf2] sm:$0xff] }
 0x12d   : > { %v5787_v21 = vpack.c.bf16 %v4234_v3, %v4233_v29 }
 0x12e   : > { %v1323_v24 = vpop.f32.mrf.mxu2 }
 0x12f   : > { %v1324_v15 = vadd.f32 %v5582_v31, %v1323_v24  ;;  %v1412_v46 = vpop.f32.mrf.mxu3  ;;  %v4974_v31 = vld [vmem:[%s7044_s1 + $0x190] sm:$0xff]  ;;  %v5785_v24 = vpack.c.bf16 %v4170_v4, %v4169_v56 }
 0x130   : > { %v1602_v42 = vpop.f32.mrf.mxu0  ;;  %1776 = vmatpush.bf16.msra.mxu2 %v4974_v31  ;;  %v4236_v56 = vld [vmem:[%s5353_s25 + $0x112] sm:$0xff] }
 0x131   : > { %v5758_v23 = vadd.f32 %v1412_v46, %v1324_v15  ;;  %v5002_v15 = vld [vmem:[%s7046_s3 + $0x30] sm:$0xff] }
 0x132   : > { %3171 = vmatpush.bf16.msra.mxu1 %v5002_v15  ;;  %v4981_v15 = vld [vmem:[%s7044_s1 + $0x1c8] sm:$0xff] }
 0x133   : > { %v1691_v14 = vpop.f32.mrf.mxu1  ;;  %1463 = vmatmul.bf16.gmra.mxu2 %v5737_v43  ;;  %1641 = vmatmul.bf16.gmra.mxu0 %v589_v17 }
 0x134   : > { %1552 = vmatmul.bf16.gmra.mxu3 %v588_v19 }
 0x135   : > { %1866 = vmatpush.bf16.msra.mxu3 %v4981_v15 }
 0x136   : > { %1730 = vmatmul.bf16.gmra.mxu1 %v5760_v25  ;;  %v1424_v28 = vpop.f32.mrf.mxu2 }
 0x137   : > { %v1425_v11 = vadd.f32 %v1424_v28, %v5586_v37  ;;  %v1513_v32 = vpop.f32.mrf.mxu3 }
 0x138   : > { %v1604_v35 = vpop.f32.mrf.mxu0 }
 0x139   : > { %v1514_v36 = vadd.f32 %v1513_v32, %v1425_v11  ;;  %v4203_v32 = vld [vmem:[%s5353_s25 + $0x109] sm:$0xff] }
 0x13b   : > { %v1693_v38 = vpop.f32.mrf.mxu1  ;;  %v1603_v48 = vadd.f32 %v1602_v42, %v1514_v36 }
 0x13d   : > { %v5773_v54 = vadd.f32 %v1691_v14, %v1603_v48  ;;  %v4171_v48 = vld [vmem:[%s5353_s25 + $0x108] sm:$0xff] }
 0x13e   : > { %v1426_v0 = vpop.f32.mrf.mxu2 }
 0x13f   : > { %v1427_v37 = vadd.f32 %v1426_v0, %v5599_v49  ;;  %v1515_v7 = vpop.f32.mrf.mxu3 }
 0x140   : > { %v1607_v10 = vpop.f32.mrf.mxu0 }
 0x141   : > { %v1516_v63 = vadd.f32 %v1515_v7, %v1427_v37 }
 0x143   : > { %v1696_v46 = vpop.f32.mrf.mxu1  ;;  %1468 = vmatmul.bf16.gmra.mxu2 %v5760_v25  ;;  %1646 = vmatmul.bf16.gmra.mxu0 %v5783_v8  ;;  %v1605_v49 = vadd.f32 %v1604_v35, %v1516_v63  ;;  %v4204_v35 = vld [vmem:[%s5353_s25 + $0x111] sm:$0xff]  ;;  %v4973_v63 = vld [vmem:[%s7044_s1 + $0x188] sm:$0xff] }
 0x144   : > { %1557 = vmatmul.bf16.gmra.mxu3 %v5785_v24  ;;  %v607_v0 = vpack.c.bf16 %v4204_v35, %v4203_v32  ;;  %1777 = vmatpush.bf16.msra.mxu2 %v4973_v63  ;;  %v4173_v35 = vld [vmem:[%s5353_s25 + $0x120] sm:$0xff] }
 0x145   : > { %v5795_v17 = vadd.f32 %v1693_v38, %v1605_v49  ;;  %v4235_v38 = vld [vmem:[%s5353_s25 + $0x10a] sm:$0xff] }
 0x146   : > { %1735 = vmatmul.bf16.gmra.mxu1 %v5787_v21  ;;  %v1429_v42 = vpop.f32.mrf.mxu2  ;;  %v608_v37 = vpack.c.bf16 %v4236_v56, %v4235_v38  ;;  %v4237_v38 = vld [vmem:[%s5353_s25 + $0x122] sm:$0xff]  ;;  %v4238_v56 = vld [vmem:[%s5353_s25 + $0x12a] sm:$0xff] }
 0x147   : > { %v1430_v19 = vadd.f32 %v1429_v42, %v5611_v62  ;;  %v1518_v14 = vpop.f32.mrf.mxu3  ;;  %v606_v62 = vpack.c.bf16 %v4172_v45, %v4171_v48  ;;  %v4174_v48 = vld [vmem:[%s5353_s25 + $0x128] sm:$0xff] }
 0x148   : > { %v1609_v31 = vpop.f32.mrf.mxu0  ;;  %v4989_v45 = vld [vmem:[%s7044_s1 + $0x208] sm:$0xff] }
 0x149   : > { %v1519_v27 = vadd.f32 %v1518_v14, %v1430_v19  ;;  %1955 = vmatpush.bf16.msra.mxu0 %v4989_v45 }
 0x14b   : > { %v1698_v28 = vpop.f32.mrf.mxu1  ;;  %v1608_v11 = vadd.f32 %v1607_v10, %v1519_v27 }
 0x14d   : > { %v5801_v36 = vadd.f32 %v1696_v46, %v1608_v11  ;;  %v4206_v11 = vld [vmem:[%s5353_s25 + $0x129] sm:$0xff] }
 0x14e   : > { %v1431_v51 = vpop.f32.mrf.mxu2 }
 0x14f   : > { %v1432_v4 = vadd.f32 %v1431_v51, %v5618_v9  ;;  %v1520_v58 = vpop.f32.mrf.mxu3 }
 0x150   : > { %v1612_v29 = vpop.f32.mrf.mxu0 }
 0x151   : > { %v1521_v3 = vadd.f32 %v1520_v58, %v1432_v4 }
 0x153   : > { %v1701_v7 = vpop.f32.mrf.mxu1  ;;  %1473 = vmatmul.bf16.gmra.mxu2 %v5787_v21  ;;  %1651 = vmatmul.bf16.gmra.mxu0 %v607_v0  ;;  %v1610_v10 = vadd.f32 %v1609_v31, %v1521_v3  ;;  %v617_v3 = vpack.c.bf16 %v4238_v56, %v4237_v38 }
 0x154   : > { %1562 = vmatmul.bf16.gmra.mxu3 %v606_v62 }
 0x155   : > { %v5812_v9 = vadd.f32 %v1698_v28, %v1610_v10  ;;  %v4205_v28 = vld [vmem:[%s5353_s25 + $0x121] sm:$0xff] }
 0x156   : > { %1740 = vmatmul.bf16.gmra.mxu1 %v608_v37  ;;  %v1434_v46 = vpop.f32.mrf.mxu2  ;;  %v616_v58 = vpack.c.bf16 %v4206_v11, %v4205_v28  ;;  %v4208_v11 = vld [vmem:[%s5353_s25 + $0x141] sm:$0xff] }
 0x157   : > { %v1435_v49 = vadd.f32 %v1434_v46, %v5627_v20  ;;  %v1523_v42 = vpop.f32.mrf.mxu3 }
 0x158   : > { %v1614_v19 = vpop.f32.mrf.mxu0 }
 0x159   : > { %v1524_v14 = vadd.f32 %v1523_v42, %v1435_v49 }
 0x15b   : > { %v1703_v31 = vpop.f32.mrf.mxu1  ;;  %v1613_v27 = vadd.f32 %v1612_v29, %v1524_v14  ;;  %v615_v29 = vpack.c.bf16 %v4174_v48, %v4173_v35  ;;  %v4176_v48 = vld [vmem:[%s5353_s25 + $0x140] sm:$0xff] }
 0x15d   : > { %v5820_v32 = vadd.f32 %v1701_v7, %v1613_v27  ;;  %v5001_v7 = vld [vmem:[%s7046_s3 + $0x28] sm:$0xff] }
 0x15e   : > { %v1436_v51 = vpop.f32.mrf.mxu2  ;;  %3172 = vmatpush.bf16.msra.mxu1 %v5001_v7  ;;  %v4972_v7 = vld [vmem:[%s7044_s1 + $0x180] sm:$0xff] }
 0x15f   : > { %v1437_v20 = vadd.f32 %v1436_v51, %v5640_v33  ;;  %v1525_v4 = vpop.f32.mrf.mxu3  ;;  %v4239_v51 = vld [vmem:[%s5353_s25 + $0x13a] sm:$0xff]  ;;  %1778 = vmatpush.bf16.msra.mxu2 %v4972_v7 }
 0x160   : > { %v1617_v0 = vpop.f32.mrf.mxu0 }
 0x161   : > { %v1526_v62 = vadd.f32 %v1525_v4, %v1437_v20 }
 0x163   : > { %v1706_v10 = vpop.f32.mrf.mxu1  ;;  %1478 = vmatmul.bf16.gmra.mxu2 %v608_v37  ;;  %1656 = vmatmul.bf16.gmra.mxu0 %v616_v58  ;;  %v1615_v63 = vadd.f32 %v1614_v19, %v1526_v62  ;;  %v4207_v37 = vld [vmem:[%s5353_s25 + $0x139] sm:$0xff] }
 0x164   : > { %1567 = vmatmul.bf16.gmra.mxu3 %v615_v29  ;;  %v4175_v19 = vld [vmem:[%s5353_s25 + $0x138] sm:$0xff]  ;;  %v625_v20 = vpack.c.bf16 %v4208_v11, %v4207_v37  ;;  %v4177_v11 = vld [vmem:[%s5353_s25 + $0x150] sm:$0xff] }
 0x165   : > { %v5833_v33 = vadd.f32 %v1703_v31, %v1615_v63  ;;  %v4240_v31 = vld [vmem:[%s5353_s25 + $0x142] sm:$0xff] }
 0x166   : > { %1745 = vmatmul.bf16.gmra.mxu1 %v617_v3  ;;  %v1439_v15 = vpop.f32.mrf.mxu2  ;;  %v626_v29 = vpack.c.bf16 %v4240_v31, %v4239_v51  ;;  %v4241_v51 = vld [vmem:[%s5353_s25 + $0x152] sm:$0xff] }
 0x167   : > { %v1440_v46 = vadd.f32 %v1439_v15, %v5652_v50  ;;  %v1528_v49 = vpop.f32.mrf.mxu3  ;;  %v624_v50 = vpack.c.bf16 %v4176_v48, %v4175_v19  ;;  %v4178_v19 = vld [vmem:[%s5353_s25 + $0x158] sm:$0xff]  ;;  %v4988_v48 = vld [vmem:[%s7044_s1 + $0x200] sm:$0xff] }
 0x168   : > { %v1619_v42 = vpop.f32.mrf.mxu0  ;;  %1956 = vmatpush.bf16.msra.mxu0 %v4988_v48  ;;  %v4243_v48 = vld [vmem:[%s5353_s25 + $0x16a] sm:$0xff] }
 0x169   : > { %v1529_v14 = vadd.f32 %v1528_v49, %v1440_v46 }
 0x16b   : > { %v1708_v27 = vpop.f32.mrf.mxu1  ;;  %v1618_v28 = vadd.f32 %v1617_v0, %v1529_v14 }
 0x16d   : > { %v5838_v35 = vadd.f32 %v1706_v10, %v1618_v28  ;;  %v4210_v28 = vld [vmem:[%s5353_s25 + $0x159] sm:$0xff] }
 0x16e   : > { %v1441_v45 = vpop.f32.mrf.mxu2 }
 0x16f   : > { %v1442_v38 = vadd.f32 %v1441_v45, %v5659_v59  ;;  %v1530_v56 = vpop.f32.mrf.mxu3  ;;  %v4980_v59 = vld [vmem:[%s7044_s1 + $0x1c0] sm:$0xff] }
 0x170   : > { %v1622_v4 = vpop.f32.mrf.mxu0  ;;  %1867 = vmatpush.bf16.msra.mxu3 %v4980_v59 }
 0x171   : > { %v1531_v58 = vadd.f32 %v1530_v56, %v1442_v38 }
 0x173   : > { %v1711_v62 = vpop.f32.mrf.mxu1  ;;  %1483 = vmatmul.bf16.gmra.mxu2 %v617_v3  ;;  %1661 = vmatmul.bf16.gmra.mxu0 %v625_v20  ;;  %v1620_v0 = vadd.f32 %v1619_v42, %v1531_v58 }
 0x174   : > { %1572 = vmatmul.bf16.gmra.mxu3 %v624_v50 }
 0x175   : > { %v5848_v10 = vadd.f32 %v1708_v27, %v1620_v0  ;;  %v4209_v27 = vld [vmem:[%s5353_s25 + $0x151] sm:$0xff] }
 0x176   : > { %1750 = vmatmul.bf16.gmra.mxu1 %v626_v29  ;;  %v1444_v63 = vpop.f32.mrf.mxu2  ;;  %v634_v56 = vpack.c.bf16 %v4210_v28, %v4209_v27  ;;  %v4212_v27 = vld [vmem:[%s5353_s25 + $0x171] sm:$0xff] }
 0x177   : > { %v1445_v3 = vadd.f32 %v1444_v63, %v5668_v12  ;;  %v1533_v15 = vpop.f32.mrf.mxu3  ;;  %v4242_v12 = vld [vmem:[%s5353_s25 + $0x15a] sm:$0xff] }
 0x178   : > { %v1624_v46 = vpop.f32.mrf.mxu0  ;;  %v635_v58 = vpack.c.bf16 %v4242_v12, %v4241_v51 }
 0x179   : > { %v1534_v49 = vadd.f32 %v1533_v15, %v1445_v3 }
 0x17b   : > { %v5854_v42 = vpop.f32.mrf.mxu1  ;;  %v1623_v14 = vadd.f32 %v1622_v4, %v1534_v49  ;;  %v633_v4 = vpack.c.bf16 %v4178_v19, %v4177_v11  ;;  %v4180_v11 = vld [vmem:[%s5353_s25 + $0x170] sm:$0xff] }
 0x17d   : > { %v5858_v37 = vadd.f32 %v1711_v62, %v1623_v14  ;;  %v5000_v62 = vld [vmem:[%s7046_s3 + $0x20] sm:$0xff] }
 0x17e   : > { %v1446_v45 = vpop.f32.mrf.mxu2  ;;  %3173 = vmatpush.bf16.msra.mxu1 %v5000_v62 }
 0x17f   : > { %v1447_v31 = vadd.f32 %v1446_v45, %v5681_v22  ;;  %v1535_v38 = vpop.f32.mrf.mxu3  ;;  %v4244_v45 = vld [vmem:[%s5353_s25 + $0x172] sm:$0xff] }
 0x180   : > { %v1627_v20 = vpop.f32.mrf.mxu0 }
 0x181   : > { %v1536_v50 = vadd.f32 %v1535_v38, %v1447_v31 }
 0x183   : > { %v1716_v0 = vpop.f32.mrf.mxu1  ;;  %1488 = vmatmul.bf16.gmra.mxu2 %v626_v29  ;;  %1666 = vmatmul.bf16.gmra.mxu0 %v634_v56  ;;  %v5871_v7 = vadd.f32 %v1624_v46, %v1536_v50  ;;  %v4211_v29 = vld [vmem:[%s5353_s25 + $0x169] sm:$0xff] }
 0x184   : > { %1577 = vmatmul.bf16.gmra.mxu3 %v633_v4  ;;  %v4179_v46 = vld [vmem:[%s5353_s25 + $0x168] sm:$0xff]  ;;  %v643_v31 = vpack.c.bf16 %v4212_v27, %v4211_v29  ;;  %v644_v4 = vpack.c.bf16 %v4244_v45, %v4243_v48  ;;  %v4181_v27 = vld [vmem:[%s5353_s25 + $0x180] sm:$0xff] }
 0x185   : > { %v642_v38 = vpack.c.bf16 %v4180_v11, %v4179_v46  ;;  %v4214_v29 = vld [vmem:[%s5353_s25 + $0x189] sm:$0xff] }
 0x186   : > { %1755 = vmatmul.bf16.gmra.mxu1 %v635_v58  ;;  %v1449_v22 = vpop.f32.mrf.mxu2  ;;  %v4245_v11 = vld [vmem:[%s5353_s25 + $0x182] sm:$0xff] }
 0x187   : > { %v1450_v59 = vadd.f32 %v1449_v22, %v5693_v39  ;;  %v1538_v63 = vpop.f32.mrf.mxu3 }
 0x188   : > { %v1629_v3 = vpop.f32.mrf.mxu0 }
 0x189   : > { %v1539_v15 = vadd.f32 %v1538_v63, %v1450_v59 }
 0x18b   : > { %v5874_v49 = vpop.f32.mrf.mxu1  ;;  %v1628_v14 = vadd.f32 %v1627_v20, %v1539_v15 }
 0x18d   : > { %v5878_v28 = vadd.f32 %v1716_v0, %v1628_v14  ;;  %v4213_v14 = vld [vmem:[%s5353_s25 + $0x181] sm:$0xff] }
 0x18e   : > { %v1451_v19 = vpop.f32.mrf.mxu2 }
 0x18f   : > { %v1452_v51 = vadd.f32 %v1451_v19, %v5700_v53  ;;  %v1540_v12 = vpop.f32.mrf.mxu3  ;;  %v4246_v19 = vld [vmem:[%s5353_s25 + $0x18a] sm:$0xff] }
 0x190   : > { %v1632_v39 = vpop.f32.mrf.mxu0 }
 0x191   : > { %v1541_v56 = vadd.f32 %v1540_v12, %v1452_v51  ;;  %v652_v51 = vpack.c.bf16 %v4214_v29, %v4213_v14  ;;  %v4247_v29 = vld [vmem:[%s5353_s25 + $0x30] sm:$0xff] }
 0x193   : > { %v1721_v20 = vpop.f32.mrf.mxu1  ;;  %1493 = vmatmul.bf16.gmra.mxu2 %v635_v58  ;;  %1671 = vmatmul.bf16.gmra.mxu0 %v643_v31  ;;  %v5885_v50 = vadd.f32 %v1629_v3, %v1541_v56  ;;  %v4182_v3 = vld [vmem:[%s5353_s25 + $0x188] sm:$0xff] }
 0x194   : > { %1582 = vmatmul.bf16.gmra.mxu3 %v642_v38  ;;  %v651_v12 = vpack.c.bf16 %v4182_v3, %v4181_v27  ;;  %v653_v38 = vpack.c.bf16 %v4246_v19, %v4245_v11  ;;  %v4311_v27 = vld [vmem:[%s5353_s25 + $0x32] sm:$0xff]  ;;  %v4312_v3 = vld [vmem:[%s5353_s25 + $0x3a] sm:$0xff] }
 0x195   : > { %v4280_v11 = vld [vmem:[%s5353_s25 + $0x39] sm:$0xff] }
 0x196   : > { %1760 = vmatmul.bf16.gmra.mxu1 %v644_v4  ;;  %v1454_v53 = vpop.f32.mrf.mxu2 }
 0x197   : > { %v1455_v62 = vadd.f32 %v1454_v53, %v5709_v26  ;;  %v1543_v0 = vpop.f32.mrf.mxu3 }
 0x198   : > { %v1634_v22 = vpop.f32.mrf.mxu0 }
 0x199   : > { %v1544_v59 = vadd.f32 %v1543_v0, %v1455_v62 }
 0x19b   : > { %v5888_v63 = vpop.f32.mrf.mxu1  ;;  %v1633_v15 = vadd.f32 %v1632_v39, %v1544_v59  ;;  %v4999_v39 = vld [vmem:[%s7046_s3 + $0x18] sm:$0xff] }
 0x19c   : > { %3174 = vmatpush.bf16.msra.mxu1 %v4999_v39 }
 0x19d   : > { %v5892_v58 = vadd.f32 %v1721_v20, %v1633_v15 }
 0x19e   : > { %v1456_v46 = vpop.f32.mrf.mxu2 }
 0x19f   : > { %v1457_v48 = vadd.f32 %v1456_v46, %v5722_v60  ;;  %v1545_v45 = vpop.f32.mrf.mxu3  ;;  %v4279_v46 = vld [vmem:[%s5353_s25 + $0x31] sm:$0xff] }
 0x1a0   : > { %v1637_v26 = vpop.f32.mrf.mxu0 }
 0x1a1   : > { %v1546_v31 = vadd.f32 %v1545_v45, %v1457_v48 }
 0x1a3   : > { %v1726_v56 = vpop.f32.mrf.mxu1  ;;  %1498 = vmatmul.bf16.gmra.mxu2 %v644_v4  ;;  %1676 = vmatmul.bf16.gmra.mxu0 %v652_v51  ;;  %v5902_v20 = vadd.f32 %v1634_v22, %v1546_v31  ;;  %v4248_v4 = vld [vmem:[%s5353_s25 + $0x38] sm:$0xff]  ;;  %v520_v31 = vpack.c.bf16 %v4280_v11, %v4279_v46  ;;  %v4281_v11 = vld [vmem:[%s5353_s25 + $0x49] sm:$0xff] }
 0x1a4   : > { %1587 = vmatmul.bf16.gmra.mxu3 %v651_v12  ;;  %v519_v51 = vpack.c.bf16 %v4248_v4, %v4247_v29  ;;  %v4249_v29 = vld [vmem:[%s5353_s25 + $0x48] sm:$0xff]  ;;  %v4250_v4 = vld [vmem:[%s5353_s25 + $0x50] sm:$0xff] }
 0x1a6   : > { %1765 = vmatmul.bf16.gmra.mxu1 %v653_v38  ;;  %v1459_v60 = vpop.f32.mrf.mxu2 }
 0x1a7   : > { %v1460_v53 = vadd.f32 %v1459_v60, %v5742_v52  ;;  %v1548_v62 = vpop.f32.mrf.mxu3  ;;  %v521_v52 = vpack.c.bf16 %v4312_v3, %v4311_v27  ;;  %v4313_v27 = vld [vmem:[%s5353_s25 + $0x4a] sm:$0xff]  ;;  %v4314_v3 = vld [vmem:[%s5353_s25 + $0x52] sm:$0xff] }
 0x1a8   : > { %v1639_v0 = vpop.f32.mrf.mxu0 }
 0x1a9   : > { %v1549_v59 = vadd.f32 %v1548_v62, %v1460_v53 }
 0x1ab   : > { %v5905_v15 = vpop.f32.mrf.mxu1  ;;  %v1638_v14 = vadd.f32 %v1637_v26, %v1549_v59 }
 0x1ad   : > { %v5911_v22 = vadd.f32 %v1726_v56, %v1638_v14 }
 0x1ae   : > { %v1461_v19 = vpop.f32.mrf.mxu2 }
 0x1af   : > { %v1462_v48 = vadd.f32 %v1461_v19, %v5749_v2  ;;  %v1550_v45 = vpop.f32.mrf.mxu3  ;;  %v4282_v19 = vld [vmem:[%s5353_s25 + $0x51] sm:$0xff] }
 0x1b0   : > { %v1642_v12 = vpop.f32.mrf.mxu0 }
 0x1b1   : > { %v1551_v26 = vadd.f32 %v1550_v45, %v1462_v48 }
 0x1b3   : > { %v1731_v38 = vpop.f32.mrf.mxu1  ;;  %1779 = vmatmul.bf16.vlgmr.msra.gmra.mxu2 %v519_v51  ;;  %1957 = vmatmul.bf16.vlgmr.msra.gmra.mxu0 %v521_v52  ;;  %v5916_v39 = vadd.f32 %v1639_v0, %v1551_v26  ;;  %v528_v51 = vpack.c.bf16 %v4250_v4, %v4249_v29 }
 0x1b4   : > { %1868 = vmatmul.bf16.vlgmr.msra.gmra.mxu3 %v520_v31  ;;  %v529_v31 = vpack.c.bf16 %v4282_v19, %v4281_v11  ;;  %v4315_v11 = vld [vmem:[%s5353_s25 + $0x62] sm:$0xff]  ;;  %v4316_v19 = vld [vmem:[%s5353_s25 + $0x6a] sm:$0xff] }
 0x1b6   : > { %v1464_v56 = vpop.f32.mrf.mxu2 }
 0x1b7   : > { %v1465_v2 = vadd.f32 %v1464_v56, %v5596_v44  ;;  %v1553_v60 = vpop.f32.mrf.mxu3  ;;  %v530_v44 = vpack.c.bf16 %v4314_v3, %v4313_v27  ;;  %v4251_v27 = vld [vmem:[%s5353_s25 + $0x60] sm:$0xff]  ;;  %v4252_v3 = vld [vmem:[%s5353_s25 + $0x68] sm:$0xff] }
 0x1b8   : > { %v1644_v53 = vpop.f32.mrf.mxu0 }
 0x1b9   : > { %v1554_v62 = vadd.f32 %v1553_v60, %v1465_v2 }
 0x1bb   : > { %v5919_v59 = vpop.f32.mrf.mxu1  ;;  %v1643_v14 = vadd.f32 %v1642_v12, %v1554_v62  ;;  %v4998_v12 = vld [vmem:[%s7046_s3 + $0x10] sm:$0xff] }
 0x1bc   : > { %3175 = vmatpush.bf16.msra.mxu1 %v4998_v12 }
 0x1bd   : > { %v5925_v46 = vadd.f32 %v1731_v38, %v1643_v14 }
 0x1be   : > { %v1466_v0 = vpop.f32.mrf.mxu2 }
 0x1bf   : > { %v1467_v48 = vadd.f32 %v1466_v0, %v5607_v57  ;;  %v1555_v45 = vpop.f32.mrf.mxu3 }
 0x1c0   : > { %v1647_v52 = vpop.f32.mrf.mxu0 }
 0x1c1   : > { %v1556_v26 = vadd.f32 %v1555_v45, %v1467_v48  ;;  %v4284_v48 = vld [vmem:[%s5353_s25 + $0x69] sm:$0xff] }
 0x1c3   : > { %v1736_v38 = vpop.f32.mrf.mxu1  ;;  %1784 = vmatmul.bf16.gmra.mxu2 %v528_v51  ;;  %1962 = vmatmul.bf16.gmra.mxu0 %v530_v44  ;;  %v5933_v56 = vadd.f32 %v1644_v53, %v1556_v26  ;;  %v4283_v53 = vld [vmem:[%s5353_s25 + $0x61] sm:$0xff] }
 0x1c4   : > { %1873 = vmatmul.bf16.gmra.mxu3 %v529_v31  ;;  %v537_v31 = vpack.c.bf16 %v4252_v3, %v4251_v27  ;;  %v538_v12 = vpack.c.bf16 %v4284_v48, %v4283_v53  ;;  %v4317_v53 = vld [vmem:[%s5353_s25 + $0x7a] sm:$0xff]  ;;  %v4318_v48 = vld [vmem:[%s5353_s25 + $0x82] sm:$0xff] }
 0x1c6   : > { %v1469_v57 = vpop.f32.mrf.mxu2 }
 0x1c7   : > { %v1470_v2 = vadd.f32 %v1469_v57, %v5615_v6  ;;  %v1558_v60 = vpop.f32.mrf.mxu3  ;;  %v539_v6 = vpack.c.bf16 %v4316_v19, %v4315_v11  ;;  %v4253_v11 = vld [vmem:[%s5353_s25 + $0x78] sm:$0xff]  ;;  %v4254_v19 = vld [vmem:[%s5353_s25 + $0x80] sm:$0xff] }
 0x1c8   : > { %v1649_v62 = vpop.f32.mrf.mxu0 }
 0x1c9   : > { %v1559_v14 = vadd.f32 %v1558_v60, %v1470_v2 }
 0x1cb   : > { %v5936_v29 = vpop.f32.mrf.mxu1  ;;  %v1648_v4 = vadd.f32 %v1647_v52, %v1559_v14 }
 0x1cd   : > { %v5942_v0 = vadd.f32 %v1736_v38, %v1648_v4 }
 0x1ce   : > { %v1471_v45 = vpop.f32.mrf.mxu2 }
 0x1cf   : > { %v1472_v51 = vadd.f32 %v1471_v45, %v5623_v16  ;;  %v1560_v44 = vpop.f32.mrf.mxu3 }
 0x1d0   : > { %v1652_v26 = vpop.f32.mrf.mxu0 }
 0x1d1   : > { %v1561_v52 = vadd.f32 %v1560_v44, %v1472_v51  ;;  %v4285_v51 = vld [vmem:[%s5353_s25 + $0x79] sm:$0xff]  ;;  %v4286_v44 = vld [vmem:[%s5353_s25 + $0x81] sm:$0xff] }
 0x1d3   : > { %v1741_v57 = vpop.f32.mrf.mxu1  ;;  %1789 = vmatmul.bf16.gmra.mxu2 %v537_v31  ;;  %1967 = vmatmul.bf16.gmra.mxu0 %v539_v6  ;;  %v5947_v38 = vadd.f32 %v1649_v62, %v1561_v52 }
 0x1d4   : > { %1878 = vmatmul.bf16.gmra.mxu3 %v538_v12  ;;  %v546_v12 = vpack.c.bf16 %v4254_v19, %v4253_v11 }
 0x1d6   : > { %v1474_v2 = vpop.f32.mrf.mxu2 }
 0x1d7   : > { %v1475_v16 = vadd.f32 %v1474_v2, %v5637_v30  ;;  %v1563_v60 = vpop.f32.mrf.mxu3  ;;  %v548_v30 = vpack.c.bf16 %v4318_v48, %v4317_v53  ;;  %v547_v2 = vpack.c.bf16 %v4286_v44, %v4285_v51  ;;  %v4255_v51 = vld [vmem:[%s5353_s25 + $0x90] sm:$0xff]  ;;  %v4256_v44 = vld [vmem:[%s5353_s25 + $0x98] sm:$0xff] }
 0x1d8   : > { %v1654_v14 = vpop.f32.mrf.mxu0 }
 0x1d9   : > { %v1564_v4 = vadd.f32 %v1563_v60, %v1475_v16 }
 0x1db   : > { %v5950_v27 = vpop.f32.mrf.mxu1  ;;  %v1653_v3 = vadd.f32 %v1652_v26, %v1564_v4  ;;  %v4997_v26 = vld [vmem:[%s7046_s3 + $0x8] sm:$0xff] }
 0x1dc   : > { %3176 = vmatpush.bf16.msra.mxu1 %v4997_v26  ;;  %v555_v26 = vpack.c.bf16 %v4256_v44, %v4255_v51 }
 0x1dd   : > { %v5956_v45 = vadd.f32 %v1741_v57, %v1653_v3 }
 0x1de   : > { %v1476_v62 = vpop.f32.mrf.mxu2 }
 0x1df   : > { %v1477_v31 = vadd.f32 %v1476_v62, %v5648_v41  ;;  %v1565_v6 = vpop.f32.mrf.mxu3  ;;  %v4319_v62 = vld [vmem:[%s5353_s25 + $0x92] sm:$0xff] }
 0x1e0   : > { %v1657_v52 = vpop.f32.mrf.mxu0 }
 0x1e1   : > { %v1566_v16 = vadd.f32 %v1565_v6, %v1477_v31  ;;  %v4320_v31 = vld [vmem:[%s5353_s25 + $0x9a] sm:$0xff] }
 0x1e3   : > { %v1746_v57 = vpop.f32.mrf.mxu1  ;;  %1794 = vmatmul.bf16.gmra.mxu2 %v546_v12  ;;  %1972 = vmatmul.bf16.gmra.mxu0 %v548_v30  ;;  %v5964_v60 = vadd.f32 %v1654_v14, %v1566_v16  ;;  %v4287_v14 = vld [vmem:[%s5353_s25 + $0x91] sm:$0xff]  ;;  %v4288_v12 = vld [vmem:[%s5353_s25 + $0x99] sm:$0xff] }
 0x1e4   : > { %1883 = vmatmul.bf16.gmra.mxu3 %v547_v2 }
 0x1e6   : > { %v1479_v41 = vpop.f32.mrf.mxu2 }
 0x1e7   : > { %v1480_v4 = vadd.f32 %v1479_v41, %v5656_v55  ;;  %v1568_v3 = vpop.f32.mrf.mxu3  ;;  %v557_v55 = vpack.c.bf16 %v4320_v31, %v4319_v62 }
 0x1e8   : > { %v1659_v11 = vpop.f32.mrf.mxu0 }
 0x1e9   : > { %v1569_v19 = vadd.f32 %v1568_v3, %v1480_v4  ;;  %v556_v4 = vpack.c.bf16 %v4288_v12, %v4287_v14  ;;  %v4257_v14 = vld [vmem:[%s5353_s25 + $0xa8] sm:$0xff]  ;;  %v4258_v12 = vld [vmem:[%s5353_s25 + $0xb0] sm:$0xff] }
 0x1eb   : > { %v5967_v53 = vpop.f32.mrf.mxu1  ;;  %v1658_v48 = vadd.f32 %v1657_v52, %v1569_v19 }
 0x1ec   : > { %7051 = vst [vmem:[#allocation6_spill] sm:$0xff] %v5967_v53  ;;  %v564_v53 = vpack.c.bf16 %v4258_v12, %v4257_v14 }
 0x1ed   : > { %v5973_v6 = vadd.f32 %v1746_v57, %v1658_v48 }
 0x1ee   : > { %v1481_v30 = vpop.f32.mrf.mxu2 }
 0x1ef   : > { %v1482_v2 = vadd.f32 %v1481_v30, %v5664_v5  ;;  %v1570_v16 = vpop.f32.mrf.mxu3  ;;  %v4321_v30 = vld [vmem:[%s5353_s25 + $0xaa] sm:$0xff] }
 0x1f0   : > { %v1662_v41 = vpop.f32.mrf.mxu0 }
 0x1f1   : > { %v1571_v52 = vadd.f32 %v1570_v16, %v1482_v2  ;;  %v4322_v2 = vld [vmem:[%s5353_s25 + $0xb2] sm:$0xff] }
 0x1f3   : > { %v1751_v3 = vpop.f32.mrf.mxu1  ;;  %1799 = vmatmul.bf16.gmra.mxu2 %v555_v26  ;;  %1977 = vmatmul.bf16.gmra.mxu0 %v557_v55  ;;  %v5978_v57 = vadd.f32 %v1659_v11, %v1571_v52  ;;  %v4289_v26 = vld [vmem:[%s5353_s25 + $0xa9] sm:$0xff]  ;;  %v4290_v55 = vld [vmem:[%s5353_s25 + $0xb1] sm:$0xff] }
 0x1f4   : > { %1888 = vmatmul.bf16.gmra.mxu3 %v556_v4 }
 0x1f6   : > { %v1484_v19 = vpop.f32.mrf.mxu2 }
 0x1f7   : > { %v1485_v5 = vadd.f32 %v1484_v19, %v5678_v18  ;;  %v1573_v48 = vpop.f32.mrf.mxu3  ;;  %v566_v18 = vpack.c.bf16 %v4322_v2, %v4321_v30 }
 0x1f8   : > { %v1664_v51 = vpop.f32.mrf.mxu0 }
 0x1f9   : > { %v1574_v44 = vadd.f32 %v1573_v48, %v1485_v5  ;;  %v565_v5 = vpack.c.bf16 %v4290_v55, %v4289_v26  ;;  %v4259_v26 = vld [vmem:[%s5353_s25 + $0xc0] sm:$0xff]  ;;  %v4260_v55 = vld [vmem:[%s5353_s25 + $0xc8] sm:$0xff] }
 0x1fb   : > { %v5981_v62 = vpop.f32.mrf.mxu1  ;;  %v1663_v31 = vadd.f32 %v1662_v41, %v1574_v44  ;;  %v4996_v41 = vld [vmem:[%s7046_s3] sm:$0xff] }
 0x1fc   : > { %7052 = vst [vmem:[#allocation7_spill] sm:$0xff] %v5981_v62  ;;  %3177 = vmatpush.bf16.msra.mxu1 %v4996_v41 }
 0x1fd   : > { %v5987_v16 = vadd.f32 %v1751_v3, %v1663_v31 }
 0x1fe   : > { %v1486_v11 = vpop.f32.mrf.mxu2 }
 0x1ff   : > { %v1487_v4 = vadd.f32 %v1486_v11, %v5689_v34  ;;  %v1575_v52 = vpop.f32.mrf.mxu3 }
 0x200   : > { %v1667_v19 = vpop.f32.mrf.mxu0 }
 0x201   : > { %v1576_v48 = vadd.f32 %v1575_v52, %v1487_v4  ;;  %v4292_v52 = vld [vmem:[%s5353_s25 + $0xc9] sm:$0xff] }
 0x203   : > { %v1756_v44 = vpop.f32.mrf.mxu1  ;;  %1804 = vmatmul.bf16.gmra.mxu2 %v564_v53  ;;  %1982 = vmatmul.bf16.gmra.mxu0 %v566_v18  ;;  %v5995_v3 = vadd.f32 %v1664_v51, %v1576_v48  ;;  %v4291_v53 = vld [vmem:[%s5353_s25 + $0xc1] sm:$0xff]  ;;  %v573_v48 = vpack.c.bf16 %v4260_v55, %v4259_v26  ;;  %v4261_v26 = vld [vmem:[%s5353_s25 + $0xd8] sm:$0xff] }
 0x204   : > { %1893 = vmatmul.bf16.gmra.mxu3 %v565_v5  ;;  %v574_v62 = vpack.c.bf16 %v4292_v52, %v4291_v53  ;;  %v4293_v53 = vld [vmem:[%s5353_s25 + $0xd9] sm:$0xff]  ;;  %v4294_v52 = vld [vmem:[%s5353_s25 + $0xe1] sm:$0xff] }
 0x206   : > { %v1489_v34 = vpop.f32.mrf.mxu2 }
 0x207   : > { %v1490_v31 = vadd.f32 %v1489_v34, %v5697_v47  ;;  %v1578_v14 = vpop.f32.mrf.mxu3 }
 0x208   : > { %v1669_v12 = vpop.f32.mrf.mxu0 }
 0x209   : > { %v1579_v30 = vadd.f32 %v1578_v14, %v1490_v31 }
 0x20b   : > { %v1668_v2 = vadd.f32 %v1667_v19, %v1579_v30  ;;  %v6000_v11 = vpop.f32.mrf.mxu1 }
 0x20d   : > { %v6002_v4 = vadd.f32 %v1756_v44, %v1668_v2  ;;  %v5011_v44 = vld [vmem:[%s7046_s3 + $0x78] sm:$0xff]  ;;  %v5227_v2 = vmov 0.0  }
 0x20e   : > { %v1491_v18 = vpop.f32.mrf.mxu2  ;;  %3259 = vmatpush.bf16.msrb.mxu2 %v5011_v44  ;;  %2073 = vst [vmem:[#allocation2 + $0x18] sm:$0xff] %v5227_v2 }
 0x20f   : > { %v1492_v51 = vadd.f32 %v1491_v18, %v5705_v1  ;;  %v1580_v5 = vpop.f32.mrf.mxu3  ;;  %2074 = vst [vmem:[#allocation2 + $0x20] sm:$0xff] %v5227_v2 }
 0x210   : > { %v1672_v41 = vpop.f32.mrf.mxu0  ;;  %2070 = vst [vmem:[#allocation2] sm:$0xff] %v5227_v2 }
 0x211   : > { %v1581_v47 = vadd.f32 %v1580_v5, %v1492_v51  ;;  %2071 = vst [vmem:[#allocation2 + $0x8] sm:$0xff] %v5227_v2 }
 0x212   : > { %2072 = vst [vmem:[#allocation2 + $0x10] sm:$0x3] %v5227_v2 }
 0x213   : > { %1809 = vmatmul.bf16.gmra.mxu2 %v573_v48  ;;  %1987 = vmatmul.bf16.gmra.mxu0 %v5737_v43  ;;  %v6008_v19 = vadd.f32 %v1669_v12, %v1581_v47  ;;  %v1761_v31 = vpop.f32.mrf.mxu1  ;;  %2075 = vst [vmem:[#allocation2 + $0x28] sm:$0x3] %v5227_v2  ;;  %v583_v47 = vpack.c.bf16 %v4294_v52, %v4293_v53  ;;  %v5027_v52 = vld [vmem:[%s7046_s3 + $0xf8] sm:$0xff] }
 0x214   : > { %1898 = vmatmul.bf16.gmra.mxu3 %v574_v62  ;;  %v5228_v62 = vmov 0.0|0.0   ;;  %2076 = vst [vmem:[#allocation2 + $0x30] sm:$0xff] %v5227_v2  ;;  %3437 = vmatpush.bf16.msrb.mxu0 %v5027_v52  ;;  %v5018_v52 = vld [vmem:[%s7046_s3 + $0xb0] sm:$0xff] }
 0x215   : > { %3178 = vmatmul.bf16.vlgmr.msra.gmra.mxu1 %v5228_v62  ;;  %2077 = vst [vmem:[#allocation2 + $0x38] sm:$0xff] %v5227_v2 }
 0x216   : > { %v1494_v34 = vpop.f32.mrf.mxu2  ;;  %2078 = vst [vmem:[#allocation2 + $0x40] sm:$0x3] %v5227_v2 }
 0x217   : > { %v1495_v1 = vadd.f32 %v1494_v34, %v5719_v13  ;;  %v1583_v14 = vpop.f32.mrf.mxu3  ;;  %v4262_v13 = vld [vmem:[%s5353_s25 + $0xe0] sm:$0xff]  ;;  %2079 = vst [vmem:[#allocation2 + $0x48] sm:$0xff] %v5227_v2 }
 0x218   : > { %v1674_v30 = vpop.f32.mrf.mxu0  ;;  %v582_v48 = vpack.c.bf16 %v4262_v13, %v4261_v26  ;;  %2080 = vst [vmem:[#allocation2 + $0x50] sm:$0xff] %v5227_v2  ;;  %v5019_v26 = vld [vmem:[%s7046_s3 + $0xb8] sm:$0xff] }
 0x219   : > { %v1584_v43 = vadd.f32 %v1583_v14, %v1495_v1  ;;  %2081 = vst [vmem:[#allocation2 + $0x58] sm:$0x3] %v5227_v2  ;;  %3348 = vmatpush.bf16.msrb.mxu3 %v5019_v26 }
 0x21a   : > { %2082 = vst [vmem:[#allocation2 + $0x60] sm:$0xff] %v5227_v2 }
 0x21b   : > { %v1673_v12 = vadd.f32 %v1672_v41, %v1584_v43  ;;  %v6029_v44 = vpop.f32.mrf.mxu1  ;;  %2083 = vst [vmem:[#allocation2 + $0x68] sm:$0xff] %v5227_v2 }
 0x21c   : > { %2084 = vst [vmem:[#allocation2 + $0x70] sm:$0x3] %v5227_v2 }
 0x21d   : > { %v6021_v55 = vadd.f32 %v1761_v31, %v1673_v12  ;;  %2085 = vst [vmem:[#allocation2 + $0x78] sm:$0xff] %v5227_v2  ;;  %3349 = vmatpush.bf16.msrb.mxu3 %v5018_v52 }
 0x21e   : > { %v1496_v18 = vpop.f32.mrf.mxu2  ;;  %2086 = vst [vmem:[#allocation2 + $0x80] sm:$0xff] %v5227_v2 }
 0x21f   : > { %v1497_v51 = vadd.f32 %v1496_v18, %v5734_v40  ;;  %v1585_v5 = vpop.f32.mrf.mxu3  ;;  %2087 = vst [vmem:[#allocation2 + $0x88] sm:$0x3] %v5227_v2  ;;  %v5035_v18 = vld [vmem:[%s7046_s3 + $0x138] sm:$0xff] }
 0x220   : > { %v1677_v41 = vpop.f32.mrf.mxu0  ;;  %2088 = vst [vmem:[#allocation2 + $0x90] sm:$0xff] %v5227_v2  ;;  %3526 = vmatpush.bf16.msrb.mxu1 %v5035_v18 }
 0x221   : > { %v1586_v34 = vadd.f32 %v1585_v5, %v1497_v51  ;;  %2089 = vst [vmem:[#allocation2 + $0x98] sm:$0xff] %v5227_v2 }
 0x222   : > { %2090 = vst [vmem:[#allocation2 + $0xa0] sm:$0x3] %v5227_v2 }
 0x223   : > { %1814 = vmatmul.bf16.gmra.mxu2 %v582_v48  ;;  %1992 = vmatmul.bf16.gmra.mxu0 %v5760_v25  ;;  %v6035_v31 = vadd.f32 %v1674_v30, %v1586_v34  ;;  %v1766_v30 = vpop.f32.mrf.mxu1  ;;  %2091 = vst [vmem:[#allocation2 + $0xa8] sm:$0xff] %v5227_v2 }
 0x224   : > { %1903 = vmatmul.bf16.gmra.mxu3 %v583_v47  ;;  %2092 = vst [vmem:[#allocation2 + $0xb0] sm:$0xff] %v5227_v2  ;;  %v5010_v47 = vld [vmem:[%s7046_s3 + $0x70] sm:$0xff] }
 0x225   : > { %2093 = vst [vmem:[#allocation2 + $0xb8] sm:$0x3] %v5227_v2  ;;  %3260 = vmatpush.bf16.msrb.mxu2 %v5010_v47 }
 0x226   : > { %v1499_v40 = vpop.f32.mrf.mxu2  ;;  %2094 = vst [vmem:[#allocation2 + $0xc0] sm:$0xff] %v5227_v2 }
 0x227   : > { %v1500_v1 = vadd.f32 %v1499_v40, %v5746_v61  ;;  %v1588_v14 = vpop.f32.mrf.mxu3  ;;  %2095 = vst [vmem:[#allocation2 + $0xc8] sm:$0xff] %v5227_v2  ;;  %v4266_v40 = vld [vmem:[%s5353_s25 + $0x110] sm:$0xff] }
 0x228   : > { %v1679_v43 = vpop.f32.mrf.mxu0  ;;  %2096 = vst [vmem:[#allocation2 + $0xd0] sm:$0x3] %v5227_v2 }
 0x229   : > { %v1589_v25 = vadd.f32 %v1588_v14, %v1500_v1  ;;  %2097 = vst [vmem:[#allocation2 + $0xd8] sm:$0xff] %v5227_v2  ;;  %v4329_v1 = vld [vmem:[%s5353_s25 + $0x10a] sm:$0xff]  ;;  %v4330_v14 = vld [vmem:[%s5353_s25 + $0x112] sm:$0xff] }
 0x22a   : > { %2098 = vst [vmem:[#allocation2 + $0xe0] sm:$0xff] %v5227_v2 }
 0x22b   : > { %v1678_v62 = vadd.f32 %v1677_v41, %v1589_v25  ;;  %2099 = vst [vmem:[#allocation2 + $0xe8] sm:$0x3] %v5227_v2  ;;  %v4297_v25 = vld [vmem:[%s5353_s25 + $0x109] sm:$0xff] }
 0x22c   : > { %2100 = vst [vmem:[#allocation2 + $0xf0] sm:$0xff] %v5227_v2 }
 0x22d   : > { %v6048_v12 = vadd.f32 %v1766_v30, %v1678_v62  ;;  %2101 = vst [vmem:[#allocation2 + $0xf8] sm:$0xff] %v5227_v2  ;;  %v4298_v30 = vld [vmem:[%s5353_s25 + $0x111] sm:$0xff] }
 0x22e   : > { %v1501_v61 = vpop.f32.mrf.mxu2  ;;  %2102 = vst [vmem:[#allocation2 + $0x100] sm:$0x3] %v5227_v2 }
 0x22f   : > { %v1502_v13 = vadd.f32 %v1501_v61, %v5758_v23  ;;  %v1590_v53 = vpop.f32.mrf.mxu3  ;;  %2103 = vst [vmem:[#allocation2 + $0x108] sm:$0xff] %v5227_v2 }
 0x230   : > { %v1958_v51 = vpop.f32.mrf.mxu0  ;;  %2104 = vst [vmem:[#allocation2 + $0x110] sm:$0xff] %v5227_v2 }
 0x231   : > { %v1591_v5 = vadd.f32 %v1590_v53, %v1502_v13  ;;  %2105 = vst [vmem:[#allocation2 + $0x118] sm:$0x3] %v5227_v2  ;;  %v602_v53 = vpack.c.bf16 %v4330_v14, %v4329_v1  ;;  %v4267_v1 = vld [vmem:[%s5353_s25 + $0x120] sm:$0xff]  ;;  %v4268_v14 = vld [vmem:[%s5353_s25 + $0x128] sm:$0xff] }
 0x232   : > { %2106 = vst [vmem:[#allocation2 + $0x120] sm:$0xff] %v5227_v2  ;;  %v609_v52 = vpack.c.bf16 %v4268_v14, %v4267_v1  ;;  %v5009_v1 = vld [vmem:[%s7046_s3 + $0x68] sm:$0xff] }
 0x233   : > { %1819 = vmatmul.bf16.gmra.mxu2 %v5785_v24  ;;  %1997 = vmatmul.bf16.gmra.mxu0 %v5787_v21  ;;  %v6068_v23 = vadd.f32 %v1679_v43, %v1591_v5  ;;  %2107 = vst [vmem:[#allocation2 + $0x128] sm:$0xff] %v5227_v2 }
 0x234   : > { %1908 = vmatmul.bf16.gmra.mxu3 %v5783_v8  ;;  %2108 = vst [vmem:[#allocation2 + $0x130] sm:$0x3] %v5227_v2  ;;  %3261 = vmatpush.bf16.msrb.mxu2 %v5009_v1 }
 0x235   : > { %2109 = vst [vmem:[#allocation2 + $0x138] sm:$0xff] %v5227_v2 }
 0x236   : > { %v1780_v48 = vpop.f32.mrf.mxu2  ;;  %2110 = vst [vmem:[#allocation2 + $0x140] sm:$0xff] %v5227_v2 }
 0x237   : > { %v1781_v24 = vadd.f32 %v1780_v48, %v5773_v54  ;;  %v1869_v21 = vpop.f32.mrf.mxu3  ;;  %v4265_v54 = vld [vmem:[%s5353_s25 + $0x108] sm:$0xff]  ;;  %2111 = vst [vmem:[#allocation2 + $0x148] sm:$0x3] %v5227_v2 }
 0x238   : > { %v1960_v8 = vpop.f32.mrf.mxu0  ;;  %v600_v13 = vpack.c.bf16 %v4266_v40, %v4265_v54  ;;  %2112 = vst [vmem:[#allocation2 + $0x150] sm:$0xff] %v5227_v2 }
 0x239   : > { %v1870_v41 = vadd.f32 %v1869_v21, %v1781_v24  ;;  %2113 = vst [vmem:[#allocation2 + $0x158] sm:$0xff] %v5227_v2 }
 0x23a   : > { %2114 = vst [vmem:[#allocation2 + $0x160] sm:$0x3] %v5227_v2 }
 0x23b   : > { %v1959_v34 = vadd.f32 %v1958_v51, %v1870_v41  ;;  %v601_v51 = vpack.c.bf16 %v4298_v30, %v4297_v25  ;;  %2115 = vst [vmem:[#allocation2 + $0x168] sm:$0xff] %v5227_v2  ;;  %v4332_v25 = vld [vmem:[%s5353_s25 + $0x12a] sm:$0xff] }
 0x23c   : > { %2116 = vst [vmem:[#allocation2 + $0x170] sm:$0xff] %v5227_v2 }
 0x23d   : > { %v2038_v43 = vmax.f32 %v1959_v34, 0.0  ;;  %2117 = vst [vmem:[#allocation2 + $0x178] sm:$0x3] %v5227_v2 }
 0x23e   : > { %v1782_v62 = vpop.f32.mrf.mxu2  ;;  %2118 = vst [vmem:[#allocation2 + $0x180] sm:$0xff] %v5227_v2 }
 0x23f   : > { %2125 = vst [vmem:[#allocation2 + $0x19] sm:$0xff] %v2038_v43  ;;  %v1783_v61 = vadd.f32 %v1782_v62, %v5795_v17  ;;  %v1871_v26 = vpop.f32.mrf.mxu3  ;;  %v4299_v62 = vld [vmem:[%s5353_s25 + $0x121] sm:$0xff] }
 0x240   : > { %v1963_v18 = vpop.f32.mrf.mxu0  ;;  %2119 = vst [vmem:[#allocation2 + $0x188] sm:$0xff] %v5227_v2 }
 0x241   : > { %v1872_v5 = vadd.f32 %v1871_v26, %v1783_v61  ;;  %2120 = vst [vmem:[#allocation2 + $0x190] sm:$0x3] %v5227_v2  ;;  %v4300_v61 = vld [vmem:[%s5353_s25 + $0x129] sm:$0xff] }
 0x242   : > { %2121 = vst [vmem:[#allocation2 + $0x198] sm:$0xff] %v5227_v2 }
 0x243   : > { %v1961_v17 = vadd.f32 %v1960_v8, %v1872_v5  ;;  %1824 = vmatmul.bf16.gmra.mxu2 %v600_v13  ;;  %2002 = vmatmul.bf16.gmra.mxu0 %v602_v53  ;;  %v5026_v8 = vld [vmem:[%s7046_s3 + $0xf0] sm:$0xff]  ;;  %2122 = vst [vmem:[#allocation2 + $0x1a0] sm:$0xff] %v5227_v2  ;;  %v610_v5 = vpack.c.bf16 %v4300_v61, %v4299_v62  ;;  %v4333_v62 = vld [vmem:[%s5353_s25 + $0x13a] sm:$0xff]  ;;  %v4334_v61 = vld [vmem:[%s5353_s25 + $0x142] sm:$0xff] }
 0x244   : > { %1913 = vmatmul.bf16.gmra.mxu3 %v601_v51  ;;  %3438 = vmatpush.bf16.msrb.mxu0 %v5026_v8  ;;  %2123 = vst [vmem:[#allocation2 + $0x1a8] sm:$0x3] %v5227_v2 }
 0x245   : > { %v2039_v48 = vmax.f32 %v1961_v17, 0.0 }
 0x246   : > { %v1785_v24 = vpop.f32.mrf.mxu2  ;;  %v2159_v2 = vld [vmem:[#allocation2 + $0x18] sm:$0xff] }
 0x247   : > { %v1786_v21 = vadd.f32 %v1785_v24, %v5801_v36  ;;  %v1874_v41 = vpop.f32.mrf.mxu3  ;;  %v6109_v47 = vpack.c.bf16 %v2039_v48, %v2038_v43  ;;  %v5034_v36 = vld [vmem:[%s7046_s3 + $0x130] sm:$0xff]  ;;  %v4331_v43 = vld [vmem:[%s5353_s25 + $0x122] sm:$0xff]  ;;  %2126 = vst [vmem:[#allocation2 + $0x21] sm:$0xff] %v2039_v48 }
 0x248   : > { %v1965_v34 = vpop.f32.mrf.mxu0  ;;  %3527 = vmatpush.bf16.msrb.mxu1 %v5034_v36 }
 0x249   : > { %v1875_v54 = vadd.f32 %v1874_v41, %v1786_v21 }
 0x24b   : > { %v1964_v40 = vadd.f32 %v1963_v18, %v1875_v54  ;;  %v611_v18 = vpack.c.bf16 %v4332_v25, %v4331_v43  ;;  %v4269_v43 = vld [vmem:[%s5353_s25 + $0x138] sm:$0xff]  ;;  %v4270_v25 = vld [vmem:[%s5353_s25 + $0x140] sm:$0xff] }
 0x24d   : > { %v2040_v30 = vmax.f32 %v1964_v40, 0.0 }
 0x24e   : > { %v1787_v26 = vpop.f32.mrf.mxu2  ;;  %v2160_v48 = vld [vmem:[#allocation2 + $0x20] sm:$0xff] }
 0x24f   : > { %v1788_v13 = vadd.f32 %v1787_v26, %v5812_v9  ;;  %v1876_v53 = vpop.f32.mrf.mxu3  ;;  %2127 = vst [vmem:[#allocation2 + $0x31] sm:$0xff] %v2040_v30  ;;  %v6128_v9 = vpack.c.bf16 %v2160_v48, %v2159_v2 }
 0x250   : > { %v1968_v51 = vpop.f32.mrf.mxu0 }
 0x251   : > { %v1877_v17 = vadd.f32 %v1876_v53, %v1788_v13  ;;  %3183 = vmatmul.bf16.gmra.mxu1 %v6128_v9  ;;  %v4301_v13 = vld [vmem:[%s5353_s25 + $0x139] sm:$0xff] }
 0x253   : > { %v1966_v24 = vadd.f32 %v1965_v34, %v1877_v17  ;;  %1829 = vmatmul.bf16.gmra.mxu2 %v609_v52  ;;  %2007 = vmatmul.bf16.gmra.mxu0 %v611_v18  ;;  %v618_v18 = vpack.c.bf16 %v4270_v25, %v4269_v43  ;;  %v5017_v17 = vld [vmem:[%s7046_s3 + $0xa8] sm:$0xff] }
 0x254   : > { %1918 = vmatmul.bf16.gmra.mxu3 %v610_v5  ;;  %v620_v5 = vpack.c.bf16 %v4334_v61, %v4333_v62  ;;  %v5033_v62 = vld [vmem:[%s7046_s3 + $0x128] sm:$0xff] }
 0x255   : > { %v2041_v21 = vmax.f32 %v1966_v24, 0.0  ;;  %3350 = vmatpush.bf16.msrb.mxu3 %v5017_v17  ;;  %3528 = vmatpush.bf16.msrb.mxu1 %v5033_v62 }
 0x256   : > { %v1790_v41 = vpop.f32.mrf.mxu2 }
 0x257   : > { %2128 = vst [vmem:[#allocation2 + $0x39] sm:$0xff] %v2041_v21  ;;  %v1791_v8 = vadd.f32 %v1790_v41, %v5820_v32  ;;  %v1879_v54 = vpop.f32.mrf.mxu3  ;;  %v6131_v34 = vpack.c.bf16 %v2041_v21, %v2040_v30  ;;  %v4302_v32 = vld [vmem:[%s5353_s25 + $0x141] sm:$0xff]  ;;  %v2161_v41 = vld [vmem:[#allocation2 + $0x30] sm:$0xff] }
 0x258   : > { %v1970_v36 = vpop.f32.mrf.mxu0  ;;  %v619_v24 = vpack.c.bf16 %v4302_v32, %v4301_v13  ;;  %v4272_v13 = vld [vmem:[%s5353_s25 + $0x158] sm:$0xff] }
 0x259   : > { %v1880_v40 = vadd.f32 %v1879_v54, %v1791_v8  ;;  %v4335_v32 = vld [vmem:[%s5353_s25 + $0x152] sm:$0xff] }
 0x25b   : > { %v1969_v14 = vadd.f32 %v1968_v51, %v1880_v40 }
 0x25d   : > { %v2042_v26 = vmax.f32 %v1969_v14, 0.0 }
 0x25e   : > { %v1792_v53 = vpop.f32.mrf.mxu2  ;;  %v2162_v2 = vld [vmem:[#allocation2 + $0x38] sm:$0xff] }
 0x25f   : > { %2129 = vst [vmem:[#allocation2 + $0x49] sm:$0xff] %v2042_v26  ;;  %v1793_v30 = vadd.f32 %v1792_v53, %v5833_v33  ;;  %v1881_v52 = vpop.f32.mrf.mxu3  ;;  %v6147_v33 = vpack.c.bf16 %v2162_v2, %v2161_v41  ;;  %v4336_v53 = vld [vmem:[%s5353_s25 + $0x15a] sm:$0xff] }
 0x260   : > { %v1973_v51 = vpop.f32.mrf.mxu0 }
 0x261   : > { %v1882_v21 = vadd.f32 %v1881_v52, %v1793_v30  ;;  %3188 = vmatmul.bf16.gmra.mxu1 %v6147_v33  ;;  %v4303_v52 = vld [vmem:[%s5353_s25 + $0x151] sm:$0xff] }
 0x263   : > { %v1971_v48 = vadd.f32 %v1970_v36, %v1882_v21  ;;  %1834 = vmatmul.bf16.gmra.mxu2 %v618_v18  ;;  %2012 = vmatmul.bf16.gmra.mxu0 %v620_v5  ;;  %v5025_v36 = vld [vmem:[%s7046_s3 + $0xe8] sm:$0xff]  ;;  %v4304_v18 = vld [vmem:[%s5353_s25 + $0x159] sm:$0xff]  ;;  %v629_v21 = vpack.c.bf16 %v4336_v53, %v4335_v32  ;;  %v4274_v53 = vld [vmem:[%s5353_s25 + $0x170] sm:$0xff] }
 0x264   : > { %1923 = vmatmul.bf16.gmra.mxu3 %v619_v24  ;;  %3439 = vmatpush.bf16.msrb.mxu0 %v5025_v36  ;;  %v4273_v32 = vld [vmem:[%s5353_s25 + $0x168] sm:$0xff] }
 0x265   : > { %v2043_v8 = vmax.f32 %v1971_v48, 0.0  ;;  %v628_v48 = vpack.c.bf16 %v4304_v18, %v4303_v52  ;;  %v4337_v52 = vld [vmem:[%s5353_s25 + $0x16a] sm:$0xff]  ;;  %v4338_v18 = vld [vmem:[%s5353_s25 + $0x172] sm:$0xff] }
 0x266   : > { %v1795_v54 = vpop.f32.mrf.mxu2 }
 0x267   : > { %2130 = vst [vmem:[#allocation2 + $0x51] sm:$0xff] %v2043_v8  ;;  %v1796_v40 = vadd.f32 %v1795_v54, %v5838_v35  ;;  %v1884_v1 = vpop.f32.mrf.mxu3  ;;  %v6153_v14 = vpack.c.bf16 %v2043_v8, %v2042_v26  ;;  %v4271_v35 = vld [vmem:[%s5353_s25 + $0x150] sm:$0xff]  ;;  %v2163_v54 = vld [vmem:[#allocation2 + $0x48] sm:$0xff] }
 0x268   : > { %v1975_v43 = vpop.f32.mrf.mxu0  ;;  %v627_v24 = vpack.c.bf16 %v4272_v13, %v4271_v35  ;;  %v5008_v35 = vld [vmem:[%s7046_s3 + $0x60] sm:$0xff] }
 0x269   : > { %v1885_v25 = vadd.f32 %v1884_v1, %v1796_v40  ;;  %3262 = vmatpush.bf16.msrb.mxu2 %v5008_v35 }
 0x26b   : > { %v1974_v61 = vadd.f32 %v1973_v51, %v1885_v25 }
 0x26d   : > { %v2044_v30 = vmax.f32 %v1974_v61, 0.0 }
 0x26e   : > { %v1797_v26 = vpop.f32.mrf.mxu2  ;;  %v2164_v8 = vld [vmem:[#allocation2 + $0x50] sm:$0xff] }
 0x26f   : > { %2131 = vst [vmem:[#allocation2 + $0x61] sm:$0xff] %v2044_v30  ;;  %v1798_v5 = vadd.f32 %v1797_v26, %v5848_v10  ;;  %v1886_v17 = vpop.f32.mrf.mxu3  ;;  %v6166_v1 = vpack.c.bf16 %v2164_v8, %v2163_v54 }
 0x270   : > { %v1978_v2 = vpop.f32.mrf.mxu0 }
 0x271   : > { %v1887_v41 = vadd.f32 %v1886_v17, %v1798_v5  ;;  %3193 = vmatmul.bf16.gmra.mxu1 %v6166_v1  ;;  %v4306_v5 = vld [vmem:[%s5353_s25 + $0x171] sm:$0xff] }
 0x273   : > { %v1976_v51 = vadd.f32 %v1975_v43, %v1887_v41  ;;  %1839 = vmatmul.bf16.gmra.mxu2 %v627_v24  ;;  %2017 = vmatmul.bf16.gmra.mxu0 %v629_v21  ;;  %v638_v41 = vpack.c.bf16 %v4338_v18, %v4337_v52  ;;  %v5032_v52 = vld [vmem:[%s7046_s3 + $0x120] sm:$0xff]  ;;  %v5007_v18 = vld [vmem:[%s7046_s3 + $0x58] sm:$0xff] }
 0x274   : > { %1928 = vmatmul.bf16.gmra.mxu3 %v628_v48  ;;  %v636_v48 = vpack.c.bf16 %v4274_v53, %v4273_v32  ;;  %3529 = vmatpush.bf16.msrb.mxu1 %v5032_v52 }
 0x275   : > { %v2045_v40 = vmax.f32 %v1976_v51, 0.0  ;;  %3263 = vmatpush.bf16.msrb.mxu2 %v5007_v18 }
 0x276   : > { %v1800_v10 = vpop.f32.mrf.mxu2 }
 0x277   : > { %2132 = vst [vmem:[#allocation2 + $0x69] sm:$0xff] %v2045_v40  ;;  %v1801_v36 = vadd.f32 %v1800_v10, %v5858_v37  ;;  %v1889_v25 = vpop.f32.mrf.mxu3  ;;  %v6169_v62 = vpack.c.bf16 %v2045_v40, %v2044_v30  ;;  %v1714_v37 = vadd.f32 %v5854_v42, %v5871_v7  ;;  %v4305_v30 = vld [vmem:[%s5353_s25 + $0x169] sm:$0xff]  ;;  %v2165_v42 = vld [vmem:[#allocation2 + $0x60] sm:$0xff] }
 0x278   : > { %v1980_v43 = vpop.f32.mrf.mxu0  ;;  %v637_v51 = vpack.c.bf16 %v4306_v5, %v4305_v30  ;;  %v5023_v30 = vld [vmem:[%s7046_s3 + $0xd8] sm:$0xff]  ;;  %v4276_v5 = vld [vmem:[%s5353_s25 + $0x188] sm:$0xff] }
 0x279   : > { %v1890_v61 = vadd.f32 %v1889_v25, %v1801_v36 }
 0x27b   : > { %v1979_v13 = vadd.f32 %v1978_v2, %v1890_v61  ;;  %v5016_v2 = vld [vmem:[%s7046_s3 + $0xa0] sm:$0xff] }
 0x27c   : > { %3351 = vmatpush.bf16.msrb.mxu3 %v5016_v2  ;;  %v5024_v61 = vld [vmem:[%s7046_s3 + $0xe0] sm:$0xff]  ;;  %v4308_v2 = vld [vmem:[%s5353_s25 + $0x189] sm:$0xff] }
 0x27d   : > { %v2046_v26 = vmax.f32 %v1979_v13, 0.0  ;;  %3440 = vmatpush.bf16.msrb.mxu0 %v5024_v61  ;;  %v5005_v61 = vld [vmem:[%s7046_s3 + $0x48] sm:$0xff] }
 0x27e   : > { %v1802_v17 = vpop.f32.mrf.mxu2  ;;  %v2166_v40 = vld [vmem:[#allocation2 + $0x68] sm:$0xff] }
 0x27f   : > { %2133 = vst [vmem:[#allocation2 + $0x79] sm:$0xff] %v2046_v26  ;;  %v1803_v24 = vadd.f32 %v1802_v17, %v1714_v37  ;;  %v1891_v21 = vpop.f32.mrf.mxu3  ;;  %v6186_v36 = vpack.c.bf16 %v2166_v40, %v2165_v42  ;;  %v4339_v17 = vld [vmem:[%s5353_s25 + $0x182] sm:$0xff] }
 0x280   : > { %v1983_v8 = vpop.f32.mrf.mxu0 }
 0x281   : > { %v1892_v54 = vadd.f32 %v1891_v21, %v1803_v24  ;;  %3198 = vmatmul.bf16.gmra.mxu1 %v6186_v36  ;;  %v4340_v24 = vld [vmem:[%s5353_s25 + $0x18a] sm:$0xff]  ;;  %v1719_v21 = vadd.f32 %v5874_v49, %v5885_v50  ;;  %3441 = vmatpush.bf16.msrb.mxu0 %v5023_v30 }
 0x282   : > { %v5022_v49 = vld [vmem:[%s7046_s3 + $0xd0] sm:$0xff] }
 0x283   : > { %v1981_v10 = vadd.f32 %v1980_v43, %v1892_v54  ;;  %1844 = vmatmul.bf16.gmra.mxu2 %v636_v48  ;;  %2022 = vmatmul.bf16.gmra.mxu0 %v638_v41  ;;  %v4307_v41 = vld [vmem:[%s5353_s25 + $0x181] sm:$0xff]  ;;  %v5014_v54 = vld [vmem:[%s7046_s3 + $0x90] sm:$0xff] }
 0x284   : > { %1933 = vmatmul.bf16.gmra.mxu3 %v637_v51 }
 0x285   : > { %v2047_v7 = vmax.f32 %v1981_v10, 0.0  ;;  %3442 = vmatpush.bf16.msrb.mxu0 %v5022_v49  ;;  %v4309_v49 = vld [vmem:[%s5353_s25 + $0x199] sm:$0xff] }
 0x286   : > { %v1805_v25 = vpop.f32.mrf.mxu2 }
 0x287   : > { %2134 = vst [vmem:[#allocation2 + $0x81] sm:$0xff] %v2047_v7  ;;  %v1806_v35 = vadd.f32 %v1805_v25, %v5878_v28  ;;  %v1894_v43 = vpop.f32.mrf.mxu3  ;;  %v6192_v13 = vpack.c.bf16 %v2047_v7, %v2046_v26  ;;  %v5015_v28 = vld [vmem:[%s7046_s3 + $0x98] sm:$0xff]  ;;  %v4275_v26 = vld [vmem:[%s5353_s25 + $0x180] sm:$0xff]  ;;  %v647_v7 = vpack.c.bf16 %v4340_v24, %v4339_v17  ;;  %v646_v25 = vpack.c.bf16 %v4308_v2, %v4307_v41 }
 0x288   : > { %v1985_v32 = vpop.f32.mrf.mxu0  ;;  %3352 = vmatpush.bf16.msrb.mxu3 %v5015_v28  ;;  %v645_v42 = vpack.c.bf16 %v4276_v5, %v4275_v26  ;;  %v2167_v28 = vld [vmem:[#allocation2 + $0x78] sm:$0xff]  ;;  %v5004_v5 = vld [vmem:[%s7046_s3 + $0x40] sm:$0xff] }
 0x289   : > { %v1895_v53 = vadd.f32 %v1894_v43, %v1806_v35  ;;  %v5013_v43 = vld [vmem:[%s7046_s3 + $0x88] sm:$0xff] }
 0x28b   : > { %v1984_v37 = vadd.f32 %v1983_v8, %v1895_v53  ;;  %v5006_v8 = vld [vmem:[%s7046_s3 + $0x50] sm:$0xff]  ;;  %v5021_v53 = vld [vmem:[%s7046_s3 + $0xc8] sm:$0xff] }
 0x28c   : > { %3264 = vmatpush.bf16.msrb.mxu2 %v5006_v8  ;;  %3353 = vmatpush.bf16.msrb.mxu3 %v5014_v54  ;;  %v4277_v54 = vld [vmem:[%s5353_s25 + $0x198] sm:$0xff] }
 0x28d   : > { %v2048_v48 = vmax.f32 %v1984_v37, 0.0  ;;  %3443 = vmatpush.bf16.msrb.mxu0 %v5021_v53 }
 0x28e   : > { %v1807_v51 = vpop.f32.mrf.mxu2  ;;  %v2168_v52 = vld [vmem:[#allocation2 + $0x80] sm:$0xff] }
 0x28f   : > { %2135 = vst [vmem:[#allocation2 + $0x91] sm:$0xff] %v2048_v48  ;;  %v1808_v40 = vadd.f32 %v1807_v51, %v1719_v21  ;;  %v1896_v10 = vpop.f32.mrf.mxu3  ;;  %v6233_v26 = vpack.c.bf16 %v2168_v52, %v2167_v28  ;;  %v5020_v21 = vld [vmem:[%s7046_s3 + $0xc0] sm:$0xff] }
 0x290   : > { %v1988_v50 = vpop.f32.mrf.mxu0  ;;  %3265 = vmatpush.bf16.msrb.mxu2 %v5005_v61  ;;  %3354 = vmatpush.bf16.msrb.mxu3 %v5013_v43 }
 0x291   : > { %v1897_v35 = vadd.f32 %v1896_v10, %v1808_v40  ;;  %3203 = vmatmul.bf16.gmra.mxu1 %v6233_v26  ;;  %3444 = vmatpush.bf16.msrb.mxu0 %v5020_v21  ;;  %v4278_v40 = vld [vmem:[%s5353_s25 + $0x1a0] sm:$0xff] }
 0x292   : > { %v4342_v10 = vld [vmem:[%s5353_s25 + $0x1a2] sm:$0xff]  ;;  %v654_v43 = vpack.c.bf16 %v4278_v40, %v4277_v54 }
 0x293   : > { %v1986_v18 = vadd.f32 %v1985_v32, %v1897_v35  ;;  %1849 = vmatmul.bf16.gmra.mxu2 %v645_v42  ;;  %2027 = vmatmul.bf16.gmra.mxu0 %v647_v7  ;;  %v5012_v32 = vld [vmem:[%s7046_s3 + $0x80] sm:$0xff]  ;;  %v1724_v42 = vadd.f32 %v5888_v63, %v5902_v20  ;;  %v2190_v40 = vld [vmem:[#allocation2 + $0x9] sm:$0xff] }
 0x294   : > { %1938 = vmatmul.bf16.gmra.mxu3 %v646_v25  ;;  %3266 = vmatpush.bf16.msrb.mxu2 %v5004_v5  ;;  %v4310_v25 = vld [vmem:[%s5353_s25 + $0x1a1] sm:$0xff] }
 0x295   : > { %v2049_v37 = vmax.f32 %v1986_v18, 0.0  ;;  %3355 = vmatpush.bf16.msrb.mxu3 %v5012_v32  ;;  %v655_v18 = vpack.c.bf16 %v4310_v25, %v4309_v49  ;;  %v2189_v54 = vld [vmem:[#allocation2 + $0x1] sm:$0xff] }
 0x296   : > { %v1810_v30 = vpop.f32.mrf.mxu2 }
 0x297   : > { %2136 = vst [vmem:[#allocation2 + $0x99] sm:$0xff] %v2049_v37  ;;  %v1811_v17 = vadd.f32 %v1810_v30, %v5892_v58  ;;  %v1899_v24 = vpop.f32.mrf.mxu3  ;;  %v6245_v41 = vpack.c.bf16 %v2049_v37, %v2048_v48  ;;  %v4341_v58 = vld [vmem:[%s5353_s25 + $0x19a] sm:$0xff]  ;;  %v2169_v30 = vld [vmem:[#allocation2 + $0x90] sm:$0xff] }
 0x298   : > { %v1990_v2 = vpop.f32.mrf.mxu0  ;;  %v656_v53 = vpack.c.bf16 %v4342_v10, %v4341_v58  ;;  %v1729_v58 = vadd.f32 %v5905_v15, %v5916_v39 }
 0x299   : > { %v1900_v51 = vadd.f32 %v1899_v24, %v1811_v17 }
 0x29b   : > { %v1989_v8 = vadd.f32 %v1988_v50, %v1900_v51 }
 0x29d   : > { %v2050_v7 = vmax.f32 %v1989_v8, 0.0 }
 0x29e   : > { %v1812_v48 = vpop.f32.mrf.mxu2  ;;  %v2170_v50 = vld [vmem:[#allocation2 + $0x98] sm:$0xff] }
 0x29f   : > { %2137 = vst [vmem:[#allocation2 + $0xa9] sm:$0xff] %v2050_v7  ;;  %v1813_v61 = vadd.f32 %v1812_v48, %v1724_v42  ;;  %v1901_v35 = vpop.f32.mrf.mxu3  ;;  %v6256_v63 = vpack.c.bf16 %v2170_v50, %v2169_v30  ;;  %v2222_v42 = vld [vmem:[#allocation2 + $0xa] sm:$0xff]  ;;  %v2447_v48 = vpack.c.bf16 %v2190_v40, %v2189_v54  ;;  %v2223_v54 = vld [vmem:[#allocation2 + $0x1a] sm:$0xff] }
 0x2a0   : > { %v1993_v52 = vpop.f32.mrf.mxu0 }
 0x2a1   : > { %v1902_v28 = vadd.f32 %v1901_v35, %v1813_v61  ;;  %3208 = vmatmul.bf16.gmra.mxu1 %v6256_v63 }
 0x2a3   : > { %v1991_v37 = vadd.f32 %v1990_v2, %v1902_v28  ;;  %1854 = vmatmul.bf16.gmra.mxu2 %v654_v43  ;;  %2032 = vmatmul.bf16.gmra.mxu0 %v656_v53  ;;  %v5031_v2 = vld [vmem:[%s7046_s3 + $0x118] sm:$0xff] }
 0x2a4   : > { %1943 = vmatmul.bf16.gmra.mxu3 %v655_v18  ;;  %3530 = vmatpush.bf16.msrb.mxu1 %v5031_v2 }
 0x2a5   : > { %v2051_v5 = vmax.f32 %v1991_v37, 0.0 }
 0x2a6   : > { %v1815_v20 = vpop.f32.mrf.mxu2 }
 0x2a7   : > { %2138 = vst [vmem:[#allocation2 + $0xb1] sm:$0xff] %v2051_v5  ;;  %v1816_v32 = vadd.f32 %v1815_v20, %v5911_v22  ;;  %v1904_v17 = vpop.f32.mrf.mxu3  ;;  %v6259_v24 = vpack.c.bf16 %v2051_v5, %v2050_v7  ;;  %v2221_v22 = vld [vmem:[#allocation2 + $0x2] sm:$0xff] }
 0x2a8   : > { %v1995_v21 = vpop.f32.mrf.mxu0  ;;  %v2448_v35 = vpack.c.bf16 %v2222_v42, %v2221_v22 }
 0x2a9   : > { %v1905_v51 = vadd.f32 %v1904_v17, %v1816_v32  ;;  %v6274_v17 = vpop.f32.mrf.mxu1 }
 0x2ab   : > { %v1994_v8 = vadd.f32 %v1993_v52, %v1905_v51  ;;  %v2171_v52 = vld [vmem:[#allocation2 + $0xa8] sm:$0xff] }
 0x2ad   : > { %v2052_v10 = vmax.f32 %v1994_v8, 0.0 }
 0x2ae   : > { %v1817_v7 = vpop.f32.mrf.mxu2  ;;  %v2172_v53 = vld [vmem:[#allocation2 + $0xb0] sm:$0xff] }
 0x2af   : > { %2139 = vst [vmem:[#allocation2 + $0xc1] sm:$0xff] %v2052_v10  ;;  %v1818_v49 = vadd.f32 %v1817_v7, %v1729_v58  ;;  %v1906_v25 = vpop.f32.mrf.mxu3  ;;  %v6268_v15 = vpack.c.bf16 %v2172_v53, %v2171_v52 }
 0x2b0   : > { %v1998_v61 = vpop.f32.mrf.mxu0 }
 0x2b1   : > { %v1907_v43 = vadd.f32 %v1906_v25, %v1818_v49  ;;  %3213 = vmatmul.bf16.gmra.mxu1 %v6268_v15  ;;  %v6280_v7 = vpop.f32.mrf.mxu1 }
 0x2b3   : > { %v1996_v18 = vadd.f32 %v1995_v21, %v1907_v43  ;;  %3267 = vmatmul.bf16.vlgmr.msrb.gmra.mxu2 %v2447_v48  ;;  %3445 = vmatmul.bf16.vlgmr.msrb.gmra.mxu0 %v6128_v9  ;;  %v1734_v9 = vadd.f32 %v5919_v59, %v5933_v56 }
 0x2b4   : > { %3356 = vmatmul.bf16.vlgmr.msrb.gmra.mxu3 %v2448_v35 }
 0x2b5   : > { %v2053_v28 = vmax.f32 %v1996_v18, 0.0  ;;  %v1739_v18 = vadd.f32 %v5936_v29, %v5947_v38 }
 0x2b6   : > { %v1820_v39 = vpop.f32.mrf.mxu2  ;;  %v2173_v49 = vld [vmem:[#allocation2 + $0xc0] sm:$0xff] }
 0x2b7   : > { %2140 = vst [vmem:[#allocation2 + $0xc9] sm:$0xff] %v2053_v28  ;;  %v1821_v50 = vadd.f32 %v1820_v39, %v5925_v46  ;;  %v1909_v37 = vpop.f32.mrf.mxu3  ;;  %v6271_v30 = vpack.c.bf16 %v2053_v28, %v2052_v10  ;;  %v2224_v46 = vld [vmem:[#allocation2 + $0x22] sm:$0xff] }
 0x2b8   : > { %v2000_v5 = vpop.f32.mrf.mxu0  ;;  %v2457_v22 = vpack.c.bf16 %v2224_v46, %v2223_v54 }
 0x2b9   : > { %v1910_v20 = vadd.f32 %v1909_v37, %v1821_v50  ;;  %v6293_v28 = vpop.f32.mrf.mxu1  ;;  %v2225_v37 = vld [vmem:[#allocation2 + $0x32] sm:$0xff] }
 0x2bb   : > { %v1999_v32 = vadd.f32 %v1998_v61, %v1910_v20 }
 0x2bd   : > { %v2054_v21 = vmax.f32 %v1999_v32, 0.0 }
 0x2be   : > { %v1822_v51 = vpop.f32.mrf.mxu2  ;;  %v2174_v10 = vld [vmem:[#allocation2 + $0xc8] sm:$0xff] }
 0x2bf   : > { %2141 = vst [vmem:[#allocation2 + $0xd9] sm:$0xff] %v2054_v21  ;;  %v1823_v2 = vadd.f32 %v1822_v51, %v1734_v9  ;;  %v1911_v8 = vpop.f32.mrf.mxu3  ;;  %v6282_v56 = vpack.c.bf16 %v2174_v10, %v2173_v49 }
 0x2c0   : > { %v2003_v40 = vpop.f32.mrf.mxu0 }
 0x2c1   : > { %v1912_v58 = vadd.f32 %v1911_v8, %v1823_v2  ;;  %3218 = vmatmul.bf16.gmra.mxu1 %v6282_v56 }
 0x2c3   : > { %v2001_v42 = vadd.f32 %v2000_v5, %v1912_v58  ;;  %3272 = vmatmul.bf16.gmra.mxu2 %v6109_v47  ;;  %3450 = vmatmul.bf16.gmra.mxu0 %v6147_v33  ;;  %v5030_v33 = vld [vmem:[%s7046_s3 + $0x110] sm:$0xff]  ;;  %v2226_v5 = vld [vmem:[#allocation2 + $0x3a] sm:$0xff] }
 0x2c4   : > { %3361 = vmatmul.bf16.gmra.mxu3 %v2457_v22  ;;  %3531 = vmatpush.bf16.msrb.mxu1 %v5030_v33 }
 0x2c5   : > { %v2055_v59 = vmax.f32 %v2001_v42, 0.0 }
 0x2c6   : > { %v1825_v25 = vpop.f32.mrf.mxu2  ;;  %v2175_v2 = vld [vmem:[#allocation2 + $0xd8] sm:$0xff] }
 0x2c7   : > { %2142 = vst [vmem:[#allocation2 + $0xe1] sm:$0xff] %v2055_v59  ;;  %v1826_v48 = vadd.f32 %v1825_v25, %v5942_v0  ;;  %v1914_v61 = vpop.f32.mrf.mxu3  ;;  %v6285_v35 = vpack.c.bf16 %v2055_v59, %v2054_v21  ;;  %v2466_v21 = vpack.c.bf16 %v2226_v5, %v2225_v37 }
 0x2c8   : > { %v2005_v43 = vpop.f32.mrf.mxu0 }
 0x2c9   : > { %v1915_v47 = vadd.f32 %v1914_v61, %v1826_v48  ;;  %v2227_v61 = vld [vmem:[#allocation2 + $0x4a] sm:$0xff] }
 0x2cb   : > { %v2004_v53 = vadd.f32 %v2003_v40, %v1915_v47 }
 0x2cd   : > { %v2056_v52 = vmax.f32 %v2004_v53, 0.0 }
 0x2ce   : > { %v1827_v0 = vpop.f32.mrf.mxu2  ;;  %v2176_v9 = vld [vmem:[#allocation2 + $0xe0] sm:$0xff]  ;;  %v6299_v8 = vpop.f32.mrf.mxu1 }
 0x2cf   : > { %2143 = vst [vmem:[#allocation2 + $0xf1] sm:$0xff] %v2056_v52  ;;  %v1828_v39 = vadd.f32 %v1827_v0, %v1739_v18  ;;  %v1916_v50 = vpop.f32.mrf.mxu3  ;;  %v6297_v38 = vpack.c.bf16 %v2176_v9, %v2175_v2  ;;  %v7053_v9 = vld [vmem:[#allocation6_spill] sm:$0xff] }
 0x2d0   : > { %v2008_v20 = vpop.f32.mrf.mxu0 }
 0x2d1   : > { %v1917_v32 = vadd.f32 %v1916_v50, %v1828_v39  ;;  %3223 = vmatmul.bf16.gmra.mxu1 %v6297_v38 }
 0x2d3   : > { %v2006_v51 = vadd.f32 %v2005_v43, %v1917_v32  ;;  %3277 = vmatmul.bf16.gmra.mxu2 %v6131_v34  ;;  %3455 = vmatmul.bf16.gmra.mxu0 %v6166_v1  ;;  %v1744_v1 = vadd.f32 %v5950_v27, %v5964_v60 }
 0x2d4   : > { %3366 = vmatmul.bf16.gmra.mxu3 %v2466_v21  ;;  %v1749_v21 = vadd.f32 %v7053_v9, %v5978_v57 }
 0x2d5   : > { %v2057_v29 = vmax.f32 %v2006_v51, 0.0 }
 0x2d6   : > { %v1830_v54 = vpop.f32.mrf.mxu2  ;;  %v6307_v49 = vpop.f32.mrf.mxu1 }
 0x2d7   : > { %2144 = vst [vmem:[#allocation2 + $0xf9] sm:$0xff] %v2057_v29  ;;  %v1831_v46 = vadd.f32 %v1830_v54, %v5956_v45  ;;  %v1919_v40 = vpop.f32.mrf.mxu3  ;;  %v6302_v58 = vpack.c.bf16 %v2057_v29, %v2056_v52  ;;  %v2228_v45 = vld [vmem:[#allocation2 + $0x52] sm:$0xff] }
 0x2d8   : > { %v2010_v10 = vpop.f32.mrf.mxu0  ;;  %v2475_v53 = vpack.c.bf16 %v2228_v45, %v2227_v61  ;;  %v2177_v52 = vld [vmem:[#allocation2 + $0xf0] sm:$0xff] }
 0x2d9   : > { %v1920_v34 = vadd.f32 %v1919_v40, %v1831_v46  ;;  %v2229_v46 = vld [vmem:[#allocation2 + $0x62] sm:$0xff]  ;;  %v2230_v40 = vld [vmem:[#allocation2 + $0x6a] sm:$0xff] }
 0x2db   : > { %v2009_v22 = vadd.f32 %v2008_v20, %v1920_v34 }
 0x2dd   : > { %v2058_v42 = vmax.f32 %v2009_v22, 0.0 }
 0x2de   : > { %v1832_v59 = vpop.f32.mrf.mxu2  ;;  %v2178_v33 = vld [vmem:[#allocation2 + $0xf8] sm:$0xff]  ;;  %v6313_v0 = vpop.f32.mrf.mxu1 }
 0x2df   : > { %2145 = vst [vmem:[#allocation2 + $0x109] sm:$0xff] %v2058_v42  ;;  %v1833_v25 = vadd.f32 %v1832_v59, %v1744_v1  ;;  %v1921_v48 = vpop.f32.mrf.mxu3  ;;  %v6311_v60 = vpack.c.bf16 %v2178_v33, %v2177_v52  ;;  %v2484_v1 = vpack.c.bf16 %v2230_v40, %v2229_v46 }
 0x2e0   : > { %v2013_v43 = vpop.f32.mrf.mxu0 }
 0x2e1   : > { %v1922_v47 = vadd.f32 %v1921_v48, %v1833_v25  ;;  %3228 = vmatmul.bf16.gmra.mxu1 %v6311_v60 }
 0x2e3   : > { %v2011_v18 = vadd.f32 %v2010_v10, %v1922_v47  ;;  %3282 = vmatmul.bf16.gmra.mxu2 %v6153_v14  ;;  %3460 = vmatmul.bf16.gmra.mxu0 %v6186_v36  ;;  %v5029_v36 = vld [vmem:[%s7046_s3 + $0x108] sm:$0xff] }
 0x2e4   : > { %3371 = vmatmul.bf16.gmra.mxu3 %v2475_v53  ;;  %3532 = vmatpush.bf16.msrb.mxu1 %v5029_v36 }
 0x2e5   : > { %v2059_v27 = vmax.f32 %v2011_v18, 0.0 }
 0x2e6   : > { %v1835_v39 = vpop.f32.mrf.mxu2  ;;  %v6324_v2 = vpop.f32.mrf.mxu1  ;;  %v2179_v59 = vld [vmem:[#allocation2 + $0x108] sm:$0xff] }
 0x2e7   : > { %2146 = vst [vmem:[#allocation2 + $0x111] sm:$0xff] %v2059_v27  ;;  %v1836_v50 = vadd.f32 %v1835_v39, %v5973_v6  ;;  %v1924_v37 = vpop.f32.mrf.mxu3  ;;  %v6316_v5 = vpack.c.bf16 %v2059_v27, %v2058_v42 }
 0x2e8   : > { %v2015_v20 = vpop.f32.mrf.mxu0 }
 0x2e9   : > { %v1925_v14 = vadd.f32 %v1924_v37, %v1836_v50 }
 0x2eb   : > { %v2014_v32 = vadd.f32 %v2013_v43, %v1925_v14 }
 0x2ed   : > { %v2060_v51 = vmax.f32 %v2014_v32, 0.0 }
 0x2ee   : > { %v1837_v6 = vpop.f32.mrf.mxu2  ;;  %v2180_v22 = vld [vmem:[#allocation2 + $0x110] sm:$0xff]  ;;  %v6330_v48 = vpop.f32.mrf.mxu1 }
 0x2ef   : > { %2147 = vst [vmem:[#allocation2 + $0x121] sm:$0xff] %v2060_v51  ;;  %v1838_v29 = vadd.f32 %v1837_v6, %v1749_v21  ;;  %v1926_v54 = vpop.f32.mrf.mxu3  ;;  %v6328_v25 = vpack.c.bf16 %v2180_v22, %v2179_v59 }
 0x2f0   : > { %v2018_v10 = vpop.f32.mrf.mxu0 }
 0x2f1   : > { %v1927_v34 = vadd.f32 %v1926_v54, %v1838_v29  ;;  %3233 = vmatmul.bf16.gmra.mxu1 %v6328_v25 }
 0x2f3   : > { %v2016_v42 = vadd.f32 %v2015_v20, %v1927_v34  ;;  %3287 = vmatmul.bf16.gmra.mxu2 %v6169_v62  ;;  %3465 = vmatmul.bf16.gmra.mxu0 %v6233_v26  ;;  %v7054_v26 = vld [vmem:[#allocation7_spill] sm:$0xff] }
 0x2f4   : > { %3376 = vmatmul.bf16.gmra.mxu3 %v2484_v1  ;;  %v1754_v18 = vadd.f32 %v7054_v26, %v5995_v3  ;;  %v2231_v20 = vld [vmem:[#allocation2 + $0x7a] sm:$0xff]  ;;  %v1759_v1 = vadd.f32 %v6000_v11, %v6008_v19 }
 0x2f5   : > { %v2061_v57 = vmax.f32 %v2016_v42, 0.0 }
 0x2f6   : > { %v1840_v61 = vpop.f32.mrf.mxu2  ;;  %v6338_v27 = vpop.f32.mrf.mxu1 }
 0x2f7   : > { %2148 = vst [vmem:[#allocation2 + $0x129] sm:$0xff] %v2061_v57  ;;  %v1841_v45 = vadd.f32 %v1840_v61, %v5987_v16  ;;  %v1929_v43 = vpop.f32.mrf.mxu3  ;;  %v6333_v47 = vpack.c.bf16 %v2061_v57, %v2060_v51  ;;  %v2232_v16 = vld [vmem:[#allocation2 + $0x82] sm:$0xff] }
 0x2f8   : > { %v2020_v33 = vpop.f32.mrf.mxu0  ;;  %v2493_v9 = vpack.c.bf16 %v2232_v16, %v2231_v20  ;;  %v2181_v51 = vld [vmem:[#allocation2 + $0x120] sm:$0xff] }
 0x2f9   : > { %v1930_v62 = vadd.f32 %v1929_v43, %v1841_v45  ;;  %v2233_v45 = vld [vmem:[#allocation2 + $0x92] sm:$0xff]  ;;  %v2234_v43 = vld [vmem:[#allocation2 + $0x9a] sm:$0xff] }
 0x2fa   : > { %v2502_v26 = vpack.c.bf16 %v2234_v43, %v2233_v45  ;;  %v5059_v43 = vld [vmem:[%s7046_s3 + $0x1f8] sm:$0xff] }
 0x2fb   : > { %v2019_v53 = vadd.f32 %v2018_v10, %v1930_v62  ;;  %3793 = vmatpush.bf16.msra.mxu0 %v5059_v43 }
 0x2fd   : > { %v2062_v52 = vmax.f32 %v2019_v53, 0.0 }
 0x2fe   : > { %v1842_v39 = vpop.f32.mrf.mxu2  ;;  %v2182_v32 = vld [vmem:[#allocation2 + $0x128] sm:$0xff]  ;;  %v6344_v29 = vpop.f32.mrf.mxu1 }
 0x2ff   : > { %2149 = vst [vmem:[#allocation2 + $0x139] sm:$0xff] %v2062_v52  ;;  %v1843_v50 = vadd.f32 %v1842_v39, %v1754_v18  ;;  %v1931_v37 = vpop.f32.mrf.mxu3  ;;  %v6342_v6 = vpack.c.bf16 %v2182_v32, %v2181_v51  ;;  %v1764_v32 = vadd.f32 %v6029_v44, %v6035_v31 }
 0x300   : > { %v2023_v14 = vpop.f32.mrf.mxu0 }
 0x301   : > { %v1932_v36 = vadd.f32 %v1931_v37, %v1843_v50  ;;  %3238 = vmatmul.bf16.gmra.mxu1 %v6342_v6 }
 0x303   : > { %v2021_v21 = vadd.f32 %v2020_v33, %v1932_v36  ;;  %3292 = vmatmul.bf16.gmra.mxu2 %v6192_v13  ;;  %3470 = vmatmul.bf16.gmra.mxu0 %v6256_v63  ;;  %v5028_v63 = vld [vmem:[%s7046_s3 + $0x100] sm:$0xff] }
 0x304   : > { %3381 = vmatmul.bf16.gmra.mxu3 %v2493_v9  ;;  %3533 = vmatpush.bf16.msrb.mxu1 %v5028_v63 }
 0x305   : > { %v2063_v3 = vmax.f32 %v2021_v21, 0.0 }
 0x306   : > { %v1845_v54 = vpop.f32.mrf.mxu2  ;;  %v6355_v59 = vpop.f32.mrf.mxu1 }
 0x307   : > { %2150 = vst [vmem:[#allocation2 + $0x141] sm:$0xff] %v2063_v3  ;;  %v1846_v46 = vadd.f32 %v1845_v54, %v6002_v4  ;;  %v1934_v40 = vpop.f32.mrf.mxu3  ;;  %v6347_v10 = vpack.c.bf16 %v2063_v3, %v2062_v52  ;;  %v2183_v52 = vld [vmem:[#allocation2 + $0x138] sm:$0xff]  ;;  %v2235_v54 = vld [vmem:[#allocation2 + $0xaa] sm:$0xff] }
 0x308   : > { %v2025_v34 = vpop.f32.mrf.mxu0 }
 0x309   : > { %v1935_v13 = vadd.f32 %v1934_v40, %v1846_v46  ;;  %v2236_v46 = vld [vmem:[#allocation2 + $0xb2] sm:$0xff] }
 0x30a   : > { %v5051_v40 = vld [vmem:[%s7046_s3 + $0x1b8] sm:$0xff] }
 0x30b   : > { %v2024_v22 = vadd.f32 %v2023_v14, %v1935_v13  ;;  %3704 = vmatpush.bf16.msra.mxu3 %v5051_v40 }
 0x30d   : > { %v2064_v42 = vmax.f32 %v2024_v22, 0.0  ;;  %v2511_v22 = vpack.c.bf16 %v2236_v46, %v2235_v54 }
 0x30e   : > { %v1847_v4 = vpop.f32.mrf.mxu2  ;;  %v2184_v53 = vld [vmem:[#allocation2 + $0x140] sm:$0xff]  ;;  %v6361_v39 = vpop.f32.mrf.mxu1 }
 0x30f   : > { %2151 = vst [vmem:[#allocation2 + $0x151] sm:$0xff] %v2064_v42  ;;  %v1848_v57 = vadd.f32 %v1847_v4, %v1759_v1  ;;  %v1936_v61 = vpop.f32.mrf.mxu3  ;;  %v6359_v19 = vpack.c.bf16 %v2184_v53, %v2183_v52 }
 0x310   : > { %v2028_v33 = vpop.f32.mrf.mxu0 }
 0x311   : > { %v1937_v62 = vadd.f32 %v1936_v61, %v1848_v57  ;;  %3243 = vmatmul.bf16.gmra.mxu1 %v6359_v19 }
 0x313   : > { %v2026_v18 = vadd.f32 %v2025_v34, %v1937_v62  ;;  %3297 = vmatmul.bf16.gmra.mxu2 %v6245_v41  ;;  %3475 = vmatmul.bf16.gmra.mxu0 %v6268_v15  ;;  %v5043_v15 = vld [vmem:[%s7046_s3 + $0x178] sm:$0xff] }
 0x314   : > { %3386 = vmatmul.bf16.gmra.mxu3 %v2502_v26  ;;  %3615 = vmatpush.bf16.msra.mxu2 %v5043_v15  ;;  %v5067_v62 = vld [vmem:[%s7046_s3 + $0x238] sm:$0xff] }
 0x315   : > { %v2065_v11 = vmax.f32 %v2026_v18, 0.0  ;;  %3882 = vmatpush.bf16.msra.mxu1 %v5067_v62 }
 0x316   : > { %v1850_v50 = vpop.f32.mrf.mxu2  ;;  %v6372_v21 = vpop.f32.mrf.mxu1  ;;  %v2185_v44 = vld [vmem:[#allocation2 + $0x150] sm:$0xff] }
 0x317   : > { %2152 = vst [vmem:[#allocation2 + $0x159] sm:$0xff] %v2065_v11  ;;  %v1851_v37 = vadd.f32 %v1850_v50, %v6021_v55  ;;  %v1939_v20 = vpop.f32.mrf.mxu3  ;;  %v6364_v16 = vpack.c.bf16 %v2065_v11, %v2064_v42 }
 0x318   : > { %v2030_v14 = vpop.f32.mrf.mxu0 }
 0x319   : > { %v1940_v41 = vadd.f32 %v1939_v20, %v1851_v37  ;;  %v2237_v37 = vld [vmem:[#allocation2 + $0xc2] sm:$0xff]  ;;  %v2238_v20 = vld [vmem:[#allocation2 + $0xca] sm:$0xff] }
 0x31b   : > { %v2029_v36 = vadd.f32 %v2028_v33, %v1940_v41  ;;  %v6400_v41 = vld [vmem:[%s7047_s4] ss:$0 sm:$0xff] }
 0x31c   : > { %v3185_v62 = vadd.f32 %v6400_v41, %v6299_v8 }
 0x31d   : > { %v2066_v9 = vmax.f32 %v2029_v36, 0.0 }
 0x31e   : > { %v1852_v55 = vpop.f32.mrf.mxu2  ;;  %v2186_v63 = vld [vmem:[#allocation2 + $0x158] sm:$0xff]  ;;  %v6381_v4 = vpop.f32.mrf.mxu1 }
 0x31f   : > { %2153 = vst [vmem:[#allocation2 + $0x169] sm:$0xff] %v2066_v9  ;;  %v1853_v51 = vadd.f32 %v1852_v55, %v1764_v32  ;;  %v1941_v3 = vpop.f32.mrf.mxu3  ;;  %v6379_v42 = vpack.c.bf16 %v2186_v63, %v2185_v44  ;;  %v2520_v32 = vpack.c.bf16 %v2238_v20, %v2237_v37  ;;  %v5066_v20 = vld [vmem:[%s7046_s3 + $0x230] sm:$0xff] }
 0x320   : > { %v2033_v34 = vpop.f32.mrf.mxu0  ;;  %3883 = vmatpush.bf16.msra.mxu1 %v5066_v20 }
 0x321   : > { %v1942_v13 = vadd.f32 %v1941_v3, %v1853_v51  ;;  %3248 = vmatmul.bf16.gmra.mxu1 %v6379_v42 }
 0x323   : > { %v2031_v1 = vadd.f32 %v2030_v14, %v1942_v13  ;;  %3302 = vmatmul.bf16.gmra.mxu2 %v6259_v24  ;;  %3480 = vmatmul.bf16.gmra.mxu0 %v6282_v56 }
 0x324   : > { %3391 = vmatmul.bf16.gmra.mxu3 %v2511_v22 }
 0x325   : > { %v2067_v31 = vmax.f32 %v2031_v1, 0.0 }
 0x326   : > { %v1855_v57 = vpop.f32.mrf.mxu2  ;;  %v6395_v18 = vpop.f32.mrf.mxu1 }
 0x327   : > { %2154 = vst [vmem:[#allocation2 + $0x171] sm:$0xff] %v2067_v31  ;;  %v1856_v61 = vadd.f32 %v1855_v57, %v6048_v12  ;;  %v1944_v45 = vpop.f32.mrf.mxu3  ;;  %v6387_v33 = vpack.c.bf16 %v2067_v31, %v2066_v9  ;;  %v1769_v12 = vadd.f32 %v6274_v17, %v6068_v23  ;;  %v2187_v23 = vld [vmem:[#allocation2 + $0x168] sm:$0xff]  ;;  %v3180_v17 = vadd.f32 %v6400_v41, %v6280_v7  ;;  %v2239_v31 = vld [vmem:[#allocation2 + $0xda] sm:$0xff] }
 0x328   : > { %v2035_v24 = vpop.f32.mrf.mxu0  ;;  %v3182_v7 = vadd.f32 %v6400_v41, %v6293_v28  ;;  %v2240_v57 = vld [vmem:[#allocation2 + $0xe2] sm:$0xff] }
 0x329   : > { %v1945_v56 = vadd.f32 %v1944_v45, %v1856_v61  ;;  %v5050_v61 = vld [vmem:[%s7046_s3 + $0x1b0] sm:$0xff] }
 0x32a   : > { %3705 = vmatpush.bf16.msra.mxu3 %v5050_v61 }
 0x32b   : > { %v2034_v53 = vadd.f32 %v2033_v34, %v1945_v56  ;;  %v2286_v56 = vld [vmem:[#allocation2 + $0x21] sm:$0xff] }
 0x32d   : > { %v2068_v26 = vmax.f32 %v2034_v53, 0.0 }
 0x32e   : > { %v1857_v52 = vpop.f32.mrf.mxu2  ;;  %v2188_v36 = vld [vmem:[#allocation2 + $0x170] sm:$0xff]  ;;  %v6408_v3 = vpop.f32.mrf.mxu1 }
 0x32f   : > { %2155 = vst [vmem:[#allocation2 + $0x181] sm:$0xff] %v2068_v26  ;;  %v1858_v11 = vadd.f32 %v1857_v52, %v1769_v12  ;;  %v1946_v50 = vpop.f32.mrf.mxu3  ;;  %v6406_v51 = vpack.c.bf16 %v2188_v36, %v2187_v23  ;;  %v2285_v12 = vld [vmem:[#allocation2 + $0x19] sm:$0xff] }
 0x330   : > { %v3446_v14 = vpop.f32.mrf.mxu0  ;;  %v2450_v52 = vpack.c.bf16 %v2286_v56, %v2285_v12  ;;  %v2241_v23 = vld [vmem:[#allocation2 + $0xf2] sm:$0xff]  ;;  %v2243_v56 = vld [vmem:[#allocation2 + $0x10a] sm:$0xff] }
 0x331   : > { %v1947_v15 = vadd.f32 %v1946_v50, %v1858_v11  ;;  %3253 = vmatmul.bf16.gmra.mxu1 %v6406_v51  ;;  %v5049_v12 = vld [vmem:[%s7046_s3 + $0x1a8] sm:$0xff] }
 0x332   : > { %3706 = vmatpush.bf16.msra.mxu3 %v5049_v12 }
 0x333   : > { %v2036_v9 = vadd.f32 %v2035_v24, %v1947_v15  ;;  %3307 = vmatmul.bf16.gmra.mxu2 %v6271_v30  ;;  %3485 = vmatmul.bf16.gmra.mxu0 %v6297_v38  ;;  %v5042_v38 = vld [vmem:[%s7046_s3 + $0x170] sm:$0xff]  ;;  %v2529_v24 = vpack.c.bf16 %v2240_v57, %v2239_v31 }
 0x334   : > { %3396 = vmatmul.bf16.gmra.mxu3 %v2520_v32  ;;  %3616 = vmatpush.bf16.msra.mxu2 %v5042_v38  ;;  %v2287_v38 = vld [vmem:[#allocation2 + $0x31] sm:$0xff] }
 0x335   : > { %v2069_v55 = vmax.f32 %v2036_v9, 0.0 }
 0x336   : > { %v3268_v54 = vpop.f32.mrf.mxu2  ;;  %v6418_v63 = vpop.f32.mrf.mxu1 }
 0x337   : > { %2156 = vst [vmem:[#allocation2 + $0x189] sm:$0xff] %v2069_v55  ;;  %v3269_v46 = vadd.f32 %v3268_v54, %v3180_v17  ;;  %v3357_v40 = vpop.f32.mrf.mxu3  ;;  %v2242_v17 = vld [vmem:[#allocation2 + $0xfa] sm:$0xff] }
 0x338   : > { %v3448_v34 = vpop.f32.mrf.mxu0 }
 0x339   : > { %v3358_v30 = vadd.f32 %v3357_v40, %v3269_v46  ;;  %v2538_v46 = vpack.c.bf16 %v2242_v17, %v2241_v23  ;;  %v3197_v17 = vadd.f32 %v6400_v41, %v6338_v27  ;;  %v3200_v27 = vadd.f32 %v6400_v41, %v6344_v29 }
 0x33a   : > { %v3202_v29 = vadd.f32 %v6400_v41, %v6355_v59 }
 0x33b   : > { %v6414_v13 = vadd.f32 %v3446_v14, %v3358_v30  ;;  %v3187_v14 = vadd.f32 %v6400_v41, %v6307_v49  ;;  %v3190_v49 = vadd.f32 %v6400_v41, %v6313_v0  ;;  %v3192_v0 = vadd.f32 %v6400_v41, %v6324_v2 }
 0x33e   : > { %v3270_v22 = vpop.f32.mrf.mxu2  ;;  %v6429_v53 = vpop.f32.mrf.mxu1 }
 0x33f   : > { %v3271_v1 = vadd.f32 %v3270_v22, %v3182_v7  ;;  %v3359_v44 = vpop.f32.mrf.mxu3 }
 0x340   : > { %v3451_v45 = vpop.f32.mrf.mxu0 }
 0x341   : > { %v3360_v43 = vadd.f32 %v3359_v44, %v3271_v1  ;;  %3534 = vmatmul.bf16.vlgmr.msrb.gmra.mxu1 %v2450_v52 }
 0x343   : > { %3312 = vmatmul.bf16.gmra.mxu2 %v6285_v35  ;;  %3490 = vmatmul.bf16.gmra.mxu0 %v6311_v60  ;;  %v6425_v28 = vadd.f32 %v3448_v34, %v3360_v43  ;;  %v5058_v35 = vld [vmem:[%s7046_s3 + $0x1f0] sm:$0xff]  ;;  %v2288_v34 = vld [vmem:[#allocation2 + $0x39] sm:$0xff] }
 0x344   : > { %3401 = vmatmul.bf16.gmra.mxu3 %v2529_v24  ;;  %3794 = vmatpush.bf16.msra.mxu0 %v5058_v35  ;;  %v6451_v22 = vpack.c.bf16 %v2288_v34, %v2287_v38  ;;  %v3195_v35 = vadd.f32 %v6400_v41, %v6330_v48  ;;  %v5065_v48 = vld [vmem:[%s7046_s3 + $0x228] sm:$0xff] }
 0x345   : > { %3884 = vmatpush.bf16.msra.mxu1 %v5065_v48  ;;  %v2246_v38 = vld [vmem:[#allocation2 + $0x12a] sm:$0xff] }
 0x346   : > { %v3273_v26 = vpop.f32.mrf.mxu2  ;;  %v6441_v15 = vpop.f32.mrf.mxu1 }
 0x347   : > { %v3274_v11 = vadd.f32 %v3273_v26, %v3185_v62  ;;  %v3362_v50 = vpop.f32.mrf.mxu3  ;;  %v2244_v62 = vld [vmem:[#allocation2 + $0x112] sm:$0xff] }
 0x348   : > { %v3453_v37 = vpop.f32.mrf.mxu0 }
 0x349   : > { %v3363_v60 = vadd.f32 %v3362_v50, %v3274_v11  ;;  %v2547_v11 = vpack.c.bf16 %v2244_v62, %v2243_v56  ;;  %v2290_v50 = vld [vmem:[#allocation2 + $0x51] sm:$0xff] }
 0x34b   : > { %v6437_v8 = vadd.f32 %v3451_v45, %v3363_v60  ;;  %v2289_v60 = vld [vmem:[#allocation2 + $0x49] sm:$0xff] }
 0x34e   : > { %v3275_v36 = vpop.f32.mrf.mxu2  ;;  %v6449_v30 = vpop.f32.mrf.mxu1 }
 0x34f   : > { %v3276_v32 = vadd.f32 %v3275_v36, %v3187_v14  ;;  %v3364_v9 = vpop.f32.mrf.mxu3  ;;  %v6474_v14 = vpack.c.bf16 %v2290_v50, %v2289_v60  ;;  %v2248_v60 = vld [vmem:[#allocation2 + $0x142] sm:$0xff] }
 0x350   : > { %v3456_v55 = vpop.f32.mrf.mxu0 }
 0x351   : > { %v3365_v54 = vadd.f32 %v3364_v9, %v3276_v32  ;;  %3539 = vmatmul.bf16.gmra.mxu1 %v6451_v22 }
 0x353   : > { %3317 = vmatmul.bf16.gmra.mxu2 %v6302_v58  ;;  %3495 = vmatmul.bf16.gmra.mxu0 %v6328_v25  ;;  %v6445_v40 = vadd.f32 %v3453_v37, %v3365_v54  ;;  %v5041_v25 = vld [vmem:[%s7046_s3 + $0x168] sm:$0xff] }
 0x354   : > { %3406 = vmatmul.bf16.gmra.mxu3 %v2538_v46  ;;  %3617 = vmatpush.bf16.msra.mxu2 %v5041_v25 }
 0x356   : > { %v3278_v7 = vpop.f32.mrf.mxu2  ;;  %v6461_v61 = vpop.f32.mrf.mxu1 }
 0x357   : > { %v3279_v1 = vadd.f32 %v3278_v7, %v3190_v49  ;;  %v3367_v44 = vpop.f32.mrf.mxu3  ;;  %v2245_v49 = vld [vmem:[#allocation2 + $0x122] sm:$0xff] }
 0x358   : > { %v3458_v31 = vpop.f32.mrf.mxu0 }
 0x359   : > { %v3368_v58 = vadd.f32 %v3367_v44, %v3279_v1  ;;  %v2556_v44 = vpack.c.bf16 %v2246_v38, %v2245_v49 }
 0x35b   : > { %v6457_v57 = vadd.f32 %v3456_v55, %v3368_v58  ;;  %v2292_v58 = vld [vmem:[#allocation2 + $0x69] sm:$0xff] }
 0x35e   : > { %v3280_v45 = vpop.f32.mrf.mxu2  ;;  %v6472_v37 = vpop.f32.mrf.mxu1 }
 0x35f   : > { %v3281_v43 = vadd.f32 %v3280_v45, %v3192_v0  ;;  %v3369_v24 = vpop.f32.mrf.mxu3  ;;  %v2291_v0 = vld [vmem:[#allocation2 + $0x61] sm:$0xff] }
 0x360   : > { %v3461_v26 = vpop.f32.mrf.mxu0 }
 0x361   : > { %v3370_v52 = vadd.f32 %v3369_v24, %v3281_v43  ;;  %3544 = vmatmul.bf16.gmra.mxu1 %v6474_v14  ;;  %v6497_v43 = vpack.c.bf16 %v2292_v58, %v2291_v0 }
 0x363   : > { %3322 = vmatmul.bf16.gmra.mxu2 %v6316_v5  ;;  %3500 = vmatmul.bf16.gmra.mxu0 %v6342_v6  ;;  %v6468_v2 = vadd.f32 %v3458_v31, %v3370_v52  ;;  %v5057_v5 = vld [vmem:[%s7046_s3 + $0x1e8] sm:$0xff] }
 0x364   : > { %3411 = vmatmul.bf16.gmra.mxu3 %v2547_v11  ;;  %3795 = vmatpush.bf16.msra.mxu0 %v5057_v5 }
 0x366   : > { %v3283_v20 = vpop.f32.mrf.mxu2  ;;  %v6487_v55 = vpop.f32.mrf.mxu1 }
 0x367   : > { %v3284_v36 = vadd.f32 %v3283_v20, %v3195_v35  ;;  %v3372_v32 = vpop.f32.mrf.mxu3  ;;  %v2247_v35 = vld [vmem:[#allocation2 + $0x13a] sm:$0xff] }
 0x368   : > { %v3463_v6 = vpop.f32.mrf.mxu0  ;;  %v5048_v20 = vld [vmem:[%s7046_s3 + $0x1a0] sm:$0xff]  ;;  %v2565_v5 = vpack.c.bf16 %v2248_v60, %v2247_v35  ;;  %v5045_v35 = vld [vmem:[%s7046_s3 + $0x188] sm:$0xff] }
 0x369   : > { %v3373_v9 = vadd.f32 %v3372_v32, %v3284_v36  ;;  %3707 = vmatpush.bf16.msra.mxu3 %v5048_v20  ;;  %v5053_v20 = vld [vmem:[%s7046_s3 + $0x1c8] sm:$0xff] }
 0x36b   : > { %v6483_v23 = vadd.f32 %v3461_v26, %v3373_v9  ;;  %v3205_v9 = vadd.f32 %v6400_v41, %v6361_v39  ;;  %v5064_v39 = vld [vmem:[%s7046_s3 + $0x220] sm:$0xff] }
 0x36c   : > { %3885 = vmatpush.bf16.msra.mxu1 %v5064_v39  ;;  %v3212_v39 = vadd.f32 %v6400_v41, %v6395_v18  ;;  %v3215_v18 = vadd.f32 %v6400_v41, %v6408_v3  ;;  %v3217_v3 = vadd.f32 %v6400_v41, %v6418_v63  ;;  %v3220_v63 = vadd.f32 %v6400_v41, %v6429_v53 }
 0x36e   : > { %v3285_v54 = vpop.f32.mrf.mxu2  ;;  %v6495_v25 = vpop.f32.mrf.mxu1 }
 0x36f   : > { %v3286_v46 = vadd.f32 %v3285_v54, %v3197_v17  ;;  %v3374_v34 = vpop.f32.mrf.mxu3  ;;  %v2293_v17 = vld [vmem:[#allocation2 + $0x79] sm:$0xff] }
 0x370   : > { %v3466_v7 = vpop.f32.mrf.mxu0 }
 0x371   : > { %v3375_v1 = vadd.f32 %v3374_v34, %v3286_v46  ;;  %3549 = vmatmul.bf16.gmra.mxu1 %v6497_v43 }
 0x373   : > { %3327 = vmatmul.bf16.gmra.mxu2 %v6333_v47  ;;  %3505 = vmatmul.bf16.gmra.mxu0 %v6359_v19  ;;  %v6491_v31 = vadd.f32 %v3463_v6, %v3375_v1  ;;  %v5040_v19 = vld [vmem:[%s7046_s3 + $0x160] sm:$0xff]  ;;  %v5047_v1 = vld [vmem:[%s7046_s3 + $0x198] sm:$0xff] }
 0x374   : > { %3416 = vmatmul.bf16.gmra.mxu3 %v2556_v44  ;;  %3618 = vmatpush.bf16.msra.mxu2 %v5040_v19  ;;  %v2294_v6 = vld [vmem:[#allocation2 + $0x81] sm:$0xff]  ;;  %v5055_v44 = vld [vmem:[%s7046_s3 + $0x1d8] sm:$0xff]  ;;  %v5038_v19 = vld [vmem:[%s7046_s3 + $0x150] sm:$0xff] }
 0x375   : > { %v6520_v46 = vpack.c.bf16 %v2294_v6, %v2293_v17  ;;  %3708 = vmatpush.bf16.msra.mxu3 %v5047_v1 }
 0x376   : > { %v3288_v45 = vpop.f32.mrf.mxu2  ;;  %v6507_v26 = vpop.f32.mrf.mxu1 }
 0x377   : > { %v3289_v24 = vadd.f32 %v3288_v45, %v3200_v27  ;;  %v3377_v56 = vpop.f32.mrf.mxu3  ;;  %v3207_v27 = vadd.f32 %v6400_v41, %v6372_v21  ;;  %v5054_v21 = vld [vmem:[%s7046_s3 + $0x1d0] sm:$0xff] }
 0x378   : > { %v3468_v62 = vpop.f32.mrf.mxu0 }
 0x379   : > { %v3378_v47 = vadd.f32 %v3377_v56, %v3289_v24  ;;  %v2249_v24 = vld [vmem:[#allocation2 + $0x152] sm:$0xff]  ;;  %v2250_v56 = vld [vmem:[#allocation2 + $0x15a] sm:$0xff] }
 0x37a   : > { %v2574_v60 = vpack.c.bf16 %v2250_v56, %v2249_v24  ;;  %v2251_v24 = vld [vmem:[#allocation2 + $0x16a] sm:$0xff]  ;;  %v2252_v56 = vld [vmem:[#allocation2 + $0x172] sm:$0xff] }
 0x37b   : > { %v6503_v12 = vadd.f32 %v3466_v7, %v3378_v47  ;;  %v5039_v7 = vld [vmem:[%s7046_s3 + $0x158] sm:$0xff] }
 0x37c   : > { %3619 = vmatpush.bf16.msra.mxu2 %v5039_v7 }
 0x37e   : > { %v3290_v52 = vpop.f32.mrf.mxu2  ;;  %v6518_v48 = vpop.f32.mrf.mxu1 }
 0x37f   : > { %v3291_v11 = vadd.f32 %v3290_v52, %v3202_v29  ;;  %v3379_v50 = vpop.f32.mrf.mxu3  ;;  %v5046_v29 = vld [vmem:[%s7046_s3 + $0x190] sm:$0xff] }
 0x380   : > { %v3471_v36 = vpop.f32.mrf.mxu0  ;;  %3620 = vmatpush.bf16.msra.mxu2 %v5038_v19  ;;  %3709 = vmatpush.bf16.msra.mxu3 %v5046_v29 }
 0x381   : > { %v3380_v32 = vadd.f32 %v3379_v50, %v3291_v11  ;;  %3554 = vmatmul.bf16.gmra.mxu1 %v6520_v46  ;;  %v5037_v50 = vld [vmem:[%s7046_s3 + $0x148] sm:$0xff] }
 0x383   : > { %3332 = vmatmul.bf16.gmra.mxu2 %v6347_v10  ;;  %3510 = vmatmul.bf16.gmra.mxu0 %v6379_v42  ;;  %v6514_v59 = vadd.f32 %v3468_v62, %v3380_v32  ;;  %v5056_v10 = vld [vmem:[%s7046_s3 + $0x1e0] sm:$0xff] }
 0x384   : > { %3421 = vmatmul.bf16.gmra.mxu3 %v2565_v5  ;;  %3796 = vmatpush.bf16.msra.mxu0 %v5056_v10  ;;  %v2296_v32 = vld [vmem:[#allocation2 + $0x99] sm:$0xff]  ;;  %v3210_v5 = vadd.f32 %v6400_v41, %v6381_v4 }
 0x385   : > { %3621 = vmatpush.bf16.msra.mxu2 %v5037_v50  ;;  %3710 = vmatpush.bf16.msra.mxu3 %v5045_v35  ;;  %v5052_v4 = vld [vmem:[%s7046_s3 + $0x1c0] sm:$0xff]  ;;  %v2297_v35 = vld [vmem:[#allocation2 + $0xa9] sm:$0xff] }
 0x386   : > { %v3293_v54 = vpop.f32.mrf.mxu2  ;;  %v6542_v0 = vpop.f32.mrf.mxu1 }
 0x387   : > { %v3294_v34 = vadd.f32 %v3293_v54, %v3205_v9  ;;  %v3382_v49 = vpop.f32.mrf.mxu3  ;;  %v2295_v9 = vld [vmem:[#allocation2 + $0x91] sm:$0xff] }
 0x388   : > { %v3473_v42 = vpop.f32.mrf.mxu0  ;;  %3797 = vmatpush.bf16.msra.mxu0 %v5055_v44  ;;  %v6570_v54 = vpack.c.bf16 %v2296_v32, %v2295_v9  ;;  %v2284_v44 = vld [vmem:[#allocation2 + $0x188] sm:$0xff] }
 0x389   : > { %v3383_v38 = vadd.f32 %v3382_v49, %v3294_v34  ;;  %v5044_v49 = vld [vmem:[%s7046_s3 + $0x180] sm:$0xff] }
 0x38a   : > { %3711 = vmatpush.bf16.msra.mxu3 %v5044_v49  ;;  %v2317_v49 = vld [vmem:[#allocation2 + $0x1a] sm:$0xff] }
 0x38b   : > { %v6538_v58 = vadd.f32 %v3471_v36, %v3383_v38 }
 0x38c   : > { %3798 = vmatpush.bf16.msra.mxu0 %v5054_v21  ;;  %v2583_v21 = vpack.c.bf16 %v2252_v56, %v2251_v24 }
 0x38e   : > { %v3295_v45 = vpop.f32.mrf.mxu2  ;;  %v6568_v6 = vpop.f32.mrf.mxu1 }
 0x38f   : > { %v3296_v62 = vadd.f32 %v3295_v45, %v3207_v27  ;;  %v3384_v47 = vpop.f32.mrf.mxu3 }
 0x390   : > { %v3476_v52 = vpop.f32.mrf.mxu0  ;;  %3799 = vmatpush.bf16.msra.mxu0 %v5053_v20 }
 0x391   : > { %v3385_v11 = vadd.f32 %v3384_v47, %v3296_v62  ;;  %3559 = vmatmul.bf16.gmra.mxu1 %v6570_v54  ;;  %v2283_v47 = vld [vmem:[#allocation2 + $0x180] sm:$0xff] }
 0x392   : > { %v2584_v29 = vpack.c.bf16 %v2284_v44, %v2283_v47 }
 0x393   : > { %3337 = vmatmul.bf16.gmra.mxu2 %v6364_v16  ;;  %3515 = vmatmul.bf16.gmra.mxu0 %v6406_v51  ;;  %v6564_v36 = vadd.f32 %v3473_v42, %v3385_v11  ;;  %v5036_v51 = vld [vmem:[%s7046_s3 + $0x140] sm:$0xff]  ;;  %v2298_v11 = vld [vmem:[#allocation2 + $0xb1] sm:$0xff] }
 0x394   : > { %3426 = vmatmul.bf16.gmra.mxu3 %v2574_v60  ;;  %3622 = vmatpush.bf16.msra.mxu2 %v5036_v51  ;;  %v6595_v20 = vpack.c.bf16 %v2298_v11, %v2297_v35 }
 0x395   : > { %3800 = vmatpush.bf16.msra.mxu0 %v5052_v4  ;;  %v2318_v4 = vld [vmem:[#allocation2 + $0x22] sm:$0xff] }
 0x396   : > { %v3298_v17 = vpop.f32.mrf.mxu2  ;;  %v6586_v7 = vpop.f32.mrf.mxu1 }
 0x397   : > { %v3299_v34 = vadd.f32 %v3298_v17, %v3210_v5  ;;  %v3387_v16 = vpop.f32.mrf.mxu3  ;;  %v5063_v17 = vld [vmem:[%s7046_s3 + $0x218] sm:$0xff] }
 0x398   : > { %v3478_v10 = vpop.f32.mrf.mxu0  ;;  %3886 = vmatpush.bf16.msra.mxu1 %v5063_v17 }
 0x399   : > { %v3388_v42 = vadd.f32 %v3387_v16, %v3299_v34 }
 0x39b   : > { %v6582_v38 = vadd.f32 %v3476_v52, %v3388_v42 }
 0x39e   : > { %v3300_v1 = vpop.f32.mrf.mxu2  ;;  %v6593_v50 = vpop.f32.mrf.mxu1 }
 0x39f   : > { %v3301_v27 = vadd.f32 %v3300_v1, %v3212_v39  ;;  %v3389_v45 = vpop.f32.mrf.mxu3  ;;  %v2351_v39 = vld [vmem:[#allocation2 + $0x38] sm:$0xff] }
 0x3a0   : > { %v3481_v62 = vpop.f32.mrf.mxu0 }
 0x3a1   : > { %v3390_v19 = vadd.f32 %v3389_v45, %v3301_v27  ;;  %3564 = vmatmul.bf16.gmra.mxu1 %v6595_v20  ;;  %v2451_v27 = vpack.c.bf16 %v2318_v4, %v2317_v49  ;;  %v2350_v45 = vld [vmem:[#allocation2 + $0x30] sm:$0xff] }
 0x3a2   : > { %v2452_v24 = vpack.c.bf16 %v2351_v39, %v2350_v45  ;;  %v2301_v45 = vld [vmem:[#allocation2 + $0xd9] sm:$0xff] }
 0x3a3   : > { %3342 = vmatmul.bf16.gmra.mxu2 %v6387_v33  ;;  %3520 = vmatmul.bf16.gmra.mxu0 %v2584_v29  ;;  %v6589_v52 = vadd.f32 %v3478_v10, %v3390_v19  ;;  %v2299_v19 = vld [vmem:[#allocation2 + $0xc1] sm:$0xff] }
 0x3a4   : > { %3431 = vmatmul.bf16.gmra.mxu3 %v2583_v21 }
 0x3a6   : > { %v3303_v60 = vpop.f32.mrf.mxu2  ;;  %v6605_v16 = vpop.f32.mrf.mxu1 }
 0x3a7   : > { %v3304_v32 = vadd.f32 %v3303_v60, %v3215_v18  ;;  %v3392_v5 = vpop.f32.mrf.mxu3 }
 0x3a8   : > { %v3483_v9 = vpop.f32.mrf.mxu0 }
 0x3a9   : > { %v3393_v33 = vadd.f32 %v3392_v5, %v3304_v32  ;;  %v3222_v32 = vadd.f32 %v6400_v41, %v6441_v15  ;;  %v2302_v15 = vld [vmem:[#allocation2 + $0xe1] sm:$0xff] }
 0x3ab   : > { %v6601_v34 = vadd.f32 %v3481_v62, %v3393_v33  ;;  %v2300_v62 = vld [vmem:[#allocation2 + $0xc9] sm:$0xff]  ;;  %v2320_v33 = vld [vmem:[#allocation2 + $0x3a] sm:$0xff] }
 0x3ac   : > { %v6614_v21 = vpack.c.bf16 %v2300_v62, %v2299_v19 }
 0x3ae   : > { %v3305_v51 = vpop.f32.mrf.mxu2  ;;  %v6612_v47 = vpop.f32.mrf.mxu1 }
 0x3af   : > { %v3306_v10 = vadd.f32 %v3305_v51, %v3217_v3  ;;  %v3394_v42 = vpop.f32.mrf.mxu3  ;;  %v2353_v51 = vld [vmem:[#allocation2 + $0x50] sm:$0xff] }
 0x3b0   : > { %v3486_v1 = vpop.f32.mrf.mxu0 }
 0x3b1   : > { %v3395_v44 = vadd.f32 %v3394_v42, %v3306_v10  ;;  %3569 = vmatmul.bf16.gmra.mxu1 %v6614_v21  ;;  %v2352_v42 = vld [vmem:[#allocation2 + $0x48] sm:$0xff] }
 0x3b2   : > { %v2461_v39 = vpack.c.bf16 %v2353_v51, %v2352_v42 }
 0x3b3   : > { %3623 = vmatmul.bf16.vlgmr.msra.gmra.mxu2 %v2451_v27  ;;  %3801 = vmatmul.bf16.vlgmr.msra.gmra.mxu0 %v6451_v22  ;;  %v6608_v56 = vadd.f32 %v3483_v9, %v3395_v44  ;;  %v2319_v9 = vld [vmem:[#allocation2 + $0x32] sm:$0xff]  ;;  %v3225_v44 = vadd.f32 %v6400_v41, %v6449_v30 }
 0x3b4   : > { %3712 = vmatmul.bf16.vlgmr.msra.gmra.mxu3 %v2452_v24  ;;  %v6623_v10 = vpack.c.bf16 %v2320_v33, %v2319_v9 }
 0x3b6   : > { %v3308_v29 = vpop.f32.mrf.mxu2  ;;  %v6621_v5 = vpop.f32.mrf.mxu1 }
 0x3b7   : > { %v3309_v11 = vadd.f32 %v3308_v29, %v3220_v63  ;;  %v3397_v18 = vpop.f32.mrf.mxu3  ;;  %v6634_v63 = vpack.c.bf16 %v2302_v15, %v2301_v45  ;;  %v2304_v15 = vld [vmem:[#allocation2 + $0xf9] sm:$0xff] }
 0x3b8   : > { %v3488_v35 = vpop.f32.mrf.mxu0 }
 0x3b9   : > { %v3398_v60 = vadd.f32 %v3397_v18, %v3309_v11  ;;  %v5062_v18 = vld [vmem:[%s7046_s3 + $0x210] sm:$0xff] }
 0x3ba   : > { %3887 = vmatpush.bf16.msra.mxu1 %v5062_v18 }
 0x3bb   : > { %v6617_v22 = vadd.f32 %v3486_v1, %v3398_v60 }
 0x3be   : > { %v3310_v53 = vpop.f32.mrf.mxu2  ;;  %v3535_v27 = vpop.f32.mrf.mxu1 }
 0x3bf   : > { %v3311_v17 = vadd.f32 %v3310_v53, %v3222_v32  ;;  %v3399_v3 = vpop.f32.mrf.mxu3  ;;  %v6632_v62 = vadd.f32 %v3535_v27, %v6414_v13  ;;  %v2321_v32 = vld [vmem:[#allocation2 + $0x4a] sm:$0xff]  ;;  %v2322_v53 = vld [vmem:[#allocation2 + $0x52] sm:$0xff] }
 0x3c0   : > { %v3491_v49 = vpop.f32.mrf.mxu0  ;;  %v6647_v42 = vpack.c.bf16 %v2322_v53, %v2321_v32  ;;  %v2303_v27 = vld [vmem:[#allocation2 + $0xf1] sm:$0xff] }
 0x3c1   : > { %v3400_v4 = vadd.f32 %v3399_v3, %v3311_v17  ;;  %3574 = vmatmul.bf16.gmra.mxu1 %v6634_v63  ;;  %v2355_v3 = vld [vmem:[#allocation2 + $0x68] sm:$0xff] }
 0x3c2   : > { %v2324_v32 = vld [vmem:[#allocation2 + $0x6a] sm:$0xff] }
 0x3c3   : > { %3628 = vmatmul.bf16.gmra.mxu2 %v6623_v10  ;;  %3806 = vmatmul.bf16.gmra.mxu0 %v6474_v14  ;;  %v6627_v1 = vadd.f32 %v3488_v35, %v3400_v4  ;;  %v3227_v35 = vadd.f32 %v6400_v41, %v6461_v61 }
 0x3c4   : > { %3717 = vmatmul.bf16.gmra.mxu3 %v2461_v39  ;;  %v2354_v39 = vld [vmem:[#allocation2 + $0x60] sm:$0xff] }
 0x3c6   : > { %v3313_v24 = vpop.f32.mrf.mxu2  ;;  %v3537_v13 = vpop.f32.mrf.mxu1 }
 0x3c7   : > { %v3314_v19 = vadd.f32 %v3313_v24, %v3225_v44  ;;  %v3402_v29 = vpop.f32.mrf.mxu3  ;;  %v6645_v9 = vadd.f32 %v3537_v13, %v6425_v28  ;;  %v3230_v28 = vadd.f32 %v6400_v41, %v6472_v37 }
 0x3c8   : > { %v3493_v11 = vpop.f32.mrf.mxu0 }
 0x3c9   : > { %v3403_v14 = vadd.f32 %v3402_v29, %v3314_v19  ;;  %v6658_v19 = vpack.c.bf16 %v2304_v15, %v2303_v27  ;;  %v2306_v15 = vld [vmem:[#allocation2 + $0x111] sm:$0xff] }
 0x3cb   : > { %v6640_v30 = vadd.f32 %v3491_v49, %v3403_v14  ;;  %v2470_v49 = vpack.c.bf16 %v2355_v3, %v2354_v39 }
 0x3ce   : > { %v3315_v60 = vpop.f32.mrf.mxu2  ;;  %v3540_v44 = vpop.f32.mrf.mxu1 }
 0x3cf   : > { %v3316_v33 = vadd.f32 %v3315_v60, %v3227_v35  ;;  %v3404_v17 = vpop.f32.mrf.mxu3  ;;  %v6656_v24 = vadd.f32 %v3540_v44, %v6437_v8  ;;  %v3232_v35 = vadd.f32 %v6400_v41, %v6487_v55  ;;  %v2323_v60 = vld [vmem:[#allocation2 + $0x62] sm:$0xff] }
 0x3d0   : > { %v3496_v51 = vpop.f32.mrf.mxu0  ;;  %v6668_v39 = vpack.c.bf16 %v2324_v32, %v2323_v60  ;;  %v2305_v44 = vld [vmem:[#allocation2 + $0x109] sm:$0xff]  ;;  %v2325_v60 = vld [vmem:[#allocation2 + $0x7a] sm:$0xff] }
 0x3d1   : > { %v3405_v4 = vadd.f32 %v3404_v17, %v3316_v33  ;;  %3579 = vmatmul.bf16.gmra.mxu1 %v6658_v19  ;;  %v2357_v17 = vld [vmem:[#allocation2 + $0x80] sm:$0xff] }
 0x3d2   : > { %v2326_v32 = vld [vmem:[#allocation2 + $0x82] sm:$0xff] }
 0x3d3   : > { %3633 = vmatmul.bf16.gmra.mxu2 %v6647_v42  ;;  %3811 = vmatmul.bf16.gmra.mxu0 %v6497_v43  ;;  %v6651_v61 = vadd.f32 %v3493_v11, %v3405_v4 }
 0x3d4   : > { %3722 = vmatmul.bf16.gmra.mxu3 %v2470_v49  ;;  %v2356_v49 = vld [vmem:[#allocation2 + $0x78] sm:$0xff] }
 0x3d6   : > { %v3318_v45 = vpop.f32.mrf.mxu2  ;;  %v3542_v37 = vpop.f32.mrf.mxu1 }
 0x3d7   : > { %v3319_v29 = vadd.f32 %v3318_v45, %v3230_v28  ;;  %v3407_v14 = vpop.f32.mrf.mxu3  ;;  %v6666_v8 = vadd.f32 %v3542_v37, %v6445_v40  ;;  %v3235_v40 = vadd.f32 %v6400_v41, %v6495_v25  ;;  %v3237_v37 = vadd.f32 %v6400_v41, %v6507_v26 }
 0x3d8   : > { %v3498_v18 = vpop.f32.mrf.mxu0 }
 0x3d9   : > { %v3408_v43 = vadd.f32 %v3407_v14, %v3319_v29  ;;  %v6679_v29 = vpack.c.bf16 %v2306_v15, %v2305_v44  ;;  %v6692_v15 = vpack.c.bf16 %v2326_v32, %v2325_v60  ;;  %v2327_v32 = vld [vmem:[#allocation2 + $0x92] sm:$0xff] }
 0x3db   : > { %v6661_v11 = vadd.f32 %v3496_v51, %v3408_v43  ;;  %v2479_v51 = vpack.c.bf16 %v2357_v17, %v2356_v49 }
 0x3de   : > { %v3320_v13 = vpop.f32.mrf.mxu2  ;;  %v3545_v28 = vpop.f32.mrf.mxu1 }
 0x3df   : > { %v3321_v53 = vadd.f32 %v3320_v13, %v3232_v35  ;;  %v3409_v33 = vpop.f32.mrf.mxu3  ;;  %v6677_v45 = vadd.f32 %v3545_v28, %v6457_v57  ;;  %v2308_v28 = vld [vmem:[#allocation2 + $0x129] sm:$0xff] }
 0x3e0   : > { %v3501_v3 = vpop.f32.mrf.mxu0 }
 0x3e1   : > { %v3410_v4 = vadd.f32 %v3409_v33, %v3321_v53  ;;  %3584 = vmatmul.bf16.gmra.mxu1 %v6679_v29 }
 0x3e3   : > { %3638 = vmatmul.bf16.gmra.mxu2 %v6668_v39  ;;  %3816 = vmatmul.bf16.gmra.mxu0 %v6520_v46  ;;  %v6672_v55 = vadd.f32 %v3498_v18, %v3410_v4  ;;  %v5061_v18 = vld [vmem:[%s7046_s3 + $0x208] sm:$0xff]  ;;  %v2359_v4 = vld [vmem:[#allocation2 + $0x98] sm:$0xff] }
 0x3e4   : > { %3727 = vmatmul.bf16.gmra.mxu3 %v2479_v51  ;;  %3888 = vmatpush.bf16.msra.mxu1 %v5061_v18 }
 0x3e6   : > { %v3323_v27 = vpop.f32.mrf.mxu2  ;;  %v3547_v57 = vpop.f32.mrf.mxu1 }
 0x3e7   : > { %v3324_v14 = vadd.f32 %v3323_v27, %v3235_v40  ;;  %v3412_v43 = vpop.f32.mrf.mxu3  ;;  %v6690_v53 = vadd.f32 %v3547_v57, %v6468_v2  ;;  %v2358_v40 = vld [vmem:[#allocation2 + $0x90] sm:$0xff]  ;;  %v3240_v2 = vadd.f32 %v6400_v41, %v6518_v48  ;;  %v2307_v27 = vld [vmem:[#allocation2 + $0x121] sm:$0xff] }
 0x3e8   : > { %v3503_v35 = vpop.f32.mrf.mxu0 }
 0x3e9   : > { %v3413_v46 = vadd.f32 %v3412_v43, %v3324_v14 }
 0x3eb   : > { %v6685_v25 = vadd.f32 %v3501_v3, %v3413_v46  ;;  %v2488_v3 = vpack.c.bf16 %v2359_v4, %v2358_v40  ;;  %v6703_v46 = vpack.c.bf16 %v2308_v28, %v2307_v27 }
 0x3ee   : > { %v3325_v13 = vpop.f32.mrf.mxu2  ;;  %v3550_v44 = vpop.f32.mrf.mxu1 }
 0x3ef   : > { %v3326_v33 = vadd.f32 %v3325_v13, %v3237_v37  ;;  %v3414_v17 = vpop.f32.mrf.mxu3  ;;  %v6701_v43 = vadd.f32 %v3550_v44, %v6483_v23  ;;  %v3242_v13 = vadd.f32 %v6400_v41, %v6542_v0  ;;  %v2310_v44 = vld [vmem:[#allocation2 + $0x141] sm:$0xff] }
 0x3f0   : > { %v3506_v49 = vpop.f32.mrf.mxu0 }
 0x3f1   : > { %v3415_v51 = vadd.f32 %v3414_v17, %v3326_v33  ;;  %3589 = vmatmul.bf16.gmra.mxu1 %v6703_v46  ;;  %v2328_v33 = vld [vmem:[#allocation2 + $0x9a] sm:$0xff] }
 0x3f2   : > { %v6713_v28 = vpack.c.bf16 %v2328_v33, %v2327_v32  ;;  %v3247_v32 = vadd.f32 %v6400_v41, %v6586_v7 }
 0x3f3   : > { %3643 = vmatmul.bf16.gmra.mxu2 %v6692_v15  ;;  %3821 = vmatmul.bf16.gmra.mxu0 %v6570_v54  ;;  %v6696_v26 = vadd.f32 %v3503_v35, %v3415_v51  ;;  %v2361_v51 = vld [vmem:[#allocation2 + $0xb0] sm:$0xff] }
 0x3f4   : > { %3732 = vmatmul.bf16.gmra.mxu3 %v2488_v3 }
 0x3f6   : > { %v3328_v14 = vpop.f32.mrf.mxu2  ;;  %v3552_v48 = vpop.f32.mrf.mxu1 }
 0x3f7   : > { %v3329_v18 = vadd.f32 %v3328_v14, %v3240_v2  ;;  %v3417_v37 = vpop.f32.mrf.mxu3  ;;  %v6711_v23 = vadd.f32 %v3552_v48, %v6491_v31  ;;  %v2360_v2 = vld [vmem:[#allocation2 + $0xa8] sm:$0xff]  ;;  %v3245_v31 = vadd.f32 %v6400_v41, %v6568_v6  ;;  %v2309_v14 = vld [vmem:[#allocation2 + $0x139] sm:$0xff] }
 0x3f8   : > { %v3508_v57 = vpop.f32.mrf.mxu0 }
 0x3f9   : > { %v3418_v54 = vadd.f32 %v3417_v37, %v3329_v18 }
 0x3fb   : > { %v6706_v35 = vadd.f32 %v3506_v49, %v3418_v54  ;;  %v2497_v49 = vpack.c.bf16 %v2361_v51, %v2360_v2  ;;  %v6724_v54 = vpack.c.bf16 %v2310_v44, %v2309_v14  ;;  %v2362_v14 = vld [vmem:[#allocation2 + $0xc0] sm:$0xff] }
 0x3fe   : > { %v3330_v60 = vpop.f32.mrf.mxu2  ;;  %v3555_v27 = vpop.f32.mrf.mxu1 }
 0x3ff   : > { %v3331_v17 = vadd.f32 %v3330_v60, %v3242_v13  ;;  %v3419_v4 = vpop.f32.mrf.mxu3  ;;  %v6722_v37 = vadd.f32 %v3555_v27, %v6503_v12 }
 0x400   : > { %v3511_v40 = vpop.f32.mrf.mxu0 }
 0x401   : > { %v3420_v3 = vadd.f32 %v3419_v4, %v3331_v17  ;;  %3594 = vmatmul.bf16.gmra.mxu1 %v6724_v54  ;;  %v2329_v17 = vld [vmem:[#allocation2 + $0xaa] sm:$0xff]  ;;  %v2330_v4 = vld [vmem:[#allocation2 + $0xb2] sm:$0xff] }
 0x402   : > { %v6737_v27 = vpack.c.bf16 %v2330_v4, %v2329_v17  ;;  %v3252_v4 = vadd.f32 %v6400_v41, %v6605_v16 }
 0x403   : > { %3648 = vmatmul.bf16.gmra.mxu2 %v6713_v28  ;;  %3826 = vmatmul.bf16.gmra.mxu0 %v6595_v20  ;;  %v6717_v0 = vadd.f32 %v3508_v57, %v3420_v3  ;;  %v5060_v57 = vld [vmem:[%s7046_s3 + $0x200] sm:$0xff] }
 0x404   : > { %3737 = vmatmul.bf16.gmra.mxu3 %v2497_v49  ;;  %3889 = vmatpush.bf16.msra.mxu1 %v5060_v57  ;;  %v2363_v49 = vld [vmem:[#allocation2 + $0xc8] sm:$0xff] }
 0x406   : > { %v3333_v18 = vpop.f32.mrf.mxu2  ;;  %v3557_v12 = vpop.f32.mrf.mxu1 }
 0x407   : > { %v3334_v13 = vadd.f32 %v3333_v18, %v3245_v31  ;;  %v3422_v48 = vpop.f32.mrf.mxu3  ;;  %v6735_v51 = vadd.f32 %v3557_v12, %v6514_v59  ;;  %v2312_v18 = vld [vmem:[#allocation2 + $0x159] sm:$0xff]  ;;  %v3250_v59 = vadd.f32 %v6400_v41, %v6593_v50 }
 0x408   : > { %v3513_v60 = vpop.f32.mrf.mxu0 }
 0x409   : > { %v3423_v20 = vadd.f32 %v3422_v48, %v3334_v13  ;;  %v2311_v48 = vld [vmem:[#allocation2 + $0x151] sm:$0xff] }
 0x40b   : > { %v6730_v6 = vadd.f32 %v3511_v40, %v3423_v20  ;;  %v2506_v40 = vpack.c.bf16 %v2363_v49, %v2362_v14  ;;  %v2332_v49 = vld [vmem:[#allocation2 + $0xca] sm:$0xff] }
 0x40e   : > { %v3335_v33 = vpop.f32.mrf.mxu2  ;;  %v3560_v13 = vpop.f32.mrf.mxu1 }
 0x40f   : > { %v3336_v3 = vadd.f32 %v3335_v33, %v3247_v32  ;;  %v3424_v2 = vpop.f32.mrf.mxu3  ;;  %v6746_v57 = vadd.f32 %v3560_v13, %v6538_v58  ;;  %v6748_v32 = vpack.c.bf16 %v2312_v18, %v2311_v48  ;;  %v2364_v48 = vld [vmem:[#allocation2 + $0xd8] sm:$0xff] }
 0x410   : > { %v3516_v44 = vpop.f32.mrf.mxu0 }
 0x411   : > { %v3425_v31 = vadd.f32 %v3424_v2, %v3336_v3  ;;  %3599 = vmatmul.bf16.gmra.mxu1 %v6748_v32  ;;  %v2331_v2 = vld [vmem:[#allocation2 + $0xc2] sm:$0xff] }
 0x412   : > { %v6758_v13 = vpack.c.bf16 %v2332_v49, %v2331_v2 }
 0x413   : > { %3653 = vmatmul.bf16.gmra.mxu2 %v6737_v27  ;;  %3831 = vmatmul.bf16.gmra.mxu0 %v6614_v21  ;;  %v6741_v7 = vadd.f32 %v3513_v60, %v3425_v31 }
 0x414   : > { %3742 = vmatmul.bf16.gmra.mxu3 %v2506_v40  ;;  %v2365_v40 = vld [vmem:[#allocation2 + $0xe0] sm:$0xff] }
 0x416   : > { %v3338_v20 = vpop.f32.mrf.mxu2  ;;  %v3562_v50 = vpop.f32.mrf.mxu1 }
 0x417   : > { %v3339_v12 = vadd.f32 %v3338_v20, %v3250_v59  ;;  %v3427_v33 = vpop.f32.mrf.mxu3  ;;  %v6756_v58 = vadd.f32 %v3562_v50, %v6564_v36  ;;  %v2314_v20 = vld [vmem:[#allocation2 + $0x171] sm:$0xff]  ;;  %v3255_v36 = vadd.f32 %v6400_v41, %v6612_v47 }
 0x418   : > { %v3518_v17 = vpop.f32.mrf.mxu0 }
 0x419   : > { %v3428_v21 = vadd.f32 %v3427_v33, %v3339_v12  ;;  %v2313_v33 = vld [vmem:[#allocation2 + $0x169] sm:$0xff] }
 0x41a   : > { %v6769_v50 = vpack.c.bf16 %v2314_v20, %v2313_v33  ;;  %v2367_v20 = vld [vmem:[#allocation2 + $0xf8] sm:$0xff] }
 0x41b   : > { %v6751_v60 = vadd.f32 %v3516_v44, %v3428_v21  ;;  %v2515_v44 = vpack.c.bf16 %v2365_v40, %v2364_v48  ;;  %v2333_v40 = vld [vmem:[#allocation2 + $0xda] sm:$0xff] }
 0x41e   : > { %v3340_v3 = vpop.f32.mrf.mxu2  ;;  %v3565_v12 = vpop.f32.mrf.mxu1 }
 0x41f   : > { %v3341_v31 = vadd.f32 %v3340_v3, %v3252_v4  ;;  %v3429_v14 = vpop.f32.mrf.mxu3  ;;  %v6767_v4 = vadd.f32 %v3565_v12, %v6582_v38 }
 0x420   : > { %v3521_v18 = vpop.f32.mrf.mxu0 }
 0x421   : > { %v3430_v59 = vadd.f32 %v3429_v14, %v3341_v31  ;;  %3604 = vmatmul.bf16.gmra.mxu1 %v6769_v50  ;;  %v3257_v31 = vadd.f32 %v6400_v41, %v6621_v5  ;;  %v2316_v5 = vld [vmem:[#allocation2 + $0x189] sm:$0xff] }
 0x423   : > { %3658 = vmatmul.bf16.gmra.mxu2 %v6758_v13  ;;  %3836 = vmatmul.bf16.gmra.mxu0 %v6634_v63  ;;  %v6762_v16 = vadd.f32 %v3518_v17, %v3430_v59  ;;  %v2334_v59 = vld [vmem:[#allocation2 + $0xe2] sm:$0xff] }
 0x424   : > { %3747 = vmatmul.bf16.gmra.mxu3 %v2515_v44  ;;  %v6779_v33 = vpack.c.bf16 %v2334_v59, %v2333_v40 }
 0x426   : > { %v3343_v21 = vpop.f32.mrf.mxu2  ;;  %v3567_v47 = vpop.f32.mrf.mxu1 }
 0x427   : > { %v3344_v3 = vadd.f32 %v3343_v21, %v3255_v36  ;;  %v3432_v2 = vpop.f32.mrf.mxu3  ;;  %v6777_v38 = vadd.f32 %v3567_v47, %v6589_v52  ;;  %v2366_v21 = vld [vmem:[#allocation2 + $0xf0] sm:$0xff]  ;;  %v2315_v52 = vld [vmem:[#allocation2 + $0x181] sm:$0xff] }
 0x428   : > { %v3523_v49 = vpop.f32.mrf.mxu0 }
 0x429   : > { %v3433_v63 = vadd.f32 %v3432_v2, %v3344_v3 }
 0x42b   : > { %v6772_v17 = vadd.f32 %v3521_v18, %v3433_v63  ;;  %v2524_v18 = vpack.c.bf16 %v2367_v20, %v2366_v21  ;;  %v2336_v20 = vld [vmem:[#allocation2 + $0xfa] sm:$0xff] }
 0x42e   : > { %v3345_v14 = vpop.f32.mrf.mxu2  ;;  %v3570_v3 = vpop.f32.mrf.mxu1 }
 0x42f   : > { %v3346_v48 = vadd.f32 %v3345_v14, %v3257_v31  ;;  %v3434_v44 = vpop.f32.mrf.mxu3  ;;  %v6786_v63 = vadd.f32 %v3570_v3, %v6601_v34  ;;  %v6788_v31 = vpack.c.bf16 %v2316_v5, %v2315_v52  ;;  %v2368_v52 = vld [vmem:[#allocation2 + $0x108] sm:$0xff] }
 0x430   : > { %v3802_v36 = vpop.f32.mrf.mxu0 }
 0x431   : > { %v3435_v12 = vadd.f32 %v3434_v44, %v3346_v48  ;;  %3609 = vmatmul.bf16.gmra.mxu1 %v6788_v31  ;;  %v2335_v44 = vld [vmem:[#allocation2 + $0xf2] sm:$0xff] }
 0x432   : > { %v6798_v3 = vpack.c.bf16 %v2336_v20, %v2335_v44 }
 0x433   : > { %3663 = vmatmul.bf16.gmra.mxu2 %v6779_v33  ;;  %3841 = vmatmul.bf16.gmra.mxu0 %v6658_v19  ;;  %v6783_v41 = vadd.f32 %v3523_v49, %v3435_v12 }
 0x434   : > { %3752 = vmatmul.bf16.gmra.mxu3 %v2524_v18  ;;  %v2369_v18 = vld [vmem:[#allocation2 + $0x110] sm:$0xff] }
 0x436   : > { %v3624_v2 = vpop.f32.mrf.mxu2  ;;  %v3572_v49 = vpop.f32.mrf.mxu1 }
 0x437   : > { %v3625_v47 = vadd.f32 %v3624_v2, %v6632_v62  ;;  %v3713_v14 = vpop.f32.mrf.mxu3  ;;  %v6795_v12 = vadd.f32 %v3572_v49, %v6608_v56  ;;  %v2533_v2 = vpack.c.bf16 %v2369_v18, %v2368_v52 }
 0x438   : > { %v3804_v40 = vpop.f32.mrf.mxu0 }
 0x439   : > { %v3714_v59 = vadd.f32 %v3713_v14, %v3625_v47 }
 0x43b   : > { %v6792_v19 = vadd.f32 %v3802_v36, %v3714_v59 }
 0x43e   : > { %v3626_v48 = vpop.f32.mrf.mxu2  ;;  %v3575_v47 = vpop.f32.mrf.mxu1 }
 0x43f   : > { %v3627_v34 = vadd.f32 %v3626_v48, %v6645_v9  ;;  %v3715_v21 = vpop.f32.mrf.mxu3  ;;  %v6805_v14 = vadd.f32 %v3575_v47, %v6617_v22 }
 0x440   : > { %v3807_v5 = vpop.f32.mrf.mxu0 }
 0x441   : > { %v3716_v62 = vadd.f32 %v3715_v21, %v3627_v34  ;;  %3890 = vmatmul.bf16.vlgmr.msra.gmra.mxu1 %v6623_v10 }
 0x443   : > { %3668 = vmatmul.bf16.gmra.mxu2 %v6798_v3  ;;  %3846 = vmatmul.bf16.gmra.mxu0 %v6679_v29  ;;  %v6802_v36 = vadd.f32 %v3804_v40, %v3716_v62  ;;  %v2337_v29 = vld [vmem:[#allocation2 + $0x10a] sm:$0xff]  ;;  %v2338_v40 = vld [vmem:[#allocation2 + $0x112] sm:$0xff] }
 0x444   : > { %3757 = vmatmul.bf16.gmra.mxu3 %v2533_v2  ;;  %v2371_v62 = vld [vmem:[#allocation2 + $0x128] sm:$0xff]  ;;  %v2370_v2 = vld [vmem:[#allocation2 + $0x120] sm:$0xff] }
 0x445   : > { %v2542_v10 = vpack.c.bf16 %v2371_v62, %v2370_v2  ;;  %v2373_v62 = vld [vmem:[#allocation2 + $0x140] sm:$0xff]  ;;  %v2372_v2 = vld [vmem:[#allocation2 + $0x138] sm:$0xff] }
 0x446   : > { %v3629_v56 = vpop.f32.mrf.mxu2  ;;  %v3577_v20 = vpop.f32.mrf.mxu1 }
 0x447   : > { %v3630_v9 = vadd.f32 %v3629_v56, %v6656_v24  ;;  %v3718_v59 = vpop.f32.mrf.mxu3  ;;  %v6812_v21 = vadd.f32 %v3577_v20, %v6627_v1  ;;  %v6815_v24 = vpack.c.bf16 %v2338_v40, %v2337_v29 }
 0x448   : > { %v3809_v48 = vpop.f32.mrf.mxu0 }
 0x449   : > { %v3719_v49 = vadd.f32 %v3718_v59, %v3630_v9 }
 0x44b   : > { %v6809_v44 = vadd.f32 %v3807_v5, %v3719_v49 }
 0x44e   : > { %v3631_v34 = vpop.f32.mrf.mxu2  ;;  %v3580_v56 = vpop.f32.mrf.mxu1 }
 0x44f   : > { %v3632_v18 = vadd.f32 %v3631_v34, %v6666_v8  ;;  %v3720_v22 = vpop.f32.mrf.mxu3  ;;  %v6822_v9 = vadd.f32 %v3580_v56, %v6640_v30 }
 0x450   : > { %v3812_v47 = vpop.f32.mrf.mxu0 }
 0x451   : > { %v3721_v52 = vadd.f32 %v3720_v22, %v3632_v18  ;;  %3895 = vmatmul.bf16.gmra.mxu1 %v6647_v42  ;;  %v2551_v42 = vpack.c.bf16 %v2373_v62, %v2372_v2  ;;  %v2374_v62 = vld [vmem:[#allocation2 + $0x150] sm:$0xff] }
 0x453   : > { %3673 = vmatmul.bf16.gmra.mxu2 %v6815_v24  ;;  %3851 = vmatmul.bf16.gmra.mxu0 %v6703_v46  ;;  %v6819_v5 = vadd.f32 %v3809_v48, %v3721_v52  ;;  %v2339_v46 = vld [vmem:[#allocation2 + $0x122] sm:$0xff]  ;;  %v2340_v48 = vld [vmem:[#allocation2 + $0x12a] sm:$0xff] }
 0x454   : > { %3762 = vmatmul.bf16.gmra.mxu3 %v2542_v10 }
 0x456   : > { %v3634_v1 = vpop.f32.mrf.mxu2  ;;  %v3582_v29 = vpop.f32.mrf.mxu1 }
 0x457   : > { %v3635_v8 = vadd.f32 %v3634_v1, %v6677_v45  ;;  %v3723_v59 = vpop.f32.mrf.mxu3  ;;  %v6829_v18 = vadd.f32 %v3582_v29, %v6651_v61  ;;  %v6832_v45 = vpack.c.bf16 %v2340_v48, %v2339_v46 }
 0x458   : > { %v3814_v34 = vpop.f32.mrf.mxu0 }
 0x459   : > { %v3724_v49 = vadd.f32 %v3723_v59, %v3635_v8 }
 0x45b   : > { %v6826_v20 = vadd.f32 %v3812_v47, %v3724_v49 }
 0x45e   : > { %v3636_v40 = vpop.f32.mrf.mxu2  ;;  %v3585_v47 = vpop.f32.mrf.mxu1 }
 0x45f   : > { %v3637_v22 = vadd.f32 %v3636_v40, %v6690_v53  ;;  %v3725_v30 = vpop.f32.mrf.mxu3  ;;  %v6839_v61 = vadd.f32 %v3585_v47, %v6661_v11  ;;  %v2375_v11 = vld [vmem:[#allocation2 + $0x158] sm:$0xff] }
 0x460   : > { %v3817_v8 = vpop.f32.mrf.mxu0  ;;  %v2343_v47 = vld [vmem:[#allocation2 + $0x152] sm:$0xff] }
 0x461   : > { %v3726_v52 = vadd.f32 %v3725_v30, %v3637_v22  ;;  %3900 = vmatmul.bf16.gmra.mxu1 %v6668_v39  ;;  %v2560_v39 = vpack.c.bf16 %v2375_v11, %v2374_v62  ;;  %v2378_v11 = vld [vmem:[#allocation2 + $0x180] sm:$0xff] }
 0x462   : > { %v2347_v62 = vld [vmem:[#allocation2 + $0x182] sm:$0xff] }
 0x463   : > { %3678 = vmatmul.bf16.gmra.mxu2 %v6832_v45  ;;  %3856 = vmatmul.bf16.gmra.mxu0 %v6724_v54  ;;  %v6836_v10 = vadd.f32 %v3814_v34, %v3726_v52  ;;  %v2341_v54 = vld [vmem:[#allocation2 + $0x13a] sm:$0xff]  ;;  %v2342_v34 = vld [vmem:[#allocation2 + $0x142] sm:$0xff] }
 0x464   : > { %3767 = vmatmul.bf16.gmra.mxu3 %v2551_v42 }
 0x466   : > { %v3639_v56 = vpop.f32.mrf.mxu2  ;;  %v3587_v29 = vpop.f32.mrf.mxu1 }
 0x467   : > { %v3640_v53 = vadd.f32 %v3639_v56, %v6701_v43  ;;  %v3728_v1 = vpop.f32.mrf.mxu3  ;;  %v6846_v46 = vadd.f32 %v3587_v29, %v6672_v55  ;;  %v6849_v43 = vpack.c.bf16 %v2342_v34, %v2341_v54  ;;  %v2344_v56 = vld [vmem:[#allocation2 + $0x15a] sm:$0xff]  ;;  %v2379_v34 = vld [vmem:[#allocation2 + $0x188] sm:$0xff] }
 0x468   : > { %v3819_v52 = vpop.f32.mrf.mxu0 }
 0x469   : > { %v3729_v59 = vadd.f32 %v3728_v1, %v3640_v53  ;;  %v2377_v1 = vld [vmem:[#allocation2 + $0x170] sm:$0xff] }
 0x46b   : > { %v6843_v49 = vadd.f32 %v3817_v8, %v3729_v59  ;;  %v6862_v8 = vpack.c.bf16 %v2344_v56, %v2343_v47  ;;  %v2376_v59 = vld [vmem:[#allocation2 + $0x168] sm:$0xff] }
 0x46e   : > { %v3641_v40 = vpop.f32.mrf.mxu2  ;;  %v3590_v42 = vpop.f32.mrf.mxu1 }
 0x46f   : > { %v3642_v48 = vadd.f32 %v3641_v40, %v6711_v23  ;;  %v3730_v22 = vpop.f32.mrf.mxu3  ;;  %v6856_v55 = vadd.f32 %v3590_v42, %v6685_v25  ;;  %v2345_v40 = vld [vmem:[#allocation2 + $0x16a] sm:$0xff] }
 0x471   : > { %v3731_v30 = vadd.f32 %v3730_v22, %v3642_v48  ;;  %3905 = vmatmul.bf16.gmra.mxu1 %v6692_v15  ;;  %v2578_v22 = vpack.c.bf16 %v2379_v34, %v2378_v11 }
 0x473   : > { %3683 = vmatmul.bf16.gmra.mxu2 %v6849_v43  ;;  %3861 = vmatmul.bf16.gmra.mxu0 %v6748_v32  ;;  %v6853_v2 = vadd.f32 %v3819_v52, %v3731_v30  ;;  %v2569_v32 = vpack.c.bf16 %v2377_v1, %v2376_v59  ;;  %v2413_v30 = vld [vmem:[#allocation2 + $0x1a1] sm:$0xff]  ;;  %v2348_v52 = vld [vmem:[#allocation2 + $0x18a] sm:$0xff] }
 0x474   : > { %3772 = vmatmul.bf16.gmra.mxu3 %v2560_v39 }
 0x476   : > { %v3592_v23 = vpop.f32.mrf.mxu1 }
 0x477   : > { %v6860_v53 = vadd.f32 %v3592_v23, %v6696_v26  ;;  %v2346_v26 = vld [vmem:[#allocation2 + $0x172] sm:$0xff]  ;;  %v5130_v23 = vld [vmem:[#allocation2] sm:$0xff]  ;;  %v3733_v11 = vpop.f32.mrf.mxu3 }
 0x478   : > { %v6873_v48 = vpack.c.bf16 %v2346_v26, %v2345_v40  ;;  %v2587_v47 = vpack.c.bf16 %v5130_v23, %v5130_v23  ;;  %v3644_v40 = vpop.f32.mrf.mxu2  ;;  %v5132_v26 = vld [vmem:[%s5353_s25 + $0x21] sm:$0xff] }
 0x47e   : > { %v3595_v25 = vpop.f32.mrf.mxu1 }
 0x47f   : > { %v6867_v29 = vadd.f32 %v3595_v25, %v6706_v35 }
 0x481   : > { %3910 = vmatmul.bf16.gmra.mxu1 %v6713_v28  ;;  %v2412_v28 = vld [vmem:[#allocation2 + $0x199] sm:$0xff] }
 0x482   : > { %v2588_v42 = vpack.c.bf16 %v2413_v30, %v2412_v28  ;;  %v5133_v30 = vld [vmem:[%s5353_s25 + $0x31] sm:$0xff] }
 0x483   : > { %3688 = vmatmul.bf16.gmra.mxu2 %v6862_v8  ;;  %3866 = vmatmul.bf16.gmra.mxu0 %v6769_v50 }
 0x484   : > { %3777 = vmatmul.bf16.gmra.mxu3 %v2569_v32 }
 0x486   : > { %v3597_v15 = vpop.f32.mrf.mxu1 }
 0x487   : > { %v6871_v54 = vadd.f32 %v3597_v15, %v6717_v0  ;;  %v5131_v15 = vld [vmem:[%s5353_s25 + $0x19] sm:$0xff] }
 0x48e   : > { %v3600_v35 = vpop.f32.mrf.mxu1 }
 0x48f   : > { %v6878_v50 = vadd.f32 %v3600_v35, %v6730_v6 }
 0x491   : > { %3915 = vmatmul.bf16.gmra.mxu1 %v6737_v27 }
 0x493   : > { %3693 = vmatmul.bf16.gmra.mxu2 %v6873_v48  ;;  %3871 = vmatmul.bf16.gmra.mxu0 %v6788_v31  ;;  %v6884_v31 = vpack.c.bf16 %v2348_v52, %v2347_v62  ;;  %v3735_v52 = vpop.f32.mrf.mxu3 }
 0x494   : > { %3782 = vmatmul.bf16.gmra.mxu3 %v2578_v22  ;;  %v3822_v22 = vpop.f32.mrf.mxu0 }
 0x496   : > { %v3602_v0 = vpop.f32.mrf.mxu1 }
 0x497   : > { %v6882_v39 = vadd.f32 %v3602_v0, %v6741_v7 }
 0x49e   : > { %v3605_v6 = vpop.f32.mrf.mxu1 }
 0x49f   : > { %v6888_v27 = vadd.f32 %v3605_v6, %v6751_v60  ;;  %v5134_v6 = vld [vmem:[%s5353_s25 + $0x39] sm:$0xff] }
 0x4a1   : > { %3920 = vmatmul.bf16.gmra.mxu1 %v6758_v13 }
 0x4a3   : > { %3698 = vmatmul.bf16.gmra.mxu2 %v6884_v31  ;;  %3876 = vmatmul.bf16.gmra.mxu0 %v2588_v42  ;;  %v3824_v42 = vpop.f32.mrf.mxu0 }
 0x4a4   : > { %3787 = vmatmul.bf16.gmra.mxu3 %v2587_v47 }
 0x4a6   : > { %v3607_v7 = vpop.f32.mrf.mxu1 }
 0x4a7   : > { %v6892_v56 = vadd.f32 %v3607_v7, %v6762_v16 }
 0x4ae   : > { %v3610_v1 = vpop.f32.mrf.mxu1 }
 0x4af   : > { %v6895_v59 = vadd.f32 %v3610_v1, %v6772_v17 }
 0x4b1   : > { %3925 = vmatmul.bf16.gmra.mxu1 %v6779_v33 }
 0x4b6   : > { %v3612_v32 = vpop.f32.mrf.mxu1 }
 0x4b7   : > { %v6899_v25 = vadd.f32 %v3612_v32, %v6783_v41 }
 0x4be   : > { %v3891_v60 = vpop.f32.mrf.mxu1 }
 0x4bf   : > { %v3892_v13 = vadd.f32 %v3891_v60, %v6792_v19 }
 0x4c1   : > { %v3971_v16 = vadd.f32 %v5131_v15, %v3892_v13  ;;  %3930 = vmatmul.bf16.gmra.mxu1 %v6798_v3  ;;  %v3646_v3 = vpop.f32.mrf.mxu2  ;;  %v5135_v13 = vld [vmem:[%s5353_s25 + $0x49] sm:$0xff] }
 0x4c3   : > { %v4003_v17 = vmax.f32 %v3971_v16, 0.0 }
 0x4c5   : > { %4035 = vst [vmem:[%s6907_s17] sm:$0xff] %v4003_v17 }
 0x4c6   : > { %v3893_v33 = vpop.f32.mrf.mxu1 }
 0x4c7   : > { %v3894_v41 = vadd.f32 %v3893_v33, %v6802_v36 }
 0x4c9   : > { %v3972_v34 = vadd.f32 %v5132_v26, %v3894_v41  ;;  %v3649_v47 = vpop.f32.mrf.mxu2  ;;  %v5136_v26 = vld [vmem:[%s5353_s25 + $0x51] sm:$0xff] }
 0x4cb   : > { %v4004_v19 = vmax.f32 %v3972_v34, 0.0 }
 0x4cd   : > { %4036 = vst [vmem:[%s6907_s17 + $0x8] sm:$0xff] %v4004_v19 }
 0x4ce   : > { %v3896_v35 = vpop.f32.mrf.mxu1 }
 0x4cf   : > { %v3897_v28 = vadd.f32 %v3896_v35, %v6809_v44  ;;  %v3738_v44 = vpop.f32.mrf.mxu3 }
 0x4d1   : > { %v3973_v0 = vadd.f32 %v5133_v30, %v3897_v28  ;;  %3935 = vmatmul.bf16.gmra.mxu1 %v6815_v24  ;;  %v3827_v24 = vpop.f32.mrf.mxu0  ;;  %v3651_v16 = vpop.f32.mrf.mxu2 }
 0x4d3   : > { %v4005_v62 = vmax.f32 %v3973_v0, 0.0  ;;  %v5137_v0 = vld [vmem:[%s5353_s25 + $0x61] sm:$0xff] }
 0x4d5   : > { %4037 = vst [vmem:[%s6907_s17 + $0x10] sm:$0xff] %v4005_v62 }
 0x4d6   : > { %v3898_v36 = vpop.f32.mrf.mxu1 }
 0x4d7   : > { %v3899_v23 = vadd.f32 %v3898_v36, %v6819_v5  ;;  %v3740_v41 = vpop.f32.mrf.mxu3 }
 0x4d9   : > { %v3974_v7 = vadd.f32 %v5134_v6, %v3899_v23  ;;  %v3829_v19 = vpop.f32.mrf.mxu0 }
 0x4db   : > { %v4006_v1 = vmax.f32 %v3974_v7, 0.0 }
 0x4dd   : > { %4038 = vst [vmem:[%s6907_s17 + $0x18] sm:$0xff] %v4006_v1 }
 0x4de   : > { %v3901_v32 = vpop.f32.mrf.mxu1 }
 0x4df   : > { %v3902_v60 = vadd.f32 %v3901_v32, %v6826_v20  ;;  %v3654_v20 = vpop.f32.mrf.mxu2  ;;  %v3743_v62 = vpop.f32.mrf.mxu3 }
 0x4e1   : > { %v3975_v15 = vadd.f32 %v5135_v13, %v3902_v60  ;;  %3940 = vmatmul.bf16.gmra.mxu1 %v6832_v45  ;;  %v3832_v23 = vpop.f32.mrf.mxu0  ;;  %v5138_v60 = vld [vmem:[%s5353_s25 + $0x69] sm:$0xff] }
 0x4e3   : > { %v4007_v17 = vmax.f32 %v3975_v15, 0.0 }
 0x4e5   : > { %4039 = vst [vmem:[%s6907_s17 + $0x20] sm:$0xff] %v4007_v17  ;;  %v3647_v17 = vadd.f32 %v3646_v3, %v6735_v51 }
 0x4e6   : > { %v3903_v5 = vpop.f32.mrf.mxu1 }
 0x4e7   : > { %v3904_v33 = vadd.f32 %v3903_v5, %v6836_v10  ;;  %v3645_v10 = vadd.f32 %v3644_v40, %v6722_v37  ;;  %v3656_v6 = vpop.f32.mrf.mxu2  ;;  %v3745_v15 = vpop.f32.mrf.mxu3 }
 0x4e9   : > { %v3976_v34 = vadd.f32 %v5136_v26, %v3904_v33  ;;  %v3734_v32 = vadd.f32 %v3733_v11, %v3645_v10  ;;  %v3834_v33 = vpop.f32.mrf.mxu0  ;;  %v3736_v26 = vadd.f32 %v3735_v52, %v3647_v17  ;;  %v3650_v11 = vadd.f32 %v3649_v47, %v6746_v57 }
 0x4ea   : > { %v3655_v17 = vadd.f32 %v3654_v20, %v6767_v4 }
 0x4eb   : > { %v4008_v35 = vmax.f32 %v3976_v34, 0.0  ;;  %v5139_v34 = vld [vmem:[%s5353_s25 + $0x79] sm:$0xff]  ;;  %v3739_v3 = vadd.f32 %v3738_v44, %v3650_v11 }
 0x4ed   : > { %4040 = vst [vmem:[%s6907_s17 + $0x28] sm:$0xff] %v4008_v35 }
 0x4ee   : > { %v3906_v28 = vpop.f32.mrf.mxu1 }
 0x4ef   : > { %v3907_v30 = vadd.f32 %v3906_v28, %v6843_v49  ;;  %v3659_v40 = vpop.f32.mrf.mxu2  ;;  %v3825_v28 = vadd.f32 %v3824_v42, %v3736_v26 }
 0x4f1   : > { %v3977_v45 = vadd.f32 %v5137_v0, %v3907_v30  ;;  %3945 = vmatmul.bf16.gmra.mxu1 %v6849_v43  ;;  %v3823_v43 = vadd.f32 %v3822_v22, %v3734_v32  ;;  %v3748_v30 = vpop.f32.mrf.mxu3  ;;  %v3837_v0 = vpop.f32.mrf.mxu0  ;;  %v5141_v32 = vld [vmem:[%s5353_s25 + $0x91] sm:$0xff] }
 0x4f3   : > { %v4009_v36 = vmax.f32 %v3977_v45, 0.0  ;;  %v5140_v45 = vld [vmem:[%s5353_s25 + $0x81] sm:$0xff] }
 0x4f5   : > { %4041 = vst [vmem:[%s6907_s17 + $0x30] sm:$0xff] %v4009_v36 }
 0x4f6   : > { %v3908_v7 = vpop.f32.mrf.mxu1 }
 0x4f7   : > { %v3909_v1 = vadd.f32 %v3908_v7, %v6853_v2  ;;  %v3661_v10 = vpop.f32.mrf.mxu2  ;;  %v3652_v7 = vadd.f32 %v3651_v16, %v6756_v58  ;;  %v3744_v16 = vadd.f32 %v3743_v62, %v3655_v17 }
 0x4f9   : > { %v3978_v13 = vadd.f32 %v5138_v60, %v3909_v1  ;;  %v3750_v47 = vpop.f32.mrf.mxu3  ;;  %v3741_v42 = vadd.f32 %v3740_v41, %v3652_v7  ;;  %v3839_v44 = vpop.f32.mrf.mxu0 }
 0x4fb   : > { %v4010_v49 = vmax.f32 %v3978_v13, 0.0 }
 0x4fd   : > { %4042 = vst [vmem:[%s6907_s17 + $0x38] sm:$0xff] %v4010_v49 }
 0x4fe   : > { %v3911_v5 = vpop.f32.mrf.mxu1 }
 0x4ff   : > { %v3912_v37 = vadd.f32 %v3911_v5, %v3823_v43  ;;  %v3664_v49 = vpop.f32.mrf.mxu2  ;;  %v3830_v43 = vadd.f32 %v3829_v19, %v3741_v42  ;;  %v5142_v5 = vld [vmem:[%s5353_s25 + $0x99] sm:$0xff]  ;;  %v5143_v19 = vld [vmem:[%s5353_s25 + $0xa9] sm:$0xff] }
 0x501   : > { %v3979_v35 = vadd.f32 %v5139_v34, %v3912_v37  ;;  %3950 = vmatmul.bf16.gmra.mxu1 %v6862_v8  ;;  %v3828_v8 = vadd.f32 %v3827_v24, %v3739_v3  ;;  %v3753_v26 = vpop.f32.mrf.mxu3  ;;  %v3657_v34 = vadd.f32 %v3656_v6, %v6777_v38 }
 0x503   : > { %v4011_v2 = vmax.f32 %v3979_v35, 0.0  ;;  %v3833_v35 = vadd.f32 %v3832_v23, %v3744_v16  ;;  %v3746_v20 = vadd.f32 %v3745_v15, %v3657_v34  ;;  %v2444_v15 = vld [vmem:[#allocation2 + $0x19a] sm:$0xff] }
 0x505   : > { %4043 = vst [vmem:[%s6907_s17 + $0x40] sm:$0xff] %v4011_v2  ;;  %v3835_v3 = vadd.f32 %v3834_v33, %v3746_v20 }
 0x506   : > { %v3913_v51 = vpop.f32.mrf.mxu1 }
 0x507   : > { %v3914_v22 = vadd.f32 %v3913_v51, %v3825_v28  ;;  %v3666_v2 = vpop.f32.mrf.mxu2 }
 0x509   : > { %v3980_v36 = vadd.f32 %v5140_v45, %v3914_v22  ;;  %v3755_v51 = vpop.f32.mrf.mxu3  ;;  %v3660_v22 = vadd.f32 %v3659_v40, %v6786_v63 }
 0x50b   : > { %v4012_v52 = vmax.f32 %v3980_v36, 0.0  ;;  %v3749_v36 = vadd.f32 %v3748_v30, %v3660_v22 }
 0x50d   : > { %4044 = vst [vmem:[%s6907_s17 + $0x48] sm:$0xff] %v4012_v52  ;;  %v5144_v52 = vld [vmem:[%s5353_s25 + $0xb1] sm:$0xff] }
 0x50e   : > { %v3916_v1 = vpop.f32.mrf.mxu1 }
 0x50f   : > { %v3917_v57 = vadd.f32 %v3916_v1, %v3828_v8  ;;  %v3669_v23 = vpop.f32.mrf.mxu2  ;;  %v2445_v8 = vld [vmem:[#allocation2 + $0x1a2] sm:$0xff] }
 0x510   : > { %v2589_v42 = vpack.c.bf16 %v2445_v8, %v2444_v15 }
 0x511   : > { %v3981_v60 = vadd.f32 %v5141_v32, %v3917_v57  ;;  %3955 = vmatmul.bf16.gmra.mxu1 %v6873_v48  ;;  %v3842_v48 = vpop.f32.mrf.mxu0  ;;  %v3838_v57 = vadd.f32 %v3837_v0, %v3749_v36  ;;  %v3758_v63 = vpop.f32.mrf.mxu3 }
 0x513   : > { %v4013_v13 = vmax.f32 %v3981_v60, 0.0 }
 0x515   : > { %4045 = vst [vmem:[%s6907_s17 + $0x50] sm:$0xff] %v4013_v13  ;;  %v5145_v13 = vld [vmem:[%s5353_s25 + $0xc1] sm:$0xff] }
 0x516   : > { %v3918_v58 = vpop.f32.mrf.mxu1 }
 0x517   : > { %v3919_v24 = vadd.f32 %v3918_v58, %v3830_v43  ;;  %v3671_v30 = vpop.f32.mrf.mxu2  ;;  %v3665_v58 = vadd.f32 %v3664_v49, %v6805_v14 }
 0x519   : > { %v3982_v37 = vadd.f32 %v5142_v5, %v3919_v24  ;;  %v3844_v6 = vpop.f32.mrf.mxu0  ;;  %v3754_v16 = vadd.f32 %v3753_v26, %v3665_v58  ;;  %v5146_v5 = vld [vmem:[%s5353_s25 + $0xc9] sm:$0xff]  ;;  %v3670_v26 = vadd.f32 %v3669_v23, %v6822_v9 }
 0x51b   : > { %v4014_v41 = vmax.f32 %v3982_v37, 0.0 }
 0x51d   : > { %4046 = vst [vmem:[%s6907_s17 + $0x58] sm:$0xff] %v4014_v41 }
 0x51e   : > { %v3921_v11 = vpop.f32.mrf.mxu1 }
 0x51f   : > { %v3922_v4 = vadd.f32 %v3921_v11, %v3833_v35  ;;  %v3674_v34 = vpop.f32.mrf.mxu2  ;;  %v3667_v35 = vadd.f32 %v3666_v2, %v6812_v21  ;;  %v3843_v11 = vadd.f32 %v3842_v48, %v3754_v16  ;;  %v3759_v2 = vadd.f32 %v3758_v63, %v3670_v26  ;;  %v5148_v48 = vld [vmem:[%s5353_s25 + $0xe1] sm:$0xff]  ;;  %v5151_v16 = vld [vmem:[%s5353_s25 + $0x109] sm:$0xff] }
 0x521   : > { %v3983_v28 = vadd.f32 %v5143_v19, %v3922_v4  ;;  %3960 = vmatmul.bf16.gmra.mxu1 %v6884_v31  ;;  %v3662_v31 = vadd.f32 %v3661_v10, %v6795_v12  ;;  %v3847_v60 = vpop.f32.mrf.mxu0  ;;  %v3760_v10 = vpop.f32.mrf.mxu3  ;;  %v3756_v49 = vadd.f32 %v3755_v51, %v3667_v35 }
 0x523   : > { %v4015_v62 = vmax.f32 %v3983_v28, 0.0  ;;  %v3751_v32 = vadd.f32 %v3750_v47, %v3662_v31  ;;  %v3845_v22 = vadd.f32 %v3844_v6, %v3756_v49 }
 0x525   : > { %4047 = vst [vmem:[%s6907_s17 + $0x60] sm:$0xff] %v4015_v62  ;;  %v3840_v24 = vadd.f32 %v3839_v44, %v3751_v32  ;;  %v5147_v44 = vld [vmem:[%s5353_s25 + $0xd9] sm:$0xff] }
 0x526   : > { %v3923_v38 = vpop.f32.mrf.mxu1 }
 0x527   : > { %v3924_v45 = vadd.f32 %v3923_v38, %v3835_v3  ;;  %v3676_v3 = vpop.f32.mrf.mxu2 }
 0x528   : > { %v3677_v58 = vadd.f32 %v3676_v3, %v6846_v46 }
 0x529   : > { %v3984_v7 = vadd.f32 %v5144_v52, %v3924_v45  ;;  %v3849_v47 = vpop.f32.mrf.mxu0  ;;  %v3763_v19 = vpop.f32.mrf.mxu3  ;;  %v3672_v52 = vadd.f32 %v3671_v30, %v6829_v18 }
 0x52b   : > { %v4016_v1 = vmax.f32 %v3984_v7, 0.0  ;;  %v3848_v7 = vadd.f32 %v3847_v60, %v3759_v2  ;;  %v3761_v6 = vadd.f32 %v3760_v10, %v3672_v52 }
 0x52d   : > { %4048 = vst [vmem:[%s6907_s17 + $0x68] sm:$0xff] %v4016_v1  ;;  %v5149_v1 = vld [vmem:[%s5353_s25 + $0xf1] sm:$0xff]  ;;  %v3850_v63 = vadd.f32 %v3849_v47, %v3761_v6 }
 0x52e   : > { %v3926_v40 = vpop.f32.mrf.mxu1 }
 0x52f   : > { %v3927_v33 = vadd.f32 %v3926_v40, %v3838_v57  ;;  %v3679_v8 = vpop.f32.mrf.mxu2 }
 0x531   : > { %v3985_v17 = vadd.f32 %v5145_v13, %v3927_v33  ;;  %3965 = vmatmul.bf16.gmra.mxu1 %v2589_v42  ;;  %v3852_v62 = vpop.f32.mrf.mxu0  ;;  %v3765_v51 = vpop.f32.mrf.mxu3  ;;  %v3675_v42 = vadd.f32 %v3674_v34, %v6839_v61  ;;  %v5150_v13 = vld [vmem:[%s5353_s25 + $0xf9] sm:$0xff]  ;;  %v3680_v34 = vadd.f32 %v3679_v8, %v6856_v55 }
 0x532   : > { %v3766_v10 = vadd.f32 %v3765_v51, %v3677_v58  ;;  %v5156_v58 = vld [vmem:[%s5353_s25 + $0x141] sm:$0xff] }
 0x533   : > { %v4017_v43 = vmax.f32 %v3985_v17, 0.0  ;;  %v3764_v32 = vadd.f32 %v3763_v19, %v3675_v42 }
 0x535   : > { %4049 = vst [vmem:[%s6907_s17 + $0x70] sm:$0xff] %v4017_v43 }
 0x536   : > { %v3928_v12 = vpop.f32.mrf.mxu1 }
 0x537   : > { %v3929_v0 = vadd.f32 %v3928_v12, %v3840_v24  ;;  %v3681_v30 = vpop.f32.mrf.mxu2  ;;  %v3853_v24 = vadd.f32 %v3852_v62, %v3764_v32 }
 0x538   : > { %v3682_v19 = vadd.f32 %v3681_v30, %v6860_v53 }
 0x539   : > { %v3986_v37 = vadd.f32 %v5146_v5, %v3929_v0  ;;  %v3854_v9 = vpop.f32.mrf.mxu0  ;;  %v3768_v40 = vpop.f32.mrf.mxu3 }
 0x53a   : > { %v3855_v35 = vadd.f32 %v3854_v9, %v3766_v10  ;;  %v5154_v9 = vld [vmem:[%s5353_s25 + $0x129] sm:$0xff] }
 0x53b   : > { %v4018_v41 = vmax.f32 %v3986_v37, 0.0 }
 0x53d   : > { %4050 = vst [vmem:[%s6907_s17 + $0x78] sm:$0xff] %v4018_v41 }
 0x53e   : > { %v3931_v4 = vpop.f32.mrf.mxu1 }
 0x53f   : > { %v3932_v14 = vadd.f32 %v3931_v4, %v3843_v11  ;;  %v3684_v41 = vpop.f32.mrf.mxu2  ;;  %v3769_v4 = vadd.f32 %v3768_v40, %v3680_v34  ;;  %v5155_v40 = vld [vmem:[%s5353_s25 + $0x139] sm:$0xff] }
 0x541   : > { %v3987_v20 = vadd.f32 %v5147_v44, %v3932_v14  ;;  %v3857_v60 = vpop.f32.mrf.mxu0  ;;  %v3770_v0 = vpop.f32.mrf.mxu3  ;;  %v5152_v14 = vld [vmem:[%s5353_s25 + $0x111] sm:$0xff] }
 0x542   : > { %v3858_v26 = vadd.f32 %v3857_v60, %v3769_v4  ;;  %v3771_v3 = vadd.f32 %v3770_v0, %v3682_v19 }
 0x543   : > { %v4019_v28 = vmax.f32 %v3987_v20, 0.0 }
 0x545   : > { %4051 = vst [vmem:[%s6907_s17 + $0x80] sm:$0xff] %v4019_v28 }
 0x546   : > { %v3933_v38 = vpop.f32.mrf.mxu1 }
 0x547   : > { %v3934_v21 = vadd.f32 %v3933_v38, %v3845_v22  ;;  %v3686_v62 = vpop.f32.mrf.mxu2  ;;  %v5153_v38 = vld [vmem:[%s5353_s25 + $0x121] sm:$0xff] }
 0x548   : > { %v3687_v6 = vadd.f32 %v3686_v62, %v6871_v54 }
 0x549   : > { %v3988_v45 = vadd.f32 %v5148_v48, %v3934_v21  ;;  %v3859_v37 = vpop.f32.mrf.mxu0  ;;  %v3773_v44 = vpop.f32.mrf.mxu3 }
 0x54b   : > { %v4020_v36 = vmax.f32 %v3988_v45, 0.0  ;;  %v3685_v45 = vadd.f32 %v3684_v41, %v6867_v29 }
 0x54d   : > { %4052 = vst [vmem:[%s6907_s17 + $0x88] sm:$0xff] %v4020_v36  ;;  %v3860_v36 = vadd.f32 %v3859_v37, %v3771_v3 }
 0x54e   : > { %v3936_v15 = vpop.f32.mrf.mxu1 }
 0x54f   : > { %v3937_v23 = vadd.f32 %v3936_v15, %v3848_v7  ;;  %v3689_v7 = vpop.f32.mrf.mxu2  ;;  %v3774_v15 = vadd.f32 %v3773_v44, %v3685_v45 }
 0x550   : > { %v3690_v60 = vadd.f32 %v3689_v7, %v6878_v50 }
 0x551   : > { %v3989_v31 = vadd.f32 %v5149_v1, %v3937_v23  ;;  %v3862_v28 = vpop.f32.mrf.mxu0  ;;  %v3775_v48 = vpop.f32.mrf.mxu3 }
 0x552   : > { %v3863_v1 = vadd.f32 %v3862_v28, %v3774_v15  ;;  %v3776_v42 = vadd.f32 %v3775_v48, %v3687_v6 }
 0x553   : > { %v4021_v57 = vmax.f32 %v3989_v31, 0.0 }
 0x555   : > { %4053 = vst [vmem:[%s6907_s17 + $0x90] sm:$0xff] %v4021_v57 }
 0x556   : > { %v3938_v33 = vpop.f32.mrf.mxu1 }
 0x557   : > { %v3939_v18 = vadd.f32 %v3938_v33, %v3850_v63 }
 0x559   : > { %v3990_v17 = vadd.f32 %v5150_v13, %v3939_v18  ;;  %v3864_v53 = vpop.f32.mrf.mxu0  ;;  %v3778_v31 = vpop.f32.mrf.mxu3 }
 0x55a   : > { %v3691_v18 = vpop.f32.mrf.mxu2  ;;  %v3865_v13 = vadd.f32 %v3864_v53, %v3776_v42 }
 0x55b   : > { %v4022_v43 = vmax.f32 %v3990_v17, 0.0  ;;  %v3692_v10 = vadd.f32 %v3691_v18, %v6882_v39 }
 0x55d   : > { %4054 = vst [vmem:[%s6907_s17 + $0x98] sm:$0xff] %v4022_v43  ;;  %v3779_v43 = vadd.f32 %v3778_v31, %v3690_v60 }
 0x55e   : > { %v3941_v12 = vpop.f32.mrf.mxu1 }
 0x55f   : > { %v3942_v61 = vadd.f32 %v3941_v12, %v3853_v24 }
 0x561   : > { %v3991_v5 = vadd.f32 %v5151_v16, %v3942_v61  ;;  %v3867_v63 = vpop.f32.mrf.mxu0  ;;  %v3780_v30 = vpop.f32.mrf.mxu3 }
 0x562   : > { %v3694_v0 = vpop.f32.mrf.mxu2  ;;  %v3868_v16 = vadd.f32 %v3867_v63, %v3779_v43  ;;  %v3781_v37 = vadd.f32 %v3780_v30, %v3692_v10  ;;  %v5161_v63 = vld [vmem:[%s5353_s25 + $0x181] sm:$0xff] }
 0x563   : > { %v4023_v47 = vmax.f32 %v3991_v5, 0.0 }
 0x565   : > { %4055 = vst [vmem:[%s6907_s17 + $0xa0] sm:$0xff] %v4023_v47  ;;  %v5157_v47 = vld [vmem:[%s5353_s25 + $0x151] sm:$0xff] }
 0x566   : > { %v3943_v11 = vpop.f32.mrf.mxu1 }
 0x567   : > { %v3944_v46 = vadd.f32 %v3943_v11, %v3855_v35 }
 0x569   : > { %v3992_v49 = vadd.f32 %v5152_v14, %v3944_v46  ;;  %v3869_v12 = vpop.f32.mrf.mxu0  ;;  %v3783_v34 = vpop.f32.mrf.mxu3  ;;  %v3695_v46 = vadd.f32 %v3694_v0, %v6888_v27 }
 0x56a   : > { %v3870_v4 = vadd.f32 %v3869_v12, %v3781_v37  ;;  %v3696_v14 = vpop.f32.mrf.mxu2 }
 0x56b   : > { %v4024_v20 = vmax.f32 %v3992_v49, 0.0  ;;  %v3784_v44 = vadd.f32 %v3783_v34, %v3695_v46  ;;  %v3697_v62 = vadd.f32 %v3696_v14, %v6892_v56 }
 0x56d   : > { %4056 = vst [vmem:[%s6907_s17 + $0xa8] sm:$0xff] %v4024_v20  ;;  %v5158_v20 = vld [vmem:[%s5353_s25 + $0x159] sm:$0xff] }
 0x56e   : > { %v3946_v22 = vpop.f32.mrf.mxu1 }
 0x56f   : > { %v3947_v55 = vadd.f32 %v3946_v22, %v3858_v26 }
 0x571   : > { %v3993_v21 = vadd.f32 %v5153_v38, %v3947_v55  ;;  %v3872_v11 = vpop.f32.mrf.mxu0  ;;  %v3785_v26 = vpop.f32.mrf.mxu3 }
 0x572   : > { %v3873_v22 = vadd.f32 %v3872_v11, %v3784_v44  ;;  %v3699_v38 = vpop.f32.mrf.mxu2 }
 0x573   : > { %v4025_v2 = vmax.f32 %v3993_v21, 0.0  ;;  %v3786_v21 = vadd.f32 %v3785_v26, %v3697_v62 }
 0x575   : > { %4057 = vst [vmem:[%s6907_s17 + $0xb0] sm:$0xff] %v4025_v2  ;;  %v5159_v2 = vld [vmem:[%s5353_s25 + $0x169] sm:$0xff] }
 0x576   : > { %v3948_v51 = vpop.f32.mrf.mxu1 }
 0x577   : > { %v3949_v52 = vadd.f32 %v3948_v51, %v3860_v36  ;;  %v3700_v51 = vadd.f32 %v3699_v38, %v6895_v59 }
 0x579   : > { %v3994_v23 = vadd.f32 %v5154_v9, %v3949_v52  ;;  %v3874_v27 = vpop.f32.mrf.mxu0  ;;  %v3788_v36 = vpop.f32.mrf.mxu3  ;;  %v5160_v9 = vld [vmem:[%s5353_s25 + $0x171] sm:$0xff] }
 0x57a   : > { %v3875_v53 = vadd.f32 %v3874_v27, %v3786_v21  ;;  %v3789_v15 = vadd.f32 %v3788_v36, %v3700_v51 }
 0x57b   : > { %v4026_v8 = vmax.f32 %v3994_v23, 0.0 }
 0x57d   : > { %4058 = vst [vmem:[%s6907_s17 + $0xb8] sm:$0xff] %v4026_v8  ;;  %v3701_v8 = vpop.f32.mrf.mxu2 }
 0x57e   : > { %v3951_v57 = vpop.f32.mrf.mxu1  ;;  %v3702_v31 = vadd.f32 %v3701_v8, %v6899_v25 }
 0x57f   : > { %v3952_v29 = vadd.f32 %v3951_v57, %v3863_v1 }
 0x581   : > { %v3995_v33 = vadd.f32 %v5155_v40, %v3952_v29  ;;  %v3877_v7 = vpop.f32.mrf.mxu0  ;;  %v3790_v57 = vpop.f32.mrf.mxu3 }
 0x582   : > { %v3878_v1 = vadd.f32 %v3877_v7, %v3789_v15  ;;  %v3791_v42 = vadd.f32 %v3790_v57, %v3702_v31 }
 0x583   : > { %v4027_v32 = vmax.f32 %v3995_v33, 0.0 }
 0x585   : > { %4059 = vst [vmem:[%s6907_s17 + $0xc0] sm:$0xff] %v4027_v32 }
 0x586   : > { %v3953_v17 = vpop.f32.mrf.mxu1 }
 0x587   : > { %v3954_v54 = vadd.f32 %v3953_v17, %v3865_v13  ;;  %v5162_v13 = vld [vmem:[%s5353_s25 + $0x189] sm:$0xff] }
 0x589   : > { %v3996_v24 = vadd.f32 %v5156_v58, %v3954_v54  ;;  %v3879_v33 = vpop.f32.mrf.mxu0 }
 0x58a   : > { %v3880_v32 = vadd.f32 %v3879_v33, %v3791_v42 }
 0x58b   : > { %v4028_v61 = vmax.f32 %v3996_v24, 0.0 }
 0x58d   : > { %4060 = vst [vmem:[%s6907_s17 + $0xc8] sm:$0xff] %v4028_v61 }
 0x58e   : > { %v3956_v5 = vpop.f32.mrf.mxu1 }
 0x58f   : > { %v3957_v50 = vadd.f32 %v3956_v5, %v3868_v16 }
 0x591   : > { %v3997_v41 = vadd.f32 %v5157_v47, %v3957_v50 }
 0x593   : > { %v4029_v35 = vmax.f32 %v3997_v41, 0.0 }
 0x595   : > { %4061 = vst [vmem:[%s6907_s17 + $0xd0] sm:$0xff] %v4029_v35 }
 0x596   : > { %v3958_v49 = vpop.f32.mrf.mxu1 }
 0x597   : > { %v3959_v39 = vadd.f32 %v3958_v49, %v3870_v4 }
 0x599   : > { %v3998_v19 = vadd.f32 %v5158_v20, %v3959_v39 }
 0x59b   : > { %v4030_v28 = vmax.f32 %v3998_v19, 0.0 }
 0x59d   : > { %4062 = vst [vmem:[%s6907_s17 + $0xd8] sm:$0xff] %v4030_v28 }
 0x59e   : > { %v3961_v55 = vpop.f32.mrf.mxu1 }
 0x59f   : > { %v3962_v3 = vadd.f32 %v3961_v55, %v3873_v22 }
 0x5a1   : > { %v3999_v48 = vadd.f32 %v5159_v2, %v3962_v3 }
 0x5a3   : > { %v4031_v45 = vmax.f32 %v3999_v48, 0.0 }
 0x5a5   : > { %4063 = vst [vmem:[%s6907_s17 + $0xe0] sm:$0xff] %v4031_v45 }
 0x5a6   : > { %v3963_v52 = vpop.f32.mrf.mxu1 }
 0x5a7   : > { %v3964_v56 = vadd.f32 %v3963_v52, %v3875_v53 }
 0x5a9   : > { %v4000_v23 = vadd.f32 %v5160_v9, %v3964_v56 }
 0x5ab   : > { %v4032_v6 = vmax.f32 %v4000_v23, 0.0 }
 0x5ad   : > { %4064 = vst [vmem:[%s6907_s17 + $0xe8] sm:$0xff] %v4032_v6 }
 0x5ae   : > { %v3966_v59 = vpop.f32.mrf.mxu1 }
 0x5af   : > { %v3967_v29 = vadd.f32 %v3966_v59, %v3878_v1 }
 0x5b1   : > { %v4001_v40 = vadd.f32 %v5161_v63, %v3967_v29 }
 0x5b3   : > { %v4033_v18 = vmax.f32 %v4001_v40, 0.0 }
 0x5b5   : > { %4065 = vst [vmem:[%s6907_s17 + $0xf0] sm:$0xff] %v4033_v18 }
 0x5b6   : > { %v3968_v25 = vpop.f32.mrf.mxu1 }
 0x5b7   : > { %v3969_v60 = vadd.f32 %v3968_v25, %v3880_v32 }
 0x5b9   : > { %v4002_v17 = vadd.f32 %v5162_v13, %v3969_v60 }
 0x5bb   : > { %v4034_v54 = vmax.f32 %v4002_v17, 0.0 }
 0x5bd   : > { %4066 = vst [vmem:[%s6907_s17 + $0xf8] sm:$0xff] %v4034_v54 }
 0x5be   : > { %5190 = shalt.err (!%p5187_p3)
}
 0x5bf   : > { %s5229_s15 = smov 128   ;;  %s5230_s16 = smov 8  }
 0x5c0   : > { %5086 = dma.vmem_to_hbm [thread:$0]  (%p5299_p5), %s4081_s7, 4096, %s4083_s8, %s4068_s22, %s5229_s15, %s5229_s15, %s5230_s16  }
 0x5c1 PF: > { %p5092_p4 = scmp.ge.s32.totalorder %s5225_s21, 2  ;;  %s4097_s17 = sand.u32 1, %s5213_s18  }
 0x5c2   : > { %s4098_s23 = scalar_lea.sflag [#allocation4], %s4097_s17 }
 0x5c3   : > { %p5089_p7 = pnand %p5092_p4, %p5303_p6 }
 0x5c5   : > { %p5090_p8 = pneg %p5089_p7 }
 0x5c7   : > { %5208 = dma.done.wait (%p5090_p8), %s4098_s23, 4096  }
 0x5c8   : > { %5210 = vsyncadd (%p5090_p8), %s4098_s23, 4294963200  ;;  %p15_p9 = scmp.ge.s32.totalorder %s5286_s24, 4   ;;  %s7055_s18 = smov %s5217_s19 }
 0x5c9   : > { %s7056_s19 = smov %s5221_s20  ;;  %s7057_s20 = smov %s5297_s27 }
 0x5ca   : > { %s7058_s21 = smov %s5286_s24  ;;  %17 = sbr.rel (!%p15_p9) target bundleno = 3 (0x3), region = 79 }
 0x5cf   :  { %4104 = vsyncpa [#allocation4], 1 }
 0x5d0   :  { %4106 = vsyncpa [#allocation4 + $0x1], 1 }

</bundles_post_ra>
